<compile_context>
chip_gen: v7x
topology: tpu7x:2x2x1
jax: 0.10.0
libtpu: 0.0.40
codegen_flags: <defaults>
</compile_context>

<pallas_src>
import functools
import math

import jax
import jax.numpy as jnp
from jax.experimental import pallas as pl
from jax.experimental.pallas import tpu as pltpu

_LN_EPS = 1e-5


def _layernorm_f32(x, gamma, beta):
    mu = jnp.mean(x, axis=-1, keepdims=True)
    xc = x - mu
    var = jnp.mean(xc * xc, axis=-1, keepdims=True)
    return xc * jax.lax.rsqrt(var + _LN_EPS) * gamma + beta


def _gelu_tanh(x):
    # TODO(synk): PyTorch nn.GELU default is the exact erf form; the tanh approximation
    # (max abs deviation ~3e-4) is used since tanh maps cleanly onto the EUP.
    c = 0.7978845608028654  # sqrt(2/pi)
    return 0.5 * x * (1.0 + jnp.tanh(c * (x + 0.044715 * x * x * x)))


def _block_kernel(x_ref, wqkv_ref, wproj_ref, wfc1_ref, wfc2_ref,
                  misc_ref, bfc1_ref, o_ref, *, num_heads, score_scale):
    # x_ref:    (1, N, C) f32
    # wqkv_ref: (C, 3C) bf16  (Q columns pre-scaled iff score_scale == 1.0)
    # wproj_ref:(C, C)  bf16 | wfc1_ref: (C, 4C) bf16 | wfc2_ref: (4C, C) bf16
    # misc_ref: (6, C)  f32  = [ln1_g, ln1_b, ln2_g, ln2_b, b_proj, b_fc2]
    # bfc1_ref: (1, 4C) f32
    x = x_ref[0].astype(jnp.float32)                      # (N, C)
    N, C = x.shape
    H = num_heads
    Dh = C // H

    g1 = misc_ref[0:1, :]
    b1 = misc_ref[1:2, :]
    g2 = misc_ref[2:3, :]
    b2 = misc_ref[3:4, :]
    b_proj = misc_ref[4:5, :]
    b_fc2 = misc_ref[5:6, :]

    # ---- LayerNorm 1 (f32 elementwise) ----
    ln1 = _layernorm_f32(x, g1, b1)

    # ---- QKV projection: bf16 operands, f32 accumulation ----
    qkv = jnp.dot(ln1.astype(jnp.bfloat16), wqkv_ref[...],
                  preferred_element_type=jnp.float32)     # (N, 3C) f32

    # ---- Attention: batched over heads (no per-head lane-offset slices) ----
    q = qkv[:, 0 * C:1 * C]                               # lane-aligned (N, C) slices
    k = qkv[:, 1 * C:2 * C]
    v = qkv[:, 2 * C:3 * C]

    q_h = jnp.transpose(q.reshape(N, H, Dh), (1, 0, 2)).astype(jnp.bfloat16)  # (H, N, Dh)
    v_h = jnp.transpose(v.reshape(N, H, Dh), (1, 0, 2)).astype(jnp.bfloat16)  # (H, N, Dh)
    k_h = jnp.transpose(k.reshape(N, H, Dh), (1, 0, 2))                       # (H, N, Dh)
    k_t = jnp.swapaxes(k_h, 1, 2).astype(jnp.bfloat16)    # (H, Dh, N): one batched transpose

    s = jnp.einsum('hnd,hdm->hnm', q_h, k_t,
                   preferred_element_type=jnp.float32)    # (H, N, N) f32
    if score_scale != 1.0:                                # static; skipped when folded into W_q
        s = s * score_scale
    s = s - jnp.max(s, axis=-1, keepdims=True)
    p = jnp.exp(s)                                        # unnormalized probs
    l = jnp.sum(p, axis=-1, keepdims=True)                # (H, N, 1)

    ctx = jnp.einsum('hnm,hmd->hnd', p.astype(jnp.bfloat16), v_h,
                     preferred_element_type=jnp.float32)  # (H, N, Dh) f32
    # Deferred softmax normalization: O(N*Dh) instead of O(N*N); approx recip on EUP.
    ctx = ctx * pl.reciprocal(l, approx=True)
    ctx = jnp.transpose(ctx, (1, 0, 2)).reshape(N, C)     # (N, C) f32
    # attn_drop / proj_drop with p = 0.0 are identities.

    # ---- Output projection + residual ----
    attn_out = jnp.dot(ctx.astype(jnp.bfloat16), wproj_ref[...],
                       preferred_element_type=jnp.float32) + b_proj
    h1 = x + attn_out                                     # (N, C)

    # ---- LayerNorm 2 + MLP (Linear -> GELU -> Linear) + residual ----
    # TODO(synk): at real ViT sizes, chunk fc1/GELU/fc2 along the 4C hidden axis and
    # accumulate fc2 partials into a (tq, C) f32 scratch to bound VMEM (v7x: 64 MiB).
    ln2 = _layernorm_f32(h1, g2, b2)
    hid = jnp.dot(ln2.astype(jnp.bfloat16), wfc1_ref[...],
                  preferred_element_type=jnp.float32) + bfc1_ref[...]   # (N, 4C)
    hid = _gelu_tanh(hid)
    mlp_out = jnp.dot(hid.astype(jnp.bfloat16), wfc2_ref[...],
                      preferred_element_type=jnp.float32) + b_fc2

    o_ref[0] = (h1 + mlp_out).astype(o_ref.dtype)


def prepare_params(params, *, num_heads):
    """One-time weight preprocessing, hoisted OFF the per-call path.

    Folds the attention scale into the Q weight columns when it is exactly a power of
    two (lossless in bf16), casts all matmul weights to bf16, and packs the LN params /
    biases into one (6, C) array so the kernel needs only two small parameter DMAs.
    Returns (prepared_params, score_scale) where score_scale is 1.0 when folded.
    """
    C = params['w_proj'].shape[0]
    Hd = params['w_fc1'].shape[1]
    assert C % num_heads == 0
    Dh = C // num_heads
    scale = Dh ** (-0.5)
    mant, _ = math.frexp(scale)
    fold = (mant == 0.5)          # scale is a power of two -> exact fold into bf16 weights

    w_qkv = params['w_qkv']
    if fold:
        w_qkv = w_qkv.at[:, :C].multiply(scale)

    prep = dict(
        w_qkv=w_qkv.astype(jnp.bfloat16),                       # (C, 3C)
        w_proj=params['w_proj'].astype(jnp.bfloat16),           # (C, C)
        w_fc1=params['w_fc1'].astype(jnp.bfloat16),             # (C, 4C)
        w_fc2=params['w_fc2'].astype(jnp.bfloat16),             # (4C, C)
        misc=jnp.stack([params['ln1_g'], params['ln1_b'],
                        params['ln2_g'], params['ln2_b'],
                        params['b_proj'], params['b_fc2']],
                       axis=0).astype(jnp.float32),             # (6, C)
        b_fc1=params['b_fc1'].reshape(1, Hd).astype(jnp.float32),
    )
    return prep, (1.0 if fold else scale)


def transformer_block(x, prep, *, num_heads, score_scale=1.0):
    """x: (B, N, C) f32; prep: output of prepare_params(). Returns (B, N, C) f32."""
    B, N, C = x.shape
    assert C % num_heads == 0
    Hd = prep['w_fc1'].shape[1]

    const = lambda shape: pl.BlockSpec(shape, lambda b: (0,) * len(shape))
    kernel = functools.partial(_block_kernel, num_heads=num_heads,
                               score_scale=score_scale)

    # TODO(synk): for real ViT sizes add an N-tile grid axis (tq=256 on v6e/v7x, 128 on
    # v5e) and set pipeline_mode=pl.Buffered(1) on the constant-index weight specs so
    # single-buffered bf16 weights + activations stay within v7x's 64 MiB VMEM.
    return pl.pallas_call(
        kernel,
        out_shape=jax.ShapeDtypeStruct((B, N, C), x.dtype),
        grid_spec=pltpu.PrefetchScalarGridSpec(
            num_scalar_prefetch=0,
            grid=(B,),
            in_specs=[
                pl.BlockSpec((1, N, C), lambda b: (b, 0, 0)),   # x
                const((C, 3 * C)),                              # w_qkv (bf16, Q pre-scaled)
                const((C, C)),                                  # w_proj (bf16)
                const((C, Hd)),                                 # w_fc1 (bf16)
                const((Hd, C)),                                 # w_fc2 (bf16)
                const((6, C)),                                  # packed LN params + biases
                const((1, Hd)),                                 # b_fc1
            ],
            out_specs=pl.BlockSpec((1, N, C), lambda b: (b, 0, 0)),
        ),
        compiler_params=pltpu.CompilerParams(
            dimension_semantics=("parallel",),
            vmem_limit_bytes=32 * 1024 * 1024),
    )(x, prep['w_qkv'], prep['w_proj'], prep['w_fc1'], prep['w_fc2'],
      prep['misc'], prep['b_fc1'])


def transformer_block_ref(x, params, *, num_heads):
    """Pure-JAX f32 reference mirroring the PyTorch TransformerBlock.forward."""
    B, N, C = x.shape
    H = num_heads
    Dh = C // H
    scale = Dh ** (-0.5)

    def ln(y, g, b):
        mu = y.mean(-1, keepdims=True)
        var = ((y - mu) ** 2).mean(-1, keepdims=True)
        return (y - mu) / jnp.sqrt(var + _LN_EPS) * g + b

    ln1 = ln(x, params['ln1_g'], params['ln1_b'])
    qkv = (ln1 @ params['w_qkv']).reshape(B, N, 3, H, Dh).transpose(2, 0, 3, 1, 4)
    q, k, v = qkv[0], qkv[1], qkv[2]
    attn = (q @ jnp.swapaxes(k, -2, -1)) * scale
    attn = jax.nn.softmax(attn, axis=-1)
    ao = (attn @ v).transpose(0, 2, 1, 3).reshape(B, N, C)
    ao = ao @ params['w_proj'] + params['b_proj']
    h1 = x + ao
    ln2 = ln(h1, params['ln2_g'], params['ln2_b'])
    hid = jax.nn.gelu(ln2 @ params['w_fc1'] + params['b_fc1'], approximate=False)
    mlp = hid @ params['w_fc2'] + params['b_fc2']
    return h1 + mlp


def transformer_block_matched_ref(x, prep, *, num_heads, score_scale):
    """Pure-JAX reference matching the kernel's numerics (bf16 matmul operands, tanh
    GELU, exact reciprocal). Tight check that catches head-slicing / layout bugs."""
    B, N, C = x.shape
    H = num_heads
    Dh = C // H
    g1, b1, g2, b2, b_proj, b_fc2 = [prep['misc'][i] for i in range(6)]

    def ln(y, g, b):
        mu = y.mean(-1, keepdims=True)
        xc = y - mu
        var = (xc * xc).mean(-1, keepdims=True)
        return xc * jax.lax.rsqrt(var + _LN_EPS) * g + b

    ln1 = ln(x, g1, b1)
    qkv = jnp.einsum('bnc,cd->bnd', ln1.astype(jnp.bfloat16), prep['w_qkv'],
                     preferred_element_type=jnp.float32)
    q, k, v = qkv[..., :C], qkv[..., C:2 * C], qkv[..., 2 * C:]
    q = q.reshape(B, N, H, Dh).transpose(0, 2, 1, 3).astype(jnp.bfloat16)
    k = k.reshape(B, N, H, Dh).transpose(0, 2, 1, 3).astype(jnp.bfloat16)
    v = v.reshape(B, N, H, Dh).transpose(0, 2, 1, 3).astype(jnp.bfloat16)
    s = jnp.einsum('bhnd,bhmd->bhnm', q, k,
                   preferred_element_type=jnp.float32) * score_scale
    s = s - s.max(-1, keepdims=True)
    p = jnp.exp(s)
    l = p.sum(-1, keepdims=True)
    ctx = jnp.einsum('bhnm,bhmd->bhnd', p.astype(jnp.bfloat16), v,
                     preferred_element_type=jnp.float32) / l
    ctx = ctx.transpose(0, 2, 1, 3).reshape(B, N, C)
    attn_out = jnp.einsum('bnc,cd->bnd', ctx.astype(jnp.bfloat16), prep['w_proj'],
                          preferred_element_type=jnp.float32) + b_proj
    h1 = x + attn_out
    ln2 = ln(h1, g2, b2)
    hid = jnp.einsum('bnc,ch->bnh', ln2.astype(jnp.bfloat16), prep['w_fc1'],
                     preferred_element_type=jnp.float32) + prep['b_fc1'][0]
    hid = _gelu_tanh(hid)
    mlp = jnp.einsum('bnh,hc->bnc', hid.astype(jnp.bfloat16), prep['w_fc2'],
                     preferred_element_type=jnp.float32) + b_fc2
    return h1 + mlp


if __name__ == "__main__":
    # Small shapes implied by the module: dim=C=128, heads=8 (Dh=16), tokens N=32,
    # mlp_ratio=4.0 -> hidden=512. C=128 keeps the output store lane-dense.
    B, N, C, H = 2, 32, 128, 8
    Hd = int(C * 4.0)

    key = jax.random.PRNGKey(0)
    ks = jax.random.split(key, 12)

    # Round matmul weights to bf16-representable f32 so the one-time bf16 cast is
    # lossless (and the Q-column scale fold, 0.25 = power of two, stays exact).
    bf16_round = lambda a: a.astype(jnp.bfloat16).astype(jnp.float32)

    x = jax.random.normal(ks[0], (B, N, C), dtype=jnp.float32)
    params = dict(
        w_qkv=bf16_round(jax.random.normal(ks[1], (C, 3 * C), jnp.float32) * C ** -0.5),
        w_proj=bf16_round(jax.random.normal(ks[2], (C, C), jnp.float32) * C ** -0.5),
        b_proj=jax.random.normal(ks[3], (C,), jnp.float32) * 0.02,
        ln1_g=1.0 + 0.1 * jax.random.normal(ks[4], (C,), jnp.float32),
        ln1_b=0.05 * jax.random.normal(ks[5], (C,), jnp.float32),
        ln2_g=1.0 + 0.1 * jax.random.normal(ks[6], (C,), jnp.float32),
        ln2_b=0.05 * jax.random.normal(ks[7], (C,), jnp.float32),
        w_fc1=bf16_round(jax.random.normal(ks[8], (C, Hd), jnp.float32) * C ** -0.5),
        b_fc1=jax.random.normal(ks[9], (Hd,), jnp.float32) * 0.02,
        w_fc2=bf16_round(jax.random.normal(ks[10], (Hd, C), jnp.float32) * Hd ** -0.5),
        b_fc2=jax.random.normal(ks[11], (C,), jnp.float32) * 0.02,
    )

    # One-time weight prep — NOT on the per-call path.
    prep, score_scale = prepare_params(params, num_heads=H)
    prep = jax.tree_util.tree_map(jax.block_until_ready, prep)

    out = transformer_block(x, prep, num_heads=H, score_scale=score_scale)
    out = jax.block_until_ready(out)
    assert out.shape == (B, N, C)

    # Tight check vs a bf16-matched reference (catches head/layout bugs; only the
    # EUP approximate reciprocal and accumulation order differ).
    matched = transformer_block_matched_ref(x, prep, num_heads=H, score_scale=score_scale)
    m_max = float(jnp.max(jnp.abs(out - matched)))
    m_rel = float(jnp.linalg.norm(out - matched) / jnp.linalg.norm(matched))
    assert m_max < 5e-2 and m_rel < 1e-2, f"matched-ref mismatch: max={m_max} rel={m_rel}"

    # Loose check vs the exact f32 / erf-GELU reference (bf16 MXU operands + tanh GELU
    # + approx reciprocal -> ~1e-2-scale deviations).
    ref = transformer_block_ref(x, params, num_heads=H)
    r_max = float(jnp.max(jnp.abs(out - ref)))
    r_rel = float(jnp.linalg.norm(out - ref) / jnp.linalg.norm(ref))
    assert r_max < 1e-1 and r_rel < 2e-2, f"f32-ref mismatch: max={r_max} rel={r_rel}"

    print("KERNEL_OK")
</pallas_src>

<mosaic_0001>
module attributes {stable_mosaic.version = 11 : i64} {
  func.func @_block_kernel(%arg0: i32, %arg1: memref<1x32x128xf32, #tpu.memory_space<vmem>>, %arg2: memref<128x384xbf16, #tpu.memory_space<vmem>>, %arg3: memref<128x128xbf16, #tpu.memory_space<vmem>>, %arg4: memref<128x512xbf16, #tpu.memory_space<vmem>>, %arg5: memref<512x128xbf16, #tpu.memory_space<vmem>>, %arg6: memref<6x128xf32, #tpu.memory_space<vmem>>, %arg7: memref<1x512xf32, #tpu.memory_space<vmem>>, %arg8: memref<1x32x128xf32, #tpu.memory_space<vmem>>) attributes {dimension_semantics = [#tpu.dimension_semantics<parallel>], iteration_bounds = array<i64: 2>, scalar_prefetch = 0 : i64, scratch_operands = 0 : i64, tpu.core_type = #tpu.core_type<tc>, window_params = [{transform_indices = @transform_0, window_bounds = array<i64: 1, 32, 128>}, {pipeline_mode = #tpu.pipeline_mode<synchronous>, transform_indices = @transform_1, window_bounds = array<i64: 128, 384>}, {pipeline_mode = #tpu.pipeline_mode<synchronous>, transform_indices = @transform_2, window_bounds = array<i64: 128, 128>}, {pipeline_mode = #tpu.pipeline_mode<synchronous>, transform_indices = @transform_3, window_bounds = array<i64: 128, 512>}, {pipeline_mode = #tpu.pipeline_mode<synchronous>, transform_indices = @transform_4, window_bounds = array<i64: 512, 128>}, {pipeline_mode = #tpu.pipeline_mode<synchronous>, transform_indices = @transform_5, window_bounds = array<i64: 6, 128>}, {pipeline_mode = #tpu.pipeline_mode<synchronous>, transform_indices = @transform_6, window_bounds = array<i64: 1, 512>}, {transform_indices = @transform_7, window_bounds = array<i64: 1, 32, 128>}]} {
    %c0 = arith.constant 0 : index
    %c0_0 = arith.constant 0 : index
    %c0_1 = arith.constant 0 : index
    %0 = vector.load %arg1[%c0, %c0_0, %c0_1] : memref<1x32x128xf32, #tpu.memory_space<vmem>>, vector<1x32x128xf32>
    %1 = vector.shape_cast %0 : vector<1x32x128xf32> to vector<32x128xf32>
    %c0_2 = arith.constant 0 : index
    %c0_3 = arith.constant 0 : index
    %2 = vector.load %arg6[%c0_2, %c0_3] : memref<6x128xf32, #tpu.memory_space<vmem>>, vector<1x128xf32>
    %c1 = arith.constant 1 : index
    %c0_4 = arith.constant 0 : index
    %3 = vector.load %arg6[%c1, %c0_4] : memref<6x128xf32, #tpu.memory_space<vmem>>, vector<1x128xf32>
    %c2 = arith.constant 2 : index
    %c0_5 = arith.constant 0 : index
    %4 = vector.load %arg6[%c2, %c0_5] : memref<6x128xf32, #tpu.memory_space<vmem>>, vector<1x128xf32>
    %c3 = arith.constant 3 : index
    %c0_6 = arith.constant 0 : index
    %5 = vector.load %arg6[%c3, %c0_6] : memref<6x128xf32, #tpu.memory_space<vmem>>, vector<1x128xf32>
    %c4 = arith.constant 4 : index
    %c0_7 = arith.constant 0 : index
    %6 = vector.load %arg6[%c4, %c0_7] : memref<6x128xf32, #tpu.memory_space<vmem>>, vector<1x128xf32>
    %c5 = arith.constant 5 : index
    %c0_8 = arith.constant 0 : index
    %7 = vector.load %arg6[%c5, %c0_8] : memref<6x128xf32, #tpu.memory_space<vmem>>, vector<1x128xf32>
    %cst = arith.constant dense<0.000000e+00> : vector<32xf32>
    %8 = vector.multi_reduction <add>, %1, %cst [1] : vector<32x128xf32> to vector<32xf32>
    %9 = vector.shape_cast %8 : vector<32xf32> to vector<32x1xf32>
    %cst_9 = arith.constant 1.280000e+02 : f32
    %10 = vector.broadcast %cst_9 : f32 to vector<32x1xf32>
    %11 = arith.divf %9, %10 : vector<32x1xf32>
    %12 = vector.broadcast %11 : vector<32x1xf32> to vector<32x128xf32>
    %13 = arith.subf %1, %12 : vector<32x128xf32>
    %14 = arith.mulf %13, %13 : vector<32x128xf32>
    %cst_10 = arith.constant dense<0.000000e+00> : vector<32xf32>
    %15 = vector.multi_reduction <add>, %14, %cst_10 [1] : vector<32x128xf32> to vector<32xf32>
    %16 = vector.shape_cast %15 : vector<32xf32> to vector<32x1xf32>
    %cst_11 = arith.constant 1.280000e+02 : f32
    %17 = vector.broadcast %cst_11 : f32 to vector<32x1xf32>
    %18 = arith.divf %16, %17 : vector<32x1xf32>
    %cst_12 = arith.constant 9.99999974E-6 : f32
    %19 = vector.broadcast %cst_12 : f32 to vector<32x1xf32>
    %20 = arith.addf %18, %19 : vector<32x1xf32>
    %21 = math.rsqrt %20 : vector<32x1xf32>
    %22 = vector.broadcast %21 : vector<32x1xf32> to vector<32x128xf32>
    %23 = arith.mulf %13, %22 : vector<32x128xf32>
    %24 = vector.broadcast %2 : vector<1x128xf32> to vector<32x128xf32>
    %25 = arith.mulf %23, %24 : vector<32x128xf32>
    %26 = vector.broadcast %3 : vector<1x128xf32> to vector<32x128xf32>
    %27 = arith.addf %25, %26 : vector<32x128xf32>
    %28 = arith.truncf %27 : vector<32x128xf32> to vector<32x128xbf16>
    %c0_13 = arith.constant 0 : index
    %c0_14 = arith.constant 0 : index
    %29 = vector.load %arg2[%c0_13, %c0_14] : memref<128x384xbf16, #tpu.memory_space<vmem>>, vector<128x384xbf16>
    %cst_15 = arith.constant dense<0.000000e+00> : vector<32x384xf32>
    %30 = tpu.matmul %28, %29, %cst_15 {dimension_numbers = #tpu.dot_dimension_numbers<[1], [0], [0], [1], [0, 0, 1, 1], [], []>} : vector<32x128xbf16>, vector<128x384xbf16>, vector<32x384xf32> -> vector<32x384xf32>
    %31 = vector.extract_strided_slice %30 {offsets = [0, 0], sizes = [32, 128], strides = [1, 1]} : vector<32x384xf32> to vector<32x128xf32>
    %32 = vector.extract_strided_slice %30 {offsets = [0, 128], sizes = [32, 128], strides = [1, 1]} : vector<32x384xf32> to vector<32x128xf32>
    %33 = vector.extract_strided_slice %30 {offsets = [0, 256], sizes = [32, 128], strides = [1, 1]} : vector<32x384xf32> to vector<32x128xf32>
    %34 = vector.shape_cast %31 : vector<32x128xf32> to vector<32x8x16xf32>
    %35 = tpu.transpose %34, [1, 0, 2] : vector<32x8x16xf32> -> vector<8x32x16xf32>
    %36 = arith.truncf %35 : vector<8x32x16xf32> to vector<8x32x16xbf16>
    %37 = vector.shape_cast %33 : vector<32x128xf32> to vector<32x8x16xf32>
    %38 = tpu.transpose %37, [1, 0, 2] : vector<32x8x16xf32> -> vector<8x32x16xf32>
    %39 = arith.truncf %38 : vector<8x32x16xf32> to vector<8x32x16xbf16>
    %40 = vector.shape_cast %32 : vector<32x128xf32> to vector<32x8x16xf32>
    %41 = tpu.transpose %40, [1, 0, 2] : vector<32x8x16xf32> -> vector<8x32x16xf32>
    %42 = tpu.transpose %41, [0, 2, 1] : vector<8x32x16xf32> -> vector<8x16x32xf32>
    %43 = arith.truncf %42 : vector<8x16x32xf32> to vector<8x16x32xbf16>
    "tpu.trace_start"() <{level = 10 : i32, message = "hnd,hdm->hnm"}> : () -> ()
    %cst_16 = arith.constant dense<0.000000e+00> : vector<8x32x32xf32>
    %44 = tpu.matmul %36, %43, %cst_16 {dimension_numbers = #tpu.dot_dimension_numbers<[2], [1], [1], [2], [0, 0, 0, 1, 1, 2], [0], [0]>} : vector<8x32x16xbf16>, vector<8x16x32xbf16>, vector<8x32x32xf32> -> vector<8x32x32xf32>
    "tpu.trace_stop"() : () -> ()
    %cst_17 = arith.constant dense<0xFF800000> : vector<8x32xf32>
    %45 = vector.multi_reduction <maximumf>, %44, %cst_17 [2] : vector<8x32x32xf32> to vector<8x32xf32>
    %46 = vector.shape_cast %45 : vector<8x32xf32> to vector<8x32x1xf32>
    %47 = vector.broadcast %46 : vector<8x32x1xf32> to vector<8x32x32xf32>
    %48 = arith.subf %44, %47 : vector<8x32x32xf32>
    %49 = math.exp %48 : vector<8x32x32xf32>
    %cst_18 = arith.constant dense<0.000000e+00> : vector<8x32xf32>
    %50 = vector.multi_reduction <add>, %49, %cst_18 [2] : vector<8x32x32xf32> to vector<8x32xf32>
    %51 = vector.shape_cast %50 : vector<8x32xf32> to vector<8x32x1xf32>
    %52 = arith.truncf %49 : vector<8x32x32xf32> to vector<8x32x32xbf16>
    "tpu.trace_start"() <{level = 10 : i32, message = "hnm,hmd->hnd"}> : () -> ()
    %cst_19 = arith.constant dense<0.000000e+00> : vector<8x32x16xf32>
    %53 = tpu.matmul %52, %39, %cst_19 {dimension_numbers = #tpu.dot_dimension_numbers<[2], [1], [1], [2], [0, 0, 0, 1, 1, 2], [0], [0]>} : vector<8x32x32xbf16>, vector<8x32x16xbf16>, vector<8x32x16xf32> -> vector<8x32x16xf32>
    "tpu.trace_stop"() : () -> ()
    %54 = tpu.reciprocal %51 {approx = true} : vector<8x32x1xf32> -> vector<8x32x1xf32>
    %55 = vector.broadcast %54 : vector<8x32x1xf32> to vector<8x32x16xf32>
    %56 = arith.mulf %53, %55 : vector<8x32x16xf32>
    %57 = tpu.transpose %56, [1, 0, 2] : vector<8x32x16xf32> -> vector<32x8x16xf32>
    %58 = vector.shape_cast %57 : vector<32x8x16xf32> to vector<32x128xf32>
    %59 = arith.truncf %58 : vector<32x128xf32> to vector<32x128xbf16>
    %c0_20 = arith.constant 0 : index
    %c0_21 = arith.constant 0 : index
    %60 = vector.load %arg3[%c0_20, %c0_21] : memref<128x128xbf16, #tpu.memory_space<vmem>>, vector<128x128xbf16>
    %cst_22 = arith.constant dense<0.000000e+00> : vector<32x128xf32>
    %61 = tpu.matmul %59, %60, %cst_22 {dimension_numbers = #tpu.dot_dimension_numbers<[1], [0], [0], [1], [0, 0, 1, 1], [], []>} : vector<32x128xbf16>, vector<128x128xbf16>, vector<32x128xf32> -> vector<32x128xf32>
    %62 = vector.broadcast %6 : vector<1x128xf32> to vector<32x128xf32>
    %63 = arith.addf %61, %62 : vector<32x128xf32>
    %64 = arith.addf %1, %63 : vector<32x128xf32>
    %cst_23 = arith.constant dense<0.000000e+00> : vector<32xf32>
    %65 = vector.multi_reduction <add>, %64, %cst_23 [1] : vector<32x128xf32> to vector<32xf32>
    %66 = vector.shape_cast %65 : vector<32xf32> to vector<32x1xf32>
    %cst_24 = arith.constant 1.280000e+02 : f32
    %67 = vector.broadcast %cst_24 : f32 to vector<32x1xf32>
    %68 = arith.divf %66, %67 : vector<32x1xf32>
    %69 = vector.broadcast %68 : vector<32x1xf32> to vector<32x128xf32>
    %70 = arith.subf %64, %69 : vector<32x128xf32>
    %71 = arith.mulf %70, %70 : vector<32x128xf32>
    %cst_25 = arith.constant dense<0.000000e+00> : vector<32xf32>
    %72 = vector.multi_reduction <add>, %71, %cst_25 [1] : vector<32x128xf32> to vector<32xf32>
    %73 = vector.shape_cast %72 : vector<32xf32> to vector<32x1xf32>
    %cst_26 = arith.constant 1.280000e+02 : f32
    %74 = vector.broadcast %cst_26 : f32 to vector<32x1xf32>
    %75 = arith.divf %73, %74 : vector<32x1xf32>
    %cst_27 = arith.constant 9.99999974E-6 : f32
    %76 = vector.broadcast %cst_27 : f32 to vector<32x1xf32>
    %77 = arith.addf %75, %76 : vector<32x1xf32>
    %78 = math.rsqrt %77 : vector<32x1xf32>
    %79 = vector.broadcast %78 : vector<32x1xf32> to vector<32x128xf32>
    %80 = arith.mulf %70, %79 : vector<32x128xf32>
    %81 = vector.broadcast %4 : vector<1x128xf32> to vector<32x128xf32>
    %82 = arith.mulf %80, %81 : vector<32x128xf32>
    %83 = vector.broadcast %5 : vector<1x128xf32> to vector<32x128xf32>
    %84 = arith.addf %82, %83 : vector<32x128xf32>
    %85 = arith.truncf %84 : vector<32x128xf32> to vector<32x128xbf16>
    %c0_28 = arith.constant 0 : index
    %c0_29 = arith.constant 0 : index
    %86 = vector.load %arg4[%c0_28, %c0_29] : memref<128x512xbf16, #tpu.memory_space<vmem>>, vector<128x512xbf16>
    %cst_30 = arith.constant dense<0.000000e+00> : vector<32x512xf32>
    %87 = tpu.matmul %85, %86, %cst_30 {dimension_numbers = #tpu.dot_dimension_numbers<[1], [0], [0], [1], [0, 0, 1, 1], [], []>} : vector<32x128xbf16>, vector<128x512xbf16>, vector<32x512xf32> -> vector<32x512xf32>
    %c0_31 = arith.constant 0 : index
    %c0_32 = arith.constant 0 : index
    %88 = vector.load %arg7[%c0_31, %c0_32] : memref<1x512xf32, #tpu.memory_space<vmem>>, vector<1x512xf32>
    %89 = vector.broadcast %88 : vector<1x512xf32> to vector<32x512xf32>
    %90 = arith.addf %87, %89 : vector<32x512xf32>
    %cst_33 = arith.constant 5.000000e-01 : f32
    %91 = vector.broadcast %cst_33 : f32 to vector<32x512xf32>
    %92 = arith.mulf %91, %90 : vector<32x512xf32>
    %cst_34 = arith.constant 4.471500e-02 : f32
    %93 = vector.broadcast %cst_34 : f32 to vector<32x512xf32>
    %94 = arith.mulf %93, %90 : vector<32x512xf32>
    %95 = arith.mulf %94, %90 : vector<32x512xf32>
    %96 = arith.mulf %95, %90 : vector<32x512xf32>
    %97 = arith.addf %90, %96 : vector<32x512xf32>
    %cst_35 = arith.constant 0.797884583 : f32
    %98 = vector.broadcast %cst_35 : f32 to vector<32x512xf32>
    %99 = arith.mulf %98, %97 : vector<32x512xf32>
    %100 = math.tanh %99 : vector<32x512xf32>
    %cst_36 = arith.constant 1.000000e+00 : f32
    %101 = vector.broadcast %cst_36 : f32 to vector<32x512xf32>
    %102 = arith.addf %101, %100 : vector<32x512xf32>
    %103 = arith.mulf %92, %102 : vector<32x512xf32>
    %104 = arith.truncf %103 : vector<32x512xf32> to vector<32x512xbf16>
    %c0_37 = arith.constant 0 : index
    %c0_38 = arith.constant 0 : index
    %105 = vector.load %arg5[%c0_37, %c0_38] : memref<512x128xbf16, #tpu.memory_space<vmem>>, vector<512x128xbf16>
    %cst_39 = arith.constant dense<0.000000e+00> : vector<32x128xf32>
    %106 = tpu.matmul %104, %105, %cst_39 {dimension_numbers = #tpu.dot_dimension_numbers<[1], [0], [0], [1], [0, 0, 1, 1], [], []>} : vector<32x512xbf16>, vector<512x128xbf16>, vector<32x128xf32> -> vector<32x128xf32>
    %107 = vector.broadcast %7 : vector<1x128xf32> to vector<32x128xf32>
    %108 = arith.addf %106, %107 : vector<32x128xf32>
    %109 = arith.addf %64, %108 : vector<32x128xf32>
    %c0_40 = arith.constant 0 : index
    %c0_41 = arith.constant 0 : index
    %c0_42 = arith.constant 0 : index
    %110 = vector.load %arg8[%c0_40, %c0_41, %c0_42] : memref<1x32x128xf32, #tpu.memory_space<vmem>>, vector<1x32x128xf32>
    %111 = vector.shape_cast %110 : vector<1x32x128xf32> to vector<32x128xf32>
    %112 = vector.shape_cast %109 : vector<32x128xf32> to vector<1x32x128xf32>
    tpu.vector_store %arg8[%c0_40, %c0_41, %c0_42], %112 {strides = array<i32>} : memref<1x32x128xf32, #tpu.memory_space<vmem>>, vector<1x32x128xf32>,
    return
  }
  func.func @transform_0(%arg0: i32) -> (i32, i32, i32) {
    %c0_i32 = arith.constant 0 : i32
    %c0_i32_0 = arith.constant 0 : i32
    %c0_i32_1 = arith.constant 0 : i32
    return %arg0, %c0_i32, %c0_i32_0 : i32, i32, i32
  }
  func.func @transform_1(%arg0: i32) -> (i32, i32) {
    %c0_i32 = arith.constant 0 : i32
    %c0_i32_0 = arith.constant 0 : i32
    %c0_i32_1 = arith.constant 0 : i32
    return %c0_i32, %c0_i32_0 : i32, i32
  }
  func.func @transform_2(%arg0: i32) -> (i32, i32) {
    %c0_i32 = arith.constant 0 : i32
    %c0_i32_0 = arith.constant 0 : i32
    %c0_i32_1 = arith.constant 0 : i32
    return %c0_i32, %c0_i32_0 : i32, i32
  }
  func.func @transform_3(%arg0: i32) -> (i32, i32) {
    %c0_i32 = arith.constant 0 : i32
    %c0_i32_0 = arith.constant 0 : i32
    %c0_i32_1 = arith.constant 0 : i32
    return %c0_i32, %c0_i32_0 : i32, i32
  }
  func.func @transform_4(%arg0: i32) -> (i32, i32) {
    %c0_i32 = arith.constant 0 : i32
    %c0_i32_0 = arith.constant 0 : i32
    %c0_i32_1 = arith.constant 0 : i32
    return %c0_i32, %c0_i32_0 : i32, i32
  }
  func.func @transform_5(%arg0: i32) -> (i32, i32) {
    %c0_i32 = arith.constant 0 : i32
    %c0_i32_0 = arith.constant 0 : i32
    %c0_i32_1 = arith.constant 0 : i32
    return %c0_i32, %c0_i32_0 : i32, i32
  }
  func.func @transform_6(%arg0: i32) -> (i32, i32) {
    %c0_i32 = arith.constant 0 : i32
    %c0_i32_0 = arith.constant 0 : i32
    %c0_i32_1 = arith.constant 0 : i32
    return %c0_i32, %c0_i32_0 : i32, i32
  }
  func.func @transform_7(%arg0: i32) -> (i32, i32, i32) {
    %c0_i32 = arith.constant 0 : i32
    %c0_i32_0 = arith.constant 0 : i32
    %c0_i32_1 = arith.constant 0 : i32
    return %arg0, %c0_i32, %c0_i32_0 : i32, i32, i32
  }
}

</mosaic_0001>

<bundles_post_ra>
// kernel: tpu_custom_call.1
= control target key start
LH: loop header
LB: loop body
LE: loop exit
PB: predicated region body
PF: predicated region fallthrough
CT: control target
= control target key end

     0   :  { %s12061_s0 = inlined_call_operand.hbm [shape: f32[2,32,128], index: 0, kind: input, shape index: {}]   ;;  %s12062_s1 = inlined_call_operand.hbm [shape: bf16[128,384], index: 1, kind: input, shape index: {}]   ;;  %s12063_s2 = inlined_call_operand.hbm [shape: bf16[128,128], index: 2, kind: input, shape index: {}]   ;;  %s12064_s3 = inlined_call_operand.hbm [shape: bf16[128,512], index: 3, kind: input, shape index: {}]   ;;  %s12065_s4 = inlined_call_operand.hbm [shape: bf16[512,128], index: 4, kind: input, shape index: {}]   ;;  %s12066_s5 = inlined_call_operand.vmem [shape: f32[6,128], index: 5, kind: input, shape index: {}]   ;;  %s12067_s6 = inlined_call_operand.vmem [shape: f32[1,512], index: 6, kind: input, shape index: {}]   ;;  %s12068_s7 = inlined_call_operand.hbm [shape: f32[2,32,128], index: 7, kind: output, shape index: {}]  }
   0x1   :  { %12084 = sst [smem:[#allocation23_spill]] %s12062_s1 }
   0x2   :  { %12 = vsyncpa [#allocation3], 0 }
   0x3   :  { %14 = vsyncpa [#allocation3 + $0x1], 0 }
   0x4   :  { %15 = vsyncpa [#allocation6], 0 }
   0x5   :  { %16 = vsyncpa [#allocation9], 0 }
   0x6   :  { %17 = vsyncpa [#allocation4], 0 }
   0x7   :  { %19 = vsyncpa [#allocation4 + $0x1], 0  ;;  %s9550_s24 = smov 0   ;;  %s9552_s25 = smov 0  }
   0x8   :  { %s9554_s26 = smov 0   ;;  %s9556_s27 = smov 0  }
   0x9 LB: > { %s9571_s28 = sadd.s32 4294967295, %s9482_s27   ;;  %s8146_s29 = sadd.s32 4294967294, %s9482_s27   ;;  %s9482_s27 = sphi %s9556_s27, %s12136_s27   ;;  %s9478_s26 = sphi %s9554_s26, %s12135_s26   ;;  %s9474_s25 = sphi %s9552_s25, %s12134_s25   ;;  %s9470_s24 = sphi %s9550_s24, %s12133_s24  }
   0xa   : > { %p45_p0 = scmp.ne.s32.totalorder %s9474_s25, %s9470_s24  ;;  %p12069_p1 = scmp.eq.s32.totalorder %s9571_s28, 0 }
   0xb   : > { %p201_p3 = scmp.eq.s32.totalorder %s8146_s29, 1  ;;  %p8147_p5 = scmp.ge.s32.totalorder %s9482_s27, 1 }
   0xc   : > { %p9580_p4 = por %p12069_p1, %p45_p0  ;;  %p208_p7 = scmp.lt.s32.totalorder %s9482_s27, 3 }
   0xd   : > { %p9585_p6 = por %p201_p3, %p45_p0  ;;  %s9484_s10 = smov [#allocation5]  }
   0xe   : > { %s12085_s30 = scalar_select %p9580_p4, 1, 0 }
   0xf   : > { %s12086_s8 = scalar_select %p9585_p6, 1, 0 }
  0x10   : > { %p9590_p8 = pnand %p8147_p5, %p208_p7  ;;  %s220_s11 = sshll.u32 %s9484_s10, 4  ;;  %s9594_s11 = int_to_ptr.vmem [resolvable:$true] %s220_s11 }
  0x11   : > { %s9485_s13 = smov [#allocation8]   ;;  %s12089_s1 = sld [smem:[#allocation23_spill]] }
  0x12   : > { %s12087_s9 = scalar_select %p9590_p8, 1, 0 }
  0x13   : > { %p8736_p9 = pneg %p9590_p8  ;;  %s246_s14 = sshll.u32 %s9485_s13, 4  ;;  %s9605_s14 = int_to_ptr.vmem [resolvable:$true] %s246_s14 }
  0x15   : > { %p9601_p11 = pnand %p8736_p9, %p12069_p1 }
  0x17   : > { %s9266_s17 = scalar_lea.hbm %s12089_s1, 3072  ;;  %p9615_p13 = pneg %p9601_p11 }
  0x18   : > { %p9267_p12 = scmp.ne.s32.totalorder %s12089_s1, %s9266_s17  ;;  %p9273_p5 = scmp.lt.u32.totalorder %s9266_s17, %s12089_s1 }
  0x1a   : > { %p9269_p0 = pnand %p9615_p13, %p9267_p12 }
  0x1c   : > { %p9270_p3 = pneg %p9269_p0 }
  0x1e   : > { %p9275_p7 = pnand %p9273_p5, %p9270_p3 }
  0x20   : > { %9278 = shalt.err (!%p9275_p7)
}
  0x21   : > { %s9279_s23 = scalar_lea.vmem %s9594_s11, 3072  ;;  %p9287_p2 = scmp.lt.s32.totalorder %s9594_s11, %s9594_s11 }
  0x22   : > { %p9280_p9 = scmp.ne.s32.totalorder %s9594_s11, %s9279_s23  ;;  %p9288_p6 = scmp.lt.s32.totalorder %s9279_s23, %s9279_s23 }
  0x24   : > { %p9282_p10 = pnand %p9280_p9, %p9615_p13  ;;  %p9289_p12 = por %p9288_p6, %p9287_p2 }
  0x26   : > { %p9283_p1 = pneg %p9282_p10 }
  0x28   : > { %p9290_p0 = pnand %p9289_p12, %p9283_p1 }
  0x2a   : > { %9293 = shalt.err (!%p9290_p0)
}
  0x2b   : > { %s9486_s29 = smov 192   ;;  %s9487_s10 = smov 12  }
  0x2c   : > { %8739 = dma.hbm_to_vmem [thread:$0]  (!%p9601_p11), %s12089_s1, 3072, %s9594_s11, [#allocation6], %s9486_s29, %s9486_s29, %s9487_s10  }
  0x2d   : > { %s9294_s18 = scalar_lea.hbm %s12064_s3, 4096 }
  0x2e   : > { %p9295_p2 = scmp.ne.s32.totalorder %s12064_s3, %s9294_s18  ;;  %p9301_p10 = scmp.lt.u32.totalorder %s9294_s18, %s12064_s3 }
  0x30   : > { %p9297_p1 = pnand %p9295_p2, %p9615_p13 }
  0x32   : > { %p9298_p6 = pneg %p9297_p1 }
  0x34   : > { %p9303_p3 = pnand %p9301_p10, %p9298_p6 }
  0x36   : > { %9306 = shalt.err (!%p9303_p3)
}
  0x37   : > { %s9307_s11 = scalar_lea.vmem %s9605_s14, 4096  ;;  %p9315_p12 = scmp.lt.s32.totalorder %s9605_s14, %s9605_s14 }
  0x38   : > { %p9308_p5 = scmp.ne.s32.totalorder %s9605_s14, %s9307_s11  ;;  %p9316_p0 = scmp.lt.s32.totalorder %s9307_s11, %s9307_s11 }
  0x3a   : > { %p9310_p7 = pnand %p9308_p5, %p9615_p13  ;;  %p9317_p2 = por %p9316_p0, %p9315_p12 }
  0x3c   : > { %p9311_p9 = pneg %p9310_p7 }
  0x3e   : > { %p9318_p1 = pnand %p9317_p2, %p9311_p9 }
  0x40   : > { %9321 = shalt.err (!%p9318_p1)
}
  0x41   : > { %s9488_s29 = smov 256   ;;  %s9489_s10 = smov 16  }
  0x42   : > { %8745 = dma.hbm_to_vmem [thread:$0]  (!%p9601_p11), %s12064_s3, 4096, %s9605_s14, [#allocation9], %s9488_s29, %s9488_s29, %s9489_s10  }
  0x43   : > { %s9490_s16 = smov [#allocation7]   ;;  %s9322_s21 = scalar_lea.hbm %s12063_s2, 1024 }
  0x44   : > { %s233_s17 = sshll.u32 %s9490_s16, 4  ;;  %p9323_p6 = scmp.ne.s32.totalorder %s12063_s2, %s9322_s21  ;;  %s234_s17 = int_to_ptr.vmem [resolvable:$true] %s233_s17 }
  0x45   : > { %p9329_p5 = scmp.lt.u32.totalorder %s9322_s21, %s12063_s2 }
  0x46   : > { %p9325_p10 = pnand %p9323_p6, %p9615_p13 }
  0x48   : > { %p9326_p3 = pneg %p9325_p10 }
  0x4a   : > { %p9331_p7 = pnand %p9329_p5, %p9326_p3 }
  0x4c   : > { %9334 = shalt.err (!%p9331_p7)
}
  0x4d   : > { %s9335_s14 = scalar_lea.vmem %s234_s17, 1024  ;;  %p9343_p2 = scmp.lt.s32.totalorder %s234_s17, %s234_s17 }
  0x4e   : > { %p9336_p9 = scmp.ne.s32.totalorder %s234_s17, %s9335_s14  ;;  %p9344_p1 = scmp.lt.s32.totalorder %s9335_s14, %s9335_s14 }
  0x50   : > { %p9338_p12 = pnand %p9336_p9, %p9615_p13  ;;  %p9345_p4 = por %p9344_p1, %p9343_p2 }
  0x52   : > { %p9339_p0 = pneg %p9338_p12 }
  0x54   : > { %p9346_p8 = pnand %p9345_p4, %p9339_p0 }
  0x56   : > { %9349 = shalt.err (!%p9346_p8)
}
  0x57   : > { %s9491_s29 = smov 64   ;;  %s9492_s10 = smov 4  }
  0x58   : > { %8742 = dma.hbm_to_vmem [thread:$0]  (!%p9601_p11), %s12063_s2, 1024, %s234_s17, [#allocation6], %s9491_s29, %s9491_s29, %s9492_s10  }
  0x59   : > { %s9493_s15 = smov [#allocation10]   ;;  %s9350_s21 = scalar_lea.hbm %s12065_s4, 4096 }
  0x5a   : > { %s259_s16 = sshll.u32 %s9493_s15, 4  ;;  %p9351_p4 = scmp.ne.s32.totalorder %s12065_s4, %s9350_s21  ;;  %s260_s16 = int_to_ptr.vmem [resolvable:$true] %s259_s16 }
  0x5b   : > { %p9357_p10 = scmp.lt.u32.totalorder %s9350_s21, %s12065_s4 }
  0x5c   : > { %p9353_p8 = pnand %p9351_p4, %p9615_p13 }
  0x5e   : > { %p9354_p6 = pneg %p9353_p8 }
  0x60   : > { %p9359_p3 = pnand %p9357_p10, %p9354_p6 }
  0x62   : > { %9362 = shalt.err (!%p9359_p3)
}
  0x63   : > { %s9363_s17 = scalar_lea.vmem %s260_s16, 4096  ;;  %p9371_p12 = scmp.lt.s32.totalorder %s260_s16, %s260_s16 }
  0x64   : > { %p9364_p5 = scmp.ne.s32.totalorder %s260_s16, %s9363_s17  ;;  %p9372_p0 = scmp.lt.s32.totalorder %s9363_s17, %s9363_s17 }
  0x66   : > { %p9366_p7 = pnand %p9364_p5, %p9615_p13  ;;  %p9373_p2 = por %p9372_p0, %p9371_p12 }
  0x68   : > { %p9367_p9 = pneg %p9366_p7 }
  0x6a   : > { %p9374_p1 = pnand %p9373_p2, %p9367_p9 }
  0x6c   : > { %9377 = shalt.err (!%p9374_p1)
}
  0x6d   : > { %8748 = dma.hbm_to_vmem [thread:$0]  (!%p9601_p11), %s12065_s4, 4096, %s260_s16, [#allocation9], %s9491_s29, %s9491_s29, %s9492_s10  }
  0x6e   : > { %s9696_s20 = sadd.s32 1, %s9482_s27   ;;  %s32_s15 = sadd.s32 1, %s9478_s26 }
  0x6f   : > { %s29_s12 = ssub.s32 %s9482_s27, %s9696_s20  ;;  %p39_p13 = scmp.ne.s32.totalorder %s9478_s26, %s9474_s25 }
  0x70   : > { %p30_p4 = scmp.eq.s32.totalorder %s29_s12, 0  ;;  %p40_p8 = scmp.eq.s32.totalorder %s9482_s27, 0 }
  0x71   : > { %p12091_p6 = scmp.eq.s32.totalorder %s9571_s28, 1  ;;  %p8761_p3 = scmp.lt.s32.totalorder %s9482_s27, 2 }
  0x72   : > { %s9712_s19 = scalar_select %p30_p4, %s9478_s26, %s32_s15  }
  0x73   : > { %p9706_p10 = por %p12091_p6, %p39_p13  ;;  %p41_p5 = por %p40_p8, %p39_p13 }
  0x74   : > { %s279_s21 = sand.u32 1, %s9478_s26   ;;  %s8430_s29 = sshll.u32 %s9482_s27, 9 }
  0x75   : > { %s8153_s22 = sshll.u32 %s279_s21, 5  ;;  %s9719_s23 = scalar_lea.hbm %s12061_s0, %s8430_s29 }
  0x76   : > { %s283_s11 = scalar_lea.vmem [#allocation2], %s8153_s22  ;;  %p9723_p11 = pnand %p8761_p3, %p41_p5 }
  0x77   : > { %s290_s14 = sshll.u32 %s283_s11, 4  ;;  %s9727_s1 = scalar_lea.sflag [#allocation3], %s279_s21  ;;  %s9721_s14 = int_to_ptr.vmem [resolvable:$true] %s290_s14 }
  0x78   : > { %s9378_s13 = scalar_lea.hbm %s9719_s23, 512  ;;  %p9380_p9 = pneg %p9723_p11 }
  0x79   : > { %p9379_p7 = scmp.ne.s32.totalorder %s9719_s23, %s9378_s13  ;;  %s9383_s22 = scalar_lea.hbm %s12061_s0, 1024 }
  0x7a   : > { %p9384_p2 = scmp.lt.u32.totalorder %s9719_s23, %s12061_s0  ;;  %p9385_p1 = scmp.lt.u32.totalorder %s9383_s22, %s9378_s13 }
  0x7b   : > { %p9381_p12 = pnand %p9380_p9, %p9379_p7  ;;  %p9387_p4 = scmp.lt.u32.totalorder %s9378_s13, %s9719_s23 }
  0x7c   : > { %p9386_p13 = por %p9385_p1, %p9384_p2 }
  0x7d   : > { %p9382_p0 = pneg %p9381_p12 }
  0x7e   : > { %p9388_p8 = por %p9387_p4, %p9386_p13 }
  0x80   : > { %p9389_p6 = pnand %p9388_p8, %p9382_p0 }
  0x82   : > { %9392 = shalt.err (!%p9389_p6)
}
  0x83   : > { %s9393_s21 = scalar_lea.vmem %s9721_s14, 512  ;;  %s9494_s16 = smov [#allocation2]  }
  0x84   : > { %p9394_p3 = scmp.ne.s32.totalorder %s9721_s14, %s9393_s21  ;;  %s9398_s11 = sshll.u32 %s9494_s16, 4  ;;  %s9399_s11 = int_to_ptr.vmem [resolvable:$false] %s9398_s11 }
  0x85   : > { %s9400_s15 = scalar_lea.vmem %s9399_s11, 1024  ;;  %p9401_p12 = scmp.lt.s32.totalorder %s9721_s14, %s9399_s11 }
  0x86   : > { %p9396_p5 = pnand %p9394_p3, %p9380_p9  ;;  %p9402_p2 = scmp.lt.s32.totalorder %s9400_s15, %s9393_s21 }
  0x88   : > { %p9397_p7 = pneg %p9396_p5  ;;  %p9403_p1 = por %p9402_p2, %p9401_p12 }
  0x8a   : > { %p9404_p13 = pnand %p9403_p1, %p9397_p7 }
  0x8c   : > { %9407 = shalt.err (!%p9404_p13)
}
  0x8d   : > { %s9495_s13 = smov 128   ;;  %s9496_s12 = smov 8  }
  0x8e   : > { %8752 = dma.hbm_to_vmem [thread:$0]  (!%p9723_p11), %s9719_s23, 512, %s9721_s14, %s9727_s1, %s9495_s13, %s9495_s13, %s9496_s12  }
  0x8f   : > { %p12094_p9 = scmp.ne.s32.totalorder %s12087_s9, 0 }
  0x91   : > { %302 = sbr.rel (%p12094_p9) target bundleno = 2922 (0xb6a), region = 48 }
  0x98   : > { %s9758_s22 = sand.u32 1, %s9474_s25   ;;  %p12095_p0 = scmp.ne.s32.totalorder %s12085_s30, 0 }
  0x99   : > { %s8157_s29 = sshll.u32 %s9758_s22, 5  ;;  %s305_s10 = scalar_lea.sflag [#allocation3], %s9758_s22 }
  0x9a   : > { %s9764_s21 = scalar_lea.vmem [#allocation2], %s8157_s29 }
  0x9b   : > { %9453 = dma.done.wait (%p12095_p0), %s305_s10, 512  }
  0x9c   : > { %9455 = vsyncadd (%p12095_p0), %s305_s10, 4294966784  ;;  %p12096_p11 = scmp.eq.s32.totalorder %s9571_s28, 0 }
  0x9e   : > { %9457 = dma.done.wait (%p12096_p11), [#allocation6], 4096   ;;  %p12097_p4 = pmov %p12096_p11 }
  0xa0   : > { %9459 = vsyncadd (%p12097_p4), [#allocation6], 4294963200  ;;  %p12098_p8 = pmov %p12097_p4 }
  0xa1   : > { %p12099_p6 = pmov %p12097_p4 }
  0xa2   : > { %9461 = dma.done.wait (%p12098_p8), [#allocation9], 8192  }
  0xa3   : > { %9463 = vsyncadd (%p12099_p6), [#allocation9], 4294959104  ;;  %v356_v0 = vld [vmem:[%s9764_s21] sm:$0xff]  ;;  %v358_v1 = vld [vmem:[%s9764_s21 + $0x10] sm:$0xff]  ;;  %v12072_v39 = vmov 0   ;;  %s9498_s17 = smov 112  }
  0xa4   : > { %v357_v2 = vld [vmem:[%s9764_s21 + $0x8] sm:$0xff]  ;;  %366 = vadd.xlane.f32.xlu0 %v356_v0  ;;  %370 = vadd.xlane.f32.xlu1 %v358_v1  ;;  %v359_v3 = vld [vmem:[%s9764_s21 + $0x18] sm:$0xff]  ;;  %v8966_v4 = vld [vmem:[#allocation5 + $0x4] ss:$12 sps:$4 sm:$0xff]   ;;  %s9499_s1 = smov 96   ;;  %s9500_s16 = smov 80  }
  0xa5   : > { %v8968_v5 = vld [vmem:[#allocation5] ss:$12 sps:$4 sm:$0xff]   ;;  %v8969_v6 = vld [vmem:[#allocation5 + $0x1c] ss:$12 sps:$4 sm:$0xff]   ;;  %589 = vmatprep.subr.bf16.mxu0 %v8966_v4  ;;  %v8972_v24 = vld [vmem:[#allocation5 + $0x18] ss:$12 sps:$4 sm:$0xff]   ;;  %621 = vmatprep.mubr.bf16.mxu0 %v12072_v39 }
  0xa6   : > { %v8971_v7 = vld [vmem:[#allocation5 + $0x8] ss:$12 sps:$4 sm:$0xff]   ;;  %590 = vmatpush1.bf16.msra.mxu0 %v8968_v5  ;;  %v8975_v26 = vld [vmem:[#allocation5 + $0x20] ss:$12 sps:$4 sm:$0xff]   ;;  %v8976_v27 = vld [vmem:[#allocation5 + $0x30] ss:$12 sps:$4 sm:$0xff]  }
  0xa7   : > { %8564 = vmatprep.subr.bf16.mxu1 %v8971_v7  ;;  %591 = vmatprep.subr.bf16.mxu0 %v8969_v6  ;;  %v8973_v25 = vld [vmem:[#allocation5 + $0x34] ss:$12 sps:$4 sm:$0xff]   ;;  %v8977_v28 = vld [vmem:[#allocation5 + $0x4c] ss:$12 sps:$4 sm:$0xff]   ;;  %v8981_v31 = vld [vmem:[#allocation5 + $0x64] ss:$12 sps:$4 sm:$0xff]  }
  0xa8   : > { %368 = vadd.xlane.f32.xlu0 %v357_v2  ;;  %372 = vadd.xlane.f32.xlu1 %v359_v3  ;;  %v8979_v29 = vld [vmem:[#allocation5 + $0x38] ss:$12 sps:$4 sm:$0xff]   ;;  %v8980_v30 = vld [vmem:[#allocation5 + $0x48] ss:$12 sps:$4 sm:$0xff]   ;;  %v8983_v32 = vld [vmem:[#allocation5 + $0x50] ss:$12 sps:$4 sm:$0xff]  }
  0xa9   : > { %8565 = vmatpush3.bf16.msra.mxu1 %v8971_v7  ;;  %v8984_v33 = vld [vmem:[#allocation5 + $0x60] ss:$12 sps:$4 sm:$0xff]   ;;  %v8985_v34 = vld [vmem:[#allocation5 + $0x7c] ss:$12 sps:$4 sm:$0xff]   ;;  %v8988_v36 = vld [vmem:[#allocation5 + $0x78] ss:$12 sps:$4 sm:$0xff]  }
  0xaa   : > { %592 = vmatpush1.bf16.msra.mxu0 %v8972_v24  ;;  %8566 = vmatprep.subr.bf16.mxu1 %v8975_v26  ;;  %v8987_v35 = vld [vmem:[#allocation5 + $0x68] ss:$12 sps:$4 sm:$0xff]   ;;  %v8991_v38 = vld [vmem:[#allocation5 + $0x80] ss:$12 sps:$4 sm:$0xff]   ;;  %v8992_v40 = vld [vmem:[#allocation5 + $0x90] ss:$12 sps:$4 sm:$0xff]  }
  0xab   : > { %593 = vmatprep.subr.bf16.mxu0 %v8973_v25  ;;  %v8989_v37 = vld [vmem:[#allocation5 + $0x94] ss:$12 sps:$4 sm:$0xff]   ;;  %v8993_v41 = vld [vmem:[#allocation5 + $0xac] ss:$12 sps:$4 sm:$0xff]   ;;  %v8997_v44 = vld [vmem:[#allocation5 + $0xb0] ss:$12 sps:$4 sm:$0xff]  }
  0xac   : > { %v8995_v42 = vld [vmem:[#allocation5 + $0x98] ss:$12 sps:$4 sm:$0xff]   ;;  %v8996_v43 = vld [vmem:[#allocation5 + $0xa8] ss:$12 sps:$4 sm:$0xff]   ;;  %v8163_v59 = vld [vmem:[%s12066_s5] ss:$0 sm:$0xff] }
  0xad   : > { %8567 = vmatpush3.bf16.msra.mxu1 %v8975_v26  ;;  %s9501_s11 = smov 48   ;;  %s9502_s15 = smov 64   ;;  %vm4515_vm0 = vcmask 130048   ;;  %vm4956_vm1 = vcmask 261120   ;;  %vm6973_vm2 = vcmask 392192   ;;  %vm6978_vm3 = vcmask 523264  }
  0xae   : > { %594 = vmatpush1.bf16.msra.mxu0 %v8976_v27  ;;  %8568 = vmatprep.subr.bf16.mxu1 %v8979_v29  ;;  %s9503_s13 = smov 16   ;;  %s9504_s12 = smov 32   ;;  %vm6983_vm4 = vcmask 654336   ;;  %vm6988_vm5 = vcmask 785408   ;;  %vm6993_vm6 = vcmask 916480  }
  0xaf   : > { %595 = vmatprep.subr.bf16.mxu0 %v8977_v28 }
  0xb1   : > { %8569 = vmatpush3.bf16.msra.mxu1 %v8979_v29  ;;  %v9505_v29 = vmov 1983009808  }
  0xb2   : > { %596 = vmatpush1.bf16.msra.mxu0 %v8980_v30  ;;  %8570 = vmatprep.subr.bf16.mxu1 %v8983_v32  ;;  %v782_v30 = vunpack.c.l.s4 %v9505_v29 }
  0xb3   : > { %597 = vmatprep.subr.bf16.mxu0 %v8981_v31  ;;  %v784_v31 = vlaneseq }
  0xb5   : > { %8571 = vmatpush3.bf16.msra.mxu1 %v8983_v32 }
  0xb6   : > { %598 = vmatpush1.bf16.msra.mxu0 %v8984_v33  ;;  %8572 = vmatprep.subr.bf16.mxu1 %v8987_v35 }
  0xb7   : > { %599 = vmatprep.subr.bf16.mxu0 %v8985_v34  ;;  %v783_v34 = vunpack.c.0.s8 %v782_v30 }
  0xb9   : > { %8573 = vmatpush3.bf16.msra.mxu1 %v8987_v35  ;;  %v9948_v35 = vshrl.u32 %v784_v31, 7 }
  0xba   : > { %600 = vmatpush1.bf16.msra.mxu0 %v8988_v36  ;;  %8574 = vmatprep.subr.bf16.mxu1 %v8991_v38 }
  0xbb   : > { %601 = vmatprep.subr.bf16.mxu0 %v8989_v37  ;;  %12100 = vst [vmem:[#allocation16_spill] sm:$0xff] %v9948_v35 }
  0xbd   : > { %8575 = vmatpush3.bf16.msra.mxu1 %v8991_v38  ;;  %v9506_v38 = vmov 1934713408  }
  0xbe   : > { %602 = vmatpush1.bf16.msra.mxu0 %v8992_v40  ;;  %8576 = vmatprep.subr.bf16.mxu1 %v8995_v42  ;;  %v846_v40 = vunpack.c.l.s4 %v9506_v38 }
  0xbf   : > { %603 = vmatprep.subr.bf16.mxu0 %v8993_v41 }
  0xc1   : > { %8577 = vmatpush3.bf16.msra.mxu1 %v8995_v42  ;;  %v9955_v42 = vsub.s32 %v783_v34, %v9948_v35 }
  0xc2   : > { %604 = vmatpush1.bf16.msra.mxu0 %v8996_v43  ;;  %8578 = vmatprep.subr.bf16.mxu1 %v8997_v44 }
  0xc5   : > { %8579 = vmatpush3.bf16.msra.mxu1 %v8997_v44 }
 0x131   : > { %v367_v8 = vpop.xlane.xlu0 %366  ;;  %v371_v9 = vpop.xlane.xlu1 %370 }
 0x132   : > { %v375_v10 = vmul.f32 0.0078125, %v367_v8  ;;  %v377_v11 = vmul.f32 0.0078125, %v371_v9 }
 0x134   : > { %v9782_v12 = vsub.f32 %v356_v0, %v375_v10  ;;  %v9784_v13 = vsub.f32 %v358_v1, %v377_v11  ;;  %v8164_v0 = vld [vmem:[%s12066_s5 + $0x1] ss:$0 sm:$0xff] }
 0x135   : > { %v369_v14 = vpop.xlane.xlu0 %368  ;;  %v373_v15 = vpop.xlane.xlu1 %372 }
 0x136   : > { %v376_v16 = vmul.f32 0.0078125, %v369_v14  ;;  %v383_v17 = vmul.f32 %v9782_v12, %v9782_v12  ;;  %v378_v18 = vmul.f32 0.0078125, %v373_v15  ;;  %v385_v19 = vmul.f32 %v9784_v13, %v9784_v13 }
 0x138   : > { %387 = vadd.xlane.f32.xlu0 %v383_v17  ;;  %v9790_v20 = vsub.f32 %v357_v2, %v376_v16  ;;  %v9792_v21 = vsub.f32 %v359_v3, %v378_v18 }
 0x13a   : > { %v384_v22 = vmul.f32 %v9790_v20, %v9790_v20  ;;  %v386_v23 = vmul.f32 %v9792_v21, %v9792_v21 }
 0x13c   : > { %391 = vadd.xlane.f32.xlu0 %v385_v19  ;;  %389 = vadd.xlane.f32.xlu1 %v384_v22 }
 0x140   : > { %393 = vadd.xlane.f32.xlu1 %v386_v23 }
 0x1c5   : > { %v388_v45 = vpop.xlane.xlu0 %387 }
 0x1c6   : > { %v395_v46 = vmul.f32 0.0078125, %v388_v45 }
 0x1c8   : > { %v399_v47 = vadd.f32 1e-05, %v395_v46 }
 0x1c9   : > { %v390_v48 = vpop.xlane.xlu1 %389  ;;  %v392_v49 = vpop.xlane.xlu0 %391 }
 0x1ca   : > { %9086 = vrsqrt.f32 %v399_v47  ;;  %v396_v50 = vmul.f32 0.0078125, %v390_v48  ;;  %v397_v51 = vmul.f32 0.0078125, %v392_v49 }
 0x1cc   : > { %v400_v52 = vadd.f32 1e-05, %v396_v50  ;;  %v401_v53 = vadd.f32 1e-05, %v397_v51  ;;  %v847_v50 = vunpack.c.0.s8 %v846_v40 }
 0x1cd   : > { %v394_v54 = vpop.xlane.xlu1 %393 }
 0x1ce   : > { %9088 = vrsqrt.f32 %v400_v52  ;;  %v398_v55 = vmul.f32 0.0078125, %v394_v54 }
 0x1cf   : > { %9090 = vrsqrt.f32 %v401_v53 }
 0x1d0   : > { %v402_v56 = vadd.f32 1e-05, %v398_v55 }
 0x1d2   : > { %9092 = vrsqrt.f32 %v402_v56 }
 0x1d4   : > { %v9087_v57 = vpop.eup %9086 }
 0x1d5   : > { %v407_v58 = vmul.f32 %v9087_v57, %v9782_v12 }
 0x1d7   : > { %v415_v63 = vmul.f32 %v8163_v59, %v407_v58 }
 0x1d8   : > { %v9089_v60 = vpop.eup %9088 }
 0x1d9   : > { %v9091_v61 = vpop.eup %9090  ;;  %v408_v62 = vmul.f32 %v9089_v60, %v9790_v20  ;;  %v423_v4 = vadd.f32 %v8164_v0, %v415_v63 }
 0x1da   : > { %v409_v1 = vmul.f32 %v9091_v61, %v9784_v13 }
 0x1db   : > { %v416_v2 = vmul.f32 %v8163_v59, %v408_v62 }
 0x1dc   : > { %v9093_v3 = vpop.eup %9092  ;;  %v417_v7 = vmul.f32 %v8163_v59, %v409_v1  ;;  %v9970_v1 = vsub.s32 %v847_v50, %v9948_v35 }
 0x1dd   : > { %v424_v5 = vadd.f32 %v8164_v0, %v416_v2  ;;  %v410_v6 = vmul.f32 %v9093_v3, %v9792_v21 }
 0x1de   : > { %v425_v10 = vadd.f32 %v8164_v0, %v417_v7 }
 0x1df   : > { %v427_v8 = vpack.c.bf16 %v424_v5, %v423_v4  ;;  %v418_v9 = vmul.f32 %v8163_v59, %v410_v6 }
 0x1e1   : > { %622 = vmatmul.mubr.bf16.vlgmr.msra.gmra.mrb[0].mxu0 %v427_v8  ;;  %8580 = vmatprep.mubr.bf16.mxu1 %v427_v8  ;;  %v426_v11 = vadd.f32 %v8164_v0, %v418_v9 }
 0x1e2   : > { %631 = vmatprep.mubr.bf16.mxu0 %v12072_v39 }
 0x1e3   : > { %v428_v12 = vpack.c.bf16 %v426_v11, %v425_v10 }
 0x1e5   : > { %8581 = vmatmul.mubr.bf16.vlgmr.msra.gmra.mrb[0].mxu1 %v428_v12 }
 0x1e9   : > { %632 = vmatmul.mubr.bf16.gmra.mrb[4].mxu0 %v428_v12 }
 0x2b4   : > { %v9810_v14 = vpop.f32.mrb[0].mxu0 }
 0x2b5   : > { %695 = vrot.lane.b32.xlu0 %v9810_v14, %s9498_s17  ;;  %v9814_v13 = vpop.f32.mrb[1].mxu0 }
 0x2b6   : > { %3091 = vrot.lane.b32.xlu1 %v9814_v13, %s9499_s1  ;;  %v9818_v15 = vpop.f32.mrb[2].mxu0 }
 0x2b7   : > { %v9820_v16 = vpop.f32.mrb[3].mxu0 }
 0x2b8   : > { %v9822_v17 = vpop.f32.mrb[0].mxu1 }
 0x2b9   : > { %707 = vrot.lane.b32.xlu0 %v9810_v14, %s9499_s1  ;;  %v9826_v18 = vpop.f32.mrb[1].mxu1 }
 0x2ba   : > { %3103 = vrot.lane.b32.xlu1 %v9814_v13, %s9500_s16  ;;  %v9830_v19 = vpop.f32.mrb[2].mxu1 }
 0x2bb   : > { %v9832_v20 = vpop.f32.mrb[3].mxu1 }
 0x2bc   : > { %v9834_v21 = vpop.f32.mrb[4].mxu0 }
 0x2bd   : > { %719 = vrot.lane.b32.xlu0 %v9810_v14, %s9500_s16  ;;  %v9838_v22 = vpop.f32.mrb[5].mxu0 }
 0x2be   : > { %3127 = vrot.lane.b32.xlu1 %v9814_v13, %s9501_s11  ;;  %v9842_v23 = vpop.f32.mrb[6].mxu0 }
 0x2bf   : > { %v9844_v24 = vpop.f32.mrb[7].mxu0 }
 0x2c1   : > { %731 = vrot.lane.b32.xlu0 %v9810_v14, %s9502_s15 }
 0x2c2   : > { %3151 = vrot.lane.b32.xlu1 %v9814_v13, %s9503_s13 }
 0x2c5   : > { %3079 = vrot.lane.b32.xlu0 %v9814_v13, %s9498_s17 }
 0x2c6   : > { %697 = vrot.lane.b32.xlu1 %v9818_v15, %s9498_s17 }
 0x2c9   : > { %3115 = vrot.lane.b32.xlu0 %v9814_v13, %s9502_s15 }
 0x2ca   : > { %709 = vrot.lane.b32.xlu1 %v9818_v15, %s9499_s1 }
 0x2cd   : > { %3139 = vrot.lane.b32.xlu0 %v9814_v13, %s9504_s12 }
 0x2ce   : > { %721 = vrot.lane.b32.xlu1 %v9818_v15, %s9500_s16 }
 0x2d1   : > { %3093 = vrot.lane.b32.xlu0 %v9820_v16, %s9499_s1 }
 0x2d2   : > { %3081 = vrot.lane.b32.xlu1 %v9820_v16, %s9498_s17 }
 0x2d5   : > { %3117 = vrot.lane.b32.xlu0 %v9820_v16, %s9502_s15 }
 0x2d6   : > { %3105 = vrot.lane.b32.xlu1 %v9820_v16, %s9500_s16 }
 0x2d9   : > { %3141 = vrot.lane.b32.xlu0 %v9820_v16, %s9504_s12 }
 0x2da   : > { %3129 = vrot.lane.b32.xlu1 %v9820_v16, %s9501_s11 }
 0x2dd   : > { %699 = vrot.lane.b32.xlu0 %v9834_v21, %s9498_s17 }
 0x2de   : > { %3153 = vrot.lane.b32.xlu1 %v9820_v16, %s9503_s13 }
 0x2e1   : > { %711 = vrot.lane.b32.xlu0 %v9834_v21, %s9499_s1 }
 0x2e2   : > { %3095 = vrot.lane.b32.xlu1 %v9838_v22, %s9499_s1 }
 0x2e5   : > { %723 = vrot.lane.b32.xlu0 %v9834_v21, %s9500_s16 }
 0x2e6   : > { %3131 = vrot.lane.b32.xlu1 %v9838_v22, %s9501_s11 }
 0x2e9   : > { %3083 = vrot.lane.b32.xlu0 %v9838_v22, %s9498_s17 }
 0x2ea   : > { %3155 = vrot.lane.b32.xlu1 %v9838_v22, %s9503_s13 }
 0x2ed   : > { %3107 = vrot.lane.b32.xlu0 %v9838_v22, %s9500_s16 }
 0x2ee   : > { %701 = vrot.lane.b32.xlu1 %v9842_v23, %s9498_s17 }
 0x2f1   : > { %3119 = vrot.lane.b32.xlu0 %v9838_v22, %s9502_s15 }
 0x2f2   : > { %713 = vrot.lane.b32.xlu1 %v9842_v23, %s9499_s1 }
 0x2f5   : > { %3143 = vrot.lane.b32.xlu0 %v9838_v22, %s9504_s12 }
 0x2f6   : > { %725 = vrot.lane.b32.xlu1 %v9842_v23, %s9500_s16 }
 0x2f9   : > { %3097 = vrot.lane.b32.xlu0 %v9844_v24, %s9499_s1 }
 0x2fa   : > { %3085 = vrot.lane.b32.xlu1 %v9844_v24, %s9498_s17 }
 0x2fd   : > { %743 = vrot.lane.b32.xlu0 %v9810_v14, %s9501_s11 }
 0x2fe   : > { %3109 = vrot.lane.b32.xlu1 %v9844_v24, %s9500_s16 }
 0x301   : > { %755 = vrot.lane.b32.xlu0 %v9810_v14, %s9504_s12 }
 0x302   : > { %733 = vrot.lane.b32.xlu1 %v9818_v15, %s9502_s15 }
 0x305   : > { %767 = vrot.lane.b32.xlu0 %v9810_v14, %s9503_s13 }
 0x306   : > { %745 = vrot.lane.b32.xlu1 %v9818_v15, %s9501_s11 }
 0x309   : > { %735 = vrot.lane.b32.xlu0 %v9834_v21, %s9502_s15 }
 0x30a   : > { %757 = vrot.lane.b32.xlu1 %v9818_v15, %s9504_s12 }
 0x30d   : > { %3121 = vrot.lane.b32.xlu0 %v9844_v24, %s9502_s15 }
 0x30e   : > { %769 = vrot.lane.b32.xlu1 %v9818_v15, %s9503_s13 }
 0x311   : > { %3145 = vrot.lane.b32.xlu0 %v9844_v24, %s9504_s12 }
 0x312   : > { %3133 = vrot.lane.b32.xlu1 %v9844_v24, %s9501_s11 }
 0x315   : > { %747 = vrot.lane.b32.xlu0 %v9834_v21, %s9501_s11 }
 0x316   : > { %3157 = vrot.lane.b32.xlu1 %v9844_v24, %s9503_s13 }
 0x319   : > { %759 = vrot.lane.b32.xlu0 %v9834_v21, %s9504_s12 }
 0x31a   : > { %737 = vrot.lane.b32.xlu1 %v9842_v23, %s9502_s15 }
 0x31d   : > { %771 = vrot.lane.b32.xlu0 %v9834_v21, %s9503_s13 }
 0x31e   : > { %749 = vrot.lane.b32.xlu1 %v9842_v23, %s9501_s11 }
 0x322   : > { %761 = vrot.lane.b32.xlu1 %v9842_v23, %s9504_s12 }
 0x326   : > { %773 = vrot.lane.b32.xlu1 %v9842_v23, %s9503_s13 }
 0x327   : > { %v696_v25 = vpop.permute.xlu0 %695 }
 0x328   : > { %v3092_v26 = vpop.permute.xlu1 %3091 }
 0x329   : > { %v3163_v43 = vcombine.low %v9814_v13, %v3092_v26  ;;  %v3164_v44 = vcombine.high %v9814_v13, %v3092_v26 }
 0x32b   : > { %v708_v27 = vpop.permute.xlu0 %707  ;;  %v3171_v53 = vrot.slane %v3163_v43, %v9955_v42  ;;  %v3178_v54 = vrot.slane %v3164_v44, %v9955_v42 }
 0x32c   : > { %v3104_v28 = vpop.permute.xlu1 %3103  ;;  %v779_v46 = vcombine.low %v9810_v14, %v708_v27  ;;  %v780_v58 = vcombine.high %v9810_v14, %v708_v27 }
 0x32e   : > { %v787_v59 = vrot.slane %v779_v46, %v9955_v42  ;;  %v794_v7 = vrot.slane %v780_v58, %v9955_v42 }
 0x32f   : > { %v720_v32 = vpop.permute.xlu0 %719 }
 0x330   : > { %v9946_v33 = vpop.permute.xlu1 %3127  ;;  %v795_v41 = vcombine.low %v696_v25, %v720_v32  ;;  %v796_v51 = vcombine.high %v696_v25, %v720_v32 }
 0x332   : > { %v803_v52 = vrot.slane %v795_v41, %v9955_v42  ;;  %v810_v2 = vrot.slane %v796_v51, %v9955_v42 }
 0x333   : > { %v9950_v36 = vpop.permute.xlu0 %731 }
 0x334   : > { %v9952_v37 = vpop.permute.xlu1 %3151  ;;  %v843_v3 = vcombine.low %v787_v59, %v803_v52  ;;  %v844_v4 = vcombine.high %v787_v59, %v803_v52  ;;  %v859_v27 = vcombine.low %v794_v7, %v810_v2 }
 0x336   : > { %v851_v26 = vrot.slane %v843_v3, %v9970_v1  ;;  %v858_v29 = vrot.slane %v844_v4, %v9970_v1 }
 0x337   : > { %v3080_v45 = vpop.permute.xlu0 %3079 }
 0x338   : > { %v698_v47 = vpop.permute.xlu1 %697  ;;  %v3179_v48 = vcombine.low %v3080_v45, %v3104_v28  ;;  %v3180_v49 = vcombine.high %v3080_v45, %v3104_v28  ;;  %v860_v28 = vcombine.high %v794_v7, %v810_v2 }
 0x33a   : > { %v3187_v55 = vrot.slane %v3179_v48, %v9955_v42  ;;  %v3194_v56 = vrot.slane %v3180_v49, %v9955_v42  ;;  %v874_v48 = vrot.slane %v860_v28, %v9970_v1  ;;  %v8189_v49 = vcombine.low %v851_v26, %v858_v29 }
 0x33b   : > { %v9965_v57 = vpop.permute.xlu0 %3115 }
 0x33c   : > { %v710_v60 = vpop.permute.xlu1 %709  ;;  %v3227_v61 = vcombine.low %v3171_v53, %v3187_v55  ;;  %v3228_v62 = vcombine.high %v3171_v53, %v3187_v55  ;;  %v3243_v63 = vcombine.low %v3178_v54, %v3194_v56  ;;  %v3244_v0 = vcombine.high %v3178_v54, %v3194_v56 }
 0x33d   : > { %v915_v5 = vcombine.low %v9818_v15, %v710_v60  ;;  %v916_v10 = vcombine.high %v9818_v15, %v710_v60  ;;  %v8191_v53 = vcombine.high %v851_v26, %v858_v29  ;;  %v9999_v2 = vrot.slane %v8189_v49, %v9955_v42 }
 0x33e   : > { %v3235_v8 = vrot.slane %v3227_v61, %v9970_v1  ;;  %v3242_v9 = vrot.slane %v3228_v62, %v9970_v1  ;;  %v3251_v12 = vrot.slane %v3243_v63, %v9970_v1  ;;  %v3258_v14 = vrot.slane %v3244_v0, %v9970_v1 }
 0x33f   : > { %v9974_v6 = vpop.permute.xlu0 %3139  ;;  %v923_v30 = vrot.slane %v915_v5, %v9955_v42  ;;  %v930_v34 = vrot.slane %v916_v10, %v9955_v42 }
 0x340   : > { %v722_v11 = vpop.permute.xlu1 %721  ;;  %v8253_v40 = vcombine.low %v3235_v8, %v3242_v9  ;;  %v8255_v41 = vcombine.high %v3235_v8, %v3242_v9  ;;  %v8257_v45 = vcombine.low %v3251_v12, %v3258_v14  ;;  %v8259_v46 = vcombine.high %v3251_v12, %v3258_v14 }
 0x341   : > { %v931_v13 = vcombine.low %v698_v47, %v722_v11  ;;  %v932_v25 = vcombine.high %v698_v47, %v722_v11  ;;  %v867_v47 = vrot.slane %v859_v27, %v9970_v1  ;;  %v10006_v8 = vrot.slane %v8191_v53, %v9955_v42 }
 0x342   : > { %v3715_v58 = vrot.slane %v8253_v40, %v9955_v42  ;;  %v3731_v59 = vrot.slane %v8255_v41, %v9955_v42  ;;  %v3747_v60 = vrot.slane %v8257_v45, %v9955_v42  ;;  %v3763_v61 = vrot.slane %v8259_v46, %v9955_v42 }
 0x343   : > { %v939_v31 = vrot.slane %v931_v13, %v9955_v42  ;;  %v946_v32 = vrot.slane %v932_v25, %v9955_v42  ;;  %v3094_v15 = vpop.permute.xlu0 %3093  ;;  %v8193_v62 = vcombine.low %v867_v47, %v874_v48  ;;  %v8195_v3 = vcombine.high %v867_v47, %v874_v48 }
 0x344   : > { %v3082_v38 = vpop.permute.xlu1 %3081  ;;  %v3299_v10 = vcombine.low %v9820_v16, %v3094_v15  ;;  %v3300_v11 = vcombine.high %v9820_v16, %v3094_v15  ;;  %v3771_v14 = vcombine.low %v3715_v58, %v3731_v59  ;;  %v3803_v13 = vcombine.low %v3747_v60, %v3763_v61 }
 0x345   : > { %v979_v43 = vcombine.low %v923_v30, %v939_v31  ;;  %v980_v44 = vcombine.high %v923_v30, %v939_v31  ;;  %v995_v50 = vcombine.low %v930_v34, %v946_v32  ;;  %v996_v51 = vcombine.high %v930_v34, %v946_v32 }
 0x346   : > { %v3772_v25 = vcombine.high %v3715_v58, %v3731_v59  ;;  %v3804_v26 = vcombine.high %v3747_v60, %v3763_v61  ;;  %v1363_v27 = vrot.slane %v8193_v62, %v9955_v42  ;;  %v1379_v31 = vrot.slane %v8195_v3, %v9955_v42 }
 0x347   : > { %v9990_v52 = vpop.permute.xlu0 %3117  ;;  %v987_v54 = vrot.slane %v979_v43, %v9970_v1  ;;  %v994_v55 = vrot.slane %v980_v44, %v9970_v1  ;;  %v1003_v4 = vrot.slane %v995_v50, %v9970_v1  ;;  %v1010_v5 = vrot.slane %v996_v51, %v9970_v1 }
 0x348   : > { %v3106_v56 = vpop.permute.xlu1 %3105  ;;  %v3779_v34 = vrot.slane %v3771_v14, %v9970_v1  ;;  %v3811_v16 = vrot.slane %v3803_v13, %v9970_v1  ;;  %v3307_v41 = vrot.slane %v3299_v10, %v9955_v42  ;;  %v3314_v43 = vrot.slane %v3300_v11, %v9955_v42 }
 0x349   : > { %v3315_v63 = vcombine.low %v3082_v38, %v3106_v56  ;;  %v3316_v0 = vcombine.high %v3082_v38, %v3106_v56  ;;  %v8197_v9 = vcombine.low %v987_v54, %v994_v55  ;;  %v8199_v28 = vcombine.high %v987_v54, %v994_v55 }
 0x34a   : > { %v8201_v32 = vcombine.low %v1003_v4, %v1010_v5  ;;  %v8203_v40 = vcombine.high %v1003_v4, %v1010_v5  ;;  %v3835_v45 = vcombine.low %v3779_v34, %v3811_v16  ;;  %v3836_v46 = vcombine.high %v3779_v34, %v3811_v16 }
 0x34b   : > { %v10003_v7 = vpop.permute.xlu0 %3141  ;;  %v3323_v29 = vrot.slane %v3315_v63, %v9955_v42  ;;  %v3330_v30 = vrot.slane %v3316_v0, %v9955_v42  ;;  %v1467_v38 = vrot.slane %v8197_v9, %v9955_v42  ;;  %v3786_v47 = vrot.slane %v3772_v25, %v9970_v1 }
 0x34c   : > { %v10010_v12 = vpop.permute.xlu1 %3129  ;;  %v3818_v48 = vrot.slane %v3804_v26, %v9970_v1  ;;  %v1483_v49 = vrot.slane %v8199_v28, %v9955_v42  ;;  %v8824_v55 = vpack.i.bf16 %v3836_v46, %v3835_v45  ;;  %v1499_v60 = vrot.slane %v8201_v32, %v9955_v42 }
 0x34d   : > { %v3363_v50 = vcombine.low %v3307_v41, %v3323_v29  ;;  %v3364_v51 = vcombine.high %v3307_v41, %v3323_v29  ;;  %v3379_v53 = vcombine.low %v3314_v43, %v3330_v30  ;;  %v3380_v54 = vcombine.high %v3314_v43, %v3330_v30 }
 0x34e   : > { %v3837_v56 = vcombine.low %v3786_v47, %v3818_v48  ;;  %v3838_v58 = vcombine.high %v3786_v47, %v3818_v48  ;;  %v1515_v61 = vrot.slane %v8203_v40, %v9955_v42  ;;  %v1387_v63 = vcombine.low %v9999_v2, %v10006_v8  ;;  %8825 = vxpose.xlu0.b32.start [1/4] (short) (narrow) %v8824_v55, 16 }
 0x34f   : > { %v10018_v15 = vpop.permute.xlu0 %699  ;;  %v1419_v0 = vcombine.low %v1363_v27, %v1379_v31  ;;  %v3371_v4 = vrot.slane %v3363_v50, %v9970_v1  ;;  %v3378_v5 = vrot.slane %v3364_v51, %v9970_v1  ;;  %v1523_v9 = vcombine.low %v1467_v38, %v1483_v49 }
 0x350   : > { %v10023_v44 = vpop.permute.xlu1 %3153  ;;  %v8842_v3 = vpack.i.bf16 %v3838_v58, %v3837_v56  ;;  %v3387_v10 = vrot.slane %v3379_v53, %v9970_v1  ;;  %v3394_v11 = vrot.slane %v3380_v54, %v9970_v1  ;;  %v1388_v14 = vcombine.high %v9999_v2, %v10006_v8 }
 0x351   : > { %v1420_v13 = vcombine.high %v1363_v27, %v1379_v31  ;;  %v10045_v26 = vrot.slane %v1387_v63, %v9970_v1  ;;  %v10048_v28 = vrot.slane %v1419_v0, %v9970_v1  ;;  %v10051_v29 = vrot.slane %v1523_v9, %v9970_v1 }
 0x352   : > { %8843 = vxpose.xlu1.b32.start [1/4] (short) (narrow) %v8842_v3, 16  ;;  %v1555_v30 = vcombine.low %v1499_v60, %v1515_v61  ;;  %v8261_v34 = vcombine.low %v3371_v4, %v3378_v5  ;;  %v8263_v16 = vcombine.high %v3371_v4, %v3378_v5  ;;  %v1524_v2 = vcombine.high %v1467_v38, %v1483_v49 }
 0x353   : > { %v10028_v59 = vpop.permute.xlu0 %711  ;;  %v8265_v8 = vcombine.low %v3387_v10, %v3394_v11  ;;  %v10059_v27 = vrot.slane %v1388_v14, %v9970_v1  ;;  %v10062_v31 = vrot.slane %v1420_v13, %v9970_v1  ;;  %v1556_v41 = vcombine.high %v1499_v60, %v1515_v61 }
 0x354   : > { %v10032_v62 = vpop.permute.xlu1 %3095  ;;  %v10056_v40 = vrot.slane %v1555_v30, %v9970_v1  ;;  %v8267_v45 = vcombine.high %v3387_v10, %v3394_v11  ;;  %v1451_v46 = vcombine.low %v10045_v26, %v10048_v28  ;;  %v10071_v48 = vrot.slane %v1524_v2, %v9970_v1 }
 0x355   : > { %12101 = vst [vmem:[#allocation17_spill] sm:$0xff] %v10059_v27  ;;  %12102 = vst [vmem:[#allocation18_spill] sm:$0xff] %v10062_v31  ;;  %v10076_v49 = vrot.slane %v1556_v41, %v9970_v1  ;;  %v3851_v51 = vrot.slane %v8261_v34, %v9955_v42  ;;  %v3867_v53 = vrot.slane %v8263_v16, %v9955_v42 }
 0x356   : > { %v1587_v47 = vcombine.low %v10051_v29, %v10056_v40  ;;  %v1453_v54 = vcombine.low %v10059_v27, %v10062_v31  ;;  %v3883_v58 = vrot.slane %v8265_v8, %v9955_v42  ;;  %v3899_v60 = vrot.slane %v8267_v45, %v9955_v42 }
 0x357   : > { %v10042_v25 = vpop.permute.xlu0 %723  ;;  %v1589_v55 = vcombine.low %v10071_v48, %v10076_v49  ;;  %v3908_v61 = vcombine.high %v3851_v51, %v3867_v53  ;;  %v3907_v5 = vcombine.low %v3851_v51, %v3867_v53  ;;  %v3195_v41 = vcombine.low %v9965_v57, %v9974_v6 }
 0x358   : > { %v10053_v32 = vpop.permute.xlu1 %3131  ;;  %v1867_v50 = vpack.c.bf16 %v1587_v47, %v1451_v46  ;;  %v3940_v4 = vcombine.high %v3883_v58, %v3899_v60  ;;  %v3939_v9 = vcombine.low %v3883_v58, %v3899_v60  ;;  %v3196_v47 = vcombine.high %v9965_v57, %v9974_v6 }
 0x359   : > { %v1871_v0 = vpack.c.bf16 %v1589_v55, %v1453_v54  ;;  %v3922_v3 = vrot.slane %v3908_v61, %v9970_v1  ;;  %v3915_v14 = vrot.slane %v3907_v5, %v9970_v1  ;;  %v3211_v53 = vcombine.low %v9946_v33, %v9952_v37 }
 0x35a   : > { %8586 = vmatprep.mubr.msk.bf16.mxu0 %vm4515_vm0, %v1867_v50  ;;  %v3954_v11 = vrot.slane %v3940_v4, %v9970_v1  ;;  %v3947_v30 = vrot.slane %v3939_v9, %v9970_v1  ;;  %v3347_v54 = vcombine.low %v10010_v12, %v10023_v44  ;;  %v3212_v55 = vcombine.high %v9946_v33, %v9952_v37 }
 0x35b   : > { %v10064_v43 = vpop.permute.xlu0 %3083  ;;  %8598 = vmatprep.mubr.msk.bf16.mxu1 %vm4515_vm0, %v1871_v0  ;;  %v3348_v58 = vcombine.high %v10010_v12, %v10023_v44  ;;  %v3203_v57 = vrot.slane %v3195_v41, %v9955_v42  ;;  %v3331_v6 = vcombine.low %v9990_v52, %v10003_v7  ;;  %v3332_v33 = vcombine.high %v9990_v52, %v10003_v7 }
 0x35c   : > { %v10073_v38 = vpop.permute.xlu1 %3155  ;;  %v3973_v34 = vcombine.low %v3922_v3, %v3954_v11  ;;  %v3974_v16 = vcombine.high %v3922_v3, %v3954_v11  ;;  %v3971_v2 = vcombine.low %v3915_v14, %v3947_v30  ;;  %v3972_v8 = vcombine.high %v3915_v14, %v3947_v30 }
 0x35d   : > { %v3210_v3 = vrot.slane %v3196_v47, %v9955_v42  ;;  %v3435_v37 = vcombine.low %v9838_v22, %v10032_v62  ;;  %v3219_v12 = vrot.slane %v3211_v53, %v9955_v42  ;;  %v3355_v44 = vrot.slane %v3347_v54, %v9955_v42 }
 0x35e   : > { %v8844_v45 = vpack.i.bf16 %v3974_v16, %v3973_v34  ;;  %v8826_v50 = vpack.i.bf16 %v3972_v8, %v3971_v2  ;;  %v3436_v4 = vcombine.high %v9838_v22, %v10032_v62  ;;  %v3226_v5 = vrot.slane %v3212_v55, %v9955_v42 }
 0x35f   : > { %v3108_v56 = vpop.permute.xlu0 %3107  ;;  %v3259_v11 = vcombine.low %v3203_v57, %v3219_v12  ;;  %v3339_v52 = vrot.slane %v3331_v6, %v9955_v42  ;;  %v3260_v30 = vcombine.high %v3203_v57, %v3219_v12  ;;  %v3346_v16 = vrot.slane %v3332_v33, %v9955_v42 }
 0x360   : > { %v10087_v63 = vpop.permute.xlu1 %701  ;;  %8845 = vxpose.xlu1.b32.cont [2/4] (short) (narrow) %v8844_v45, 16  ;;  %8827 = vxpose.xlu0.b32.cont [2/4] (short) (narrow) %v8826_v50, 16  ;;  %v3451_v60 = vcombine.low %v10064_v43, %v3108_v56  ;;  %v3452_v61 = vcombine.high %v10064_v43, %v3108_v56  ;;  %v3362_v43 = vrot.slane %v3348_v58, %v9955_v42 }
 0x361   : > { %v3275_v34 = vcombine.low %v3210_v3, %v3226_v5  ;;  %v3443_v22 = vrot.slane %v3435_v37, %v9955_v42  ;;  %v3276_v62 = vcombine.high %v3210_v3, %v3226_v5  ;;  %v3395_v2 = vcombine.low %v3339_v52, %v3355_v44 }
 0x362   : > { %v3459_v56 = vrot.slane %v3451_v60, %v9955_v42  ;;  %v3466_v7 = vrot.slane %v3452_v61, %v9955_v42  ;;  %v3396_v8 = vcombine.high %v3339_v52, %v3355_v44  ;;  %v3450_v41 = vrot.slane %v3436_v4, %v9955_v42 }
 0x363   : > { %v10091_v10 = vpop.permute.xlu0 %3119  ;;  %v3411_v45 = vcombine.low %v3346_v16, %v3362_v43  ;;  %v1051_v47 = vcombine.low %v9834_v21, %v10028_v59  ;;  %v3412_v54 = vcombine.high %v3346_v16, %v3362_v43  ;;  %v10143_v60 = vrot.slane %v3259_v11, %v9970_v1 }
 0x364   : > { %v10095_v13 = vpop.permute.xlu1 %713  ;;  %v3499_v50 = vcombine.low %v3443_v22, %v3459_v56  ;;  %v3500_v53 = vcombine.high %v3443_v22, %v3459_v56  ;;  %v3515_v55 = vcombine.low %v3450_v41, %v3466_v7  ;;  %v3516_v58 = vcombine.high %v3450_v41, %v3466_v7 }
 0x365   : > { %v10146_v57 = vrot.slane %v3260_v30, %v9970_v1  ;;  %v10149_v6 = vrot.slane %v3275_v34, %v9970_v1  ;;  %v1052_v61 = vcombine.high %v9834_v21, %v10028_v59  ;;  %v10158_v37 = vrot.slane %v3276_v62, %v9970_v1 }
 0x366   : > { %v10161_v12 = vrot.slane %v3395_v2, %v9970_v1  ;;  %v10164_v44 = vrot.slane %v3396_v8, %v9970_v1  ;;  %v1067_v4 = vcombine.low %v10018_v15, %v10042_v25  ;;  %v10169_v5 = vrot.slane %v3411_v45, %v9970_v1 }
 0x367   : > { %v10104_v51 = vpop.permute.xlu0 %3143  ;;  %v1059_v21 = vrot.slane %v1051_v47, %v9955_v42  ;;  %v3507_v59 = vrot.slane %v3499_v50, %v9970_v1  ;;  %v3514_v43 = vrot.slane %v3500_v53, %v9970_v1  ;;  %v10175_v56 = vrot.slane %v3412_v54, %v9970_v1 }
 0x368   : > { %v10100_v46 = vpop.permute.xlu1 %725  ;;  %v3523_v11 = vrot.slane %v3515_v55, %v9970_v1  ;;  %v3530_v52 = vrot.slane %v3516_v58, %v9970_v1  ;;  %v1066_v30 = vrot.slane %v1052_v61, %v9955_v42  ;;  %v1068_v34 = vcombine.high %v10018_v15, %v10042_v25 }
 0x369   : > { %v3483_v16 = vcombine.low %v10053_v32, %v10073_v38  ;;  %v1075_v2 = vrot.slane %v1067_v4, %v9955_v42  ;;  %v3484_v8 = vcombine.high %v10053_v32, %v10073_v38  ;;  %v8269_v15 = vcombine.low %v3507_v59, %v3514_v43 }
 0x36a   : > { %v8271_v25 = vcombine.high %v3507_v59, %v3514_v43  ;;  %v8273_v53 = vcombine.low %v3523_v11, %v3530_v52  ;;  %v8275_v32 = vcombine.high %v3523_v11, %v3530_v52  ;;  %v1082_v55 = vrot.slane %v1068_v34, %v9955_v42 }
 0x36b   : > { %v10133_v9 = vpop.permute.xlu0 %3097  ;;  %v10208_v58 = vrot.slane %v3483_v16, %v9955_v42  ;;  %v1116_v61 = vcombine.high %v1059_v21, %v1075_v2  ;;  %v10212_v4 = vrot.slane %v3484_v8, %v9955_v42  ;;  %v3467_v43 = vcombine.low %v10091_v10, %v10104_v51 }
 0x36c   : > { %v10119_v0 = vpop.permute.xlu1 %3085  ;;  %v3571_v41 = vcombine.low %v9844_v24, %v10133_v9  ;;  %v3572_v47 = vcombine.high %v9844_v24, %v10133_v9  ;;  %v1115_v9 = vcombine.low %v1059_v21, %v1075_v2  ;;  %v3987_v52 = vrot.slane %v8269_v15, %v9955_v42 }
 0x36d   : > { %v4035_v21 = vrot.slane %v8275_v32, %v9955_v42  ;;  %v1131_v45 = vcombine.low %v1066_v30, %v1082_v55 }
 0x36e   : > { %v3579_v59 = vrot.slane %v3571_v41, %v9955_v42  ;;  %v3586_v11 = vrot.slane %v3572_v47, %v9955_v42  ;;  %v1132_v47 = vcombine.high %v1066_v30, %v1082_v55 }
 0x36f   : > { %v10153_v3 = vpop.permute.xlu0 %743 }
 0x370   : > { %v3110_v14 = vpop.permute.xlu1 %3109 }
 0x371   : > { %v3587_v7 = vcombine.low %v10119_v0, %v3110_v14  ;;  %v3588_v22 = vcombine.high %v10119_v0, %v3110_v14 }
 0x373   : > { %v10197_v0 = vpop.permute.xlu0 %755  ;;  %v3595_v38 = vrot.slane %v3587_v7, %v9955_v42  ;;  %v3602_v24 = vrot.slane %v3588_v22, %v9955_v42  ;;  %v4003_v7 = vrot.slane %v8271_v25, %v9955_v42  ;;  %v4019_v22 = vrot.slane %v8273_v53, %v9955_v42 }
 0x374   : > { %v10155_v33 = vpop.permute.xlu1 %733  ;;  %v1123_v25 = vrot.slane %v1115_v9, %v9970_v1 }
 0x375   : > { %v3635_v34 = vcombine.low %v3579_v59, %v3595_v38  ;;  %v3636_v16 = vcombine.high %v3579_v59, %v3595_v38  ;;  %v3651_v2 = vcombine.low %v3586_v11, %v3602_v24  ;;  %v3652_v8 = vcombine.high %v3586_v11, %v3602_v24 }
 0x376   : > { %v4044_v39 = vcombine.high %v3987_v52, %v4003_v7  ;;  %v4043_v54 = vcombine.low %v3987_v52, %v4003_v7  ;;  %v4076_v62 = vcombine.high %v4019_v22, %v4035_v21  ;;  %v4075_v15 = vcombine.low %v4019_v22, %v4035_v21 }
 0x377   : > { %v10222_v41 = vpop.permute.xlu0 %767  ;;  %v1130_v38 = vrot.slane %v1116_v61, %v9970_v1  ;;  %v3468_v24 = vcombine.high %v10091_v10, %v10104_v51  ;;  %v3475_v59 = vrot.slane %v3467_v43, %v9955_v42  ;;  %v3643_v30 = vrot.slane %v3635_v34, %v9970_v1 }
 0x378   : > { %v10199_v14 = vpop.permute.xlu1 %745  ;;  %v4058_v53 = vrot.slane %v4044_v39, %v9970_v1  ;;  %v4051_v32 = vrot.slane %v4043_v54, %v9970_v1  ;;  %v4090_v11 = vrot.slane %v4076_v62, %v9970_v1  ;;  %v4083_v52 = vrot.slane %v4075_v15, %v9970_v1 }
 0x379   : > { %v3650_v55 = vrot.slane %v3636_v16, %v9970_v1  ;;  %v3659_v9 = vrot.slane %v3651_v2, %v9970_v1  ;;  %v3666_v61 = vrot.slane %v3652_v8, %v9970_v1  ;;  %v10240_v10 = vrot.slane %v1131_v45, %v9970_v1 }
 0x37a   : > { %v4109_v39 = vcombine.low %v4058_v53, %v4090_v11  ;;  %v4110_v7 = vcombine.high %v4058_v53, %v4090_v11  ;;  %v4107_v54 = vcombine.low %v4051_v32, %v4083_v52  ;;  %v4108_v22 = vcombine.high %v4051_v32, %v4083_v52 }
 0x37b   : > { %v10243_v51 = vrot.slane %v1132_v47, %v9970_v1  ;;  %v8205_v62 = vcombine.low %v1123_v25, %v1130_v38  ;;  %v8207_v43 = vcombine.high %v1123_v25, %v1130_v38  ;;  %v10245_v21 = vpop.permute.xlu0 %735  ;;  %v3482_v16 = vrot.slane %v3468_v24, %v9955_v42 }
 0x37c   : > { %v10224_v50 = vpop.permute.xlu1 %757  ;;  %v1203_v2 = vcombine.low %v10087_v63, %v10100_v46  ;;  %v8846_v8 = vpack.i.bf16 %v4110_v7, %v4109_v39  ;;  %v8828_v15 = vpack.i.bf16 %v4108_v22, %v4107_v54  ;;  %v1187_v45 = vcombine.low %v9842_v23, %v10095_v13 }
 0x37d   : > { %v1204_v47 = vcombine.high %v10087_v63, %v10100_v46  ;;  %v8277_v53 = vcombine.low %v3643_v30, %v3650_v55  ;;  %v8279_v32 = vcombine.high %v3643_v30, %v3650_v55  ;;  %v3531_v25 = vcombine.low %v3475_v59, %v10208_v58 }
 0x37e   : > { %v3532_v38 = vcombine.high %v3475_v59, %v10208_v58  ;;  %v8281_v11 = vcombine.low %v3659_v9, %v3666_v61  ;;  %8847 = vxpose.xlu1.b32.cont [3/4] (short) (narrow) %v8846_v8, 16  ;;  %8829 = vxpose.xlu0.b32.cont [3/4] (short) (narrow) %v8828_v15, 16  ;;  %v8209_v24 = vcombine.low %v10240_v10, %v10243_v51 }
 0x37f   : > { %v1188_v39 = vcombine.high %v9842_v23, %v10095_v13  ;;  %v8283_v7 = vcombine.high %v3659_v9, %v3666_v61  ;;  %v10265_v63 = vrot.slane %v8205_v62, %v9955_v42  ;;  %v3547_v46 = vcombine.low %v3482_v16, %v10212_v4  ;;  %v10274_v54 = vpop.permute.xlu0 %3121 }
 0x380   : > { %v10247_v34 = vpop.permute.xlu1 %769  ;;  %v3548_v58 = vcombine.high %v3482_v16, %v10212_v4  ;;  %v1211_v59 = vrot.slane %v1203_v2, %v9955_v42  ;;  %v10271_v30 = vrot.slane %v8207_v43, %v9955_v42  ;;  %v1195_v55 = vrot.slane %v1187_v45, %v9955_v42 }
 0x381   : > { %v4123_v23 = vrot.slane %v8277_v53, %v9955_v42  ;;  %v4139_v13 = vrot.slane %v8279_v32, %v9955_v42  ;;  %v10281_v9 = vrot.slane %v3531_v25, %v9970_v1  ;;  %v10284_v4 = vrot.slane %v3532_v38, %v9970_v1 }
 0x382   : > { %v1218_v61 = vrot.slane %v1204_v47, %v9955_v42  ;;  %v4155_v62 = vrot.slane %v8281_v11, %v9955_v42  ;;  %v10289_v43 = vrot.slane %v8209_v24, %v9955_v42  ;;  %v1202_v16 = vrot.slane %v1188_v39, %v9955_v42 }
 0x383   : > { %v4171_v2 = vrot.slane %v8283_v7, %v9955_v42  ;;  %v4180_v8 = vcombine.high %v4123_v23, %v4139_v13  ;;  %v10294_v15 = vrot.slane %v3547_v46, %v9970_v1  ;;  %v10297_v45 = vrot.slane %v3548_v58, %v9970_v1  ;;  %v3146_v46 = vpop.permute.xlu0 %3145 }
 0x384   : > { %v10276_v22 = vpop.permute.xlu1 %3133  ;;  %v1251_v53 = vcombine.low %v1195_v55, %v1211_v59  ;;  %v1252_v32 = vcombine.high %v1195_v55, %v1211_v59  ;;  %v4179_v38 = vcombine.low %v4123_v23, %v4139_v13  ;;  %v1267_v7 = vcombine.low %v1202_v16, %v1218_v61 }
 0x385   : > { %v4194_v47 = vrot.slane %v4180_v8, %v9970_v1  ;;  %v4212_v25 = vcombine.high %v4155_v62, %v4171_v2  ;;  %v4211_v11 = vcombine.low %v4155_v62, %v4171_v2  ;;  %v1268_v52 = vcombine.high %v1202_v16, %v1218_v61 }
 0x386   : > { %v4187_v58 = vrot.slane %v4179_v38, %v9970_v1  ;;  %v8254_v23 = vcombine.low %v10143_v60, %v10146_v57  ;;  %v10310_v13 = vrot.slane %v1251_v53, %v9970_v1  ;;  %v10313_v62 = vrot.slane %v1252_v32, %v9970_v1 }
 0x387   : > { %v4226_v35 = vrot.slane %v4212_v25, %v9970_v1  ;;  %v4219_v59 = vrot.slane %v4211_v11, %v9970_v1  ;;  %v8256_v61 = vcombine.high %v10143_v60, %v10146_v57  ;;  %v8258_v16 = vcombine.low %v10149_v6, %v10158_v37 }
 0x388   : > { %v3158_v55 = vpop.permute.xlu1 %3157  ;;  %v10320_v11 = vrot.slane %v1267_v7, %v9970_v1  ;;  %v10323_v39 = vrot.slane %v1268_v52, %v9970_v1  ;;  %v3603_v53 = vcombine.low %v10274_v54, %v3146_v46  ;;  %v3722_v60 = vrot.slane %v8254_v23, %v9955_v42 }
 0x389   : > { %v4245_v2 = vcombine.low %v4194_v47, %v4226_v35  ;;  %v4246_v8 = vcombine.high %v4194_v47, %v4226_v35  ;;  %v4243_v25 = vcombine.low %v4187_v58, %v4219_v59  ;;  %v4244_v38 = vcombine.high %v4187_v58, %v4219_v59 }
 0x38a   : > { %v3619_v32 = vcombine.low %v10276_v22, %v3158_v55  ;;  %v3738_v57 = vrot.slane %v8256_v61, %v9955_v42  ;;  %v8274_v35 = vcombine.low %v10294_v15, %v10297_v45  ;;  %v8213_v52 = vcombine.low %v10310_v13, %v10313_v62 }
 0x38b   : > { %v8848_v24 = vpack.i.bf16 %v4246_v8, %v4245_v2  ;;  %v8830_v27 = vpack.i.bf16 %v4244_v38, %v4243_v25  ;;  %v3604_v7 = vcombine.high %v10274_v54, %v3146_v46  ;;  %v3754_v58 = vrot.slane %v8258_v16, %v9955_v42 }
 0x38c   : > { %v8260_v59 = vcombine.high %v10149_v6, %v10158_v37  ;;  %v3788_v23 = vcombine.high %v3722_v60, %v3738_v57  ;;  %v8215_v61 = vcombine.high %v10310_v13, %v10313_v62  ;;  %v8217_v2 = vcombine.low %v10320_v11, %v10323_v39 }
 0x38d   : > { %8849 = vxpose.xlu1.b32.end [4/4] (short) (narrow) %v8848_v24, 16  ;;  %8831 = vxpose.xlu0.b32.end [4/4] (short) (narrow) %v8830_v27, 16  ;;  %v8219_v8 = vcombine.high %v10320_v11, %v10323_v39  ;;  %v3620_v25 = vcombine.high %v10276_v22, %v3158_v55  ;;  %v3611_v54 = vrot.slane %v3603_v53, %v9955_v42 }
 0x38e   : > { %v3627_v27 = vrot.slane %v3619_v32, %v9955_v42  ;;  %v3770_v24 = vrot.slane %v8260_v59, %v9955_v42  ;;  %v3787_v46 = vcombine.low %v3722_v60, %v3738_v57  ;;  %v3618_v6 = vrot.slane %v3604_v7, %v9955_v42 }
 0x38f   : > { %v12103_v37 = vcombine.low %v10161_v12, %v10164_v44  ;;  %v12104_v39 = vcombine.high %v10161_v12, %v10164_v44  ;;  %v12105_v22 = vcombine.low %v10169_v5, %v10175_v56  ;;  %v3802_v16 = vrot.slane %v3788_v23, %v9970_v1 }
 0x390   : > { %v3820_v38 = vcombine.high %v3754_v58, %v3770_v24  ;;  %v3795_v11 = vrot.slane %v3787_v46, %v9970_v1  ;;  %v3819_v53 = vcombine.low %v3754_v58, %v3770_v24  ;;  %v3634_v32 = vrot.slane %v3620_v25, %v9955_v42 }
 0x391   : > { %v3858_v13 = vrot.slane %v12103_v37, %v9955_v42  ;;  %v3874_v62 = vrot.slane %v12104_v39, %v9955_v42  ;;  %v3890_v55 = vrot.slane %v12105_v22, %v9955_v42  ;;  %v12106_v60 = vcombine.high %v10169_v5, %v10175_v56 }
 0x392   : > { %v3667_v7 = vcombine.low %v3611_v54, %v3627_v27  ;;  %v3668_v59 = vcombine.high %v3611_v54, %v3627_v27  ;;  %v3834_v37 = vrot.slane %v3820_v38, %v9970_v1  ;;  %v3827_v39 = vrot.slane %v3819_v53, %v9970_v1 }
 0x393   : > { %v3906_v57 = vrot.slane %v12106_v60, %v9955_v42  ;;  %v3924_v12 = vcombine.high %v3858_v13, %v3874_v62  ;;  %v3923_v44 = vcombine.low %v3858_v13, %v3874_v62  ;;  %v3683_v5 = vcombine.low %v3618_v6, %v3634_v32 }
 0x394   : > { %v3841_v25 = vcombine.low %v3802_v16, %v3834_v37  ;;  %v3842_v46 = vcombine.high %v3802_v16, %v3834_v37  ;;  %v3839_v47 = vcombine.low %v3795_v11, %v3827_v39  ;;  %v3840_v31 = vcombine.high %v3795_v11, %v3827_v39 }
 0x395   : > { %v3938_v23 = vrot.slane %v3924_v12, %v9970_v1  ;;  %v3956_v22 = vcombine.high %v3890_v55, %v3906_v57  ;;  %v3931_v58 = vrot.slane %v3923_v44, %v9970_v1  ;;  %v3955_v24 = vcombine.low %v3890_v55, %v3906_v57 }
 0x396   : > { %v3684_v56 = vcombine.high %v3618_v6, %v3634_v32  ;;  %v8878_v27 = vpack.i.bf16 %v3842_v46, %v3841_v25  ;;  %v8860_v62 = vpack.i.bf16 %v3840_v31, %v3839_v47  ;;  %v12107_v38 = vcombine.low %v10281_v9, %v10284_v4 }
 0x397   : > { %v3970_v13 = vrot.slane %v3956_v22, %v9970_v1  ;;  %v3963_v54 = vrot.slane %v3955_v24, %v9970_v1  ;;  %v12108_v55 = vcombine.high %v10281_v9, %v10284_v4  ;;  %v12109_v32 = vcombine.high %v10240_v10, %v10243_v51 }
 0x398   : > { %v3994_v53 = vrot.slane %v12107_v38, %v9955_v42  ;;  %v10390_v31 = vrot.slane %v8213_v52, %v9955_v42  ;;  %v10393_v47 = vrot.slane %v8215_v61, %v9955_v42  ;;  %8879 = vxpose.xlu1.b32.start [1/4] (short) (narrow) %v8878_v27, 16  ;;  %8861 = vxpose.xlu0.b32.start [1/4] (short) (narrow) %v8860_v62, 16 }
 0x399   : > { %v4010_v16 = vrot.slane %v12108_v55, %v9955_v42  ;;  %v3977_v60 = vcombine.low %v3938_v23, %v3970_v13  ;;  %v3978_v11 = vcombine.high %v3938_v23, %v3970_v13  ;;  %v3975_v57 = vcombine.low %v3931_v58, %v3963_v54 }
 0x39a   : > { %v3976_v6 = vcombine.high %v3931_v58, %v3963_v54  ;;  %v10387_v12 = vrot.slane %v12109_v32, %v9955_v42  ;;  %v10396_v9 = vrot.slane %v8217_v2, %v9955_v42  ;;  %v10399_v4 = vrot.slane %v8219_v8, %v9955_v42 }
 0x39b   : > { %v3675_v44 = vrot.slane %v3667_v7, %v9970_v1  ;;  %v4026_v10 = vrot.slane %v8274_v35, %v9955_v42  ;;  %v3682_v51 = vrot.slane %v3668_v59, %v9970_v1  ;;  %v8880_v37 = vpack.i.bf16 %v3978_v11, %v3977_v60 }
 0x39c   : > { %v8862_v52 = vpack.i.bf16 %v3976_v6, %v3975_v57  ;;  %v12110_v61 = vcombine.high %v10294_v15, %v10297_v45  ;;  %v3691_v23 = vrot.slane %v3683_v5, %v9970_v1  ;;  %v3698_v2 = vrot.slane %v3684_v56, %v9970_v1 }
 0x39d   : > { %v4060_v22 = vcombine.high %v3994_v53, %v4010_v16  ;;  %v4059_v8 = vcombine.low %v3994_v53, %v4010_v16  ;;  %8881 = vxpose.xlu1.b32.cont [2/4] (short) (narrow) %v8880_v37, 16  ;;  %v1659_v35 = vcombine.low %v10265_v63, %v10271_v30  ;;  %v1795_v59 = vcombine.low %v10390_v31, %v10393_v47 }
 0x39e   : > { %v4042_v39 = vrot.slane %v12110_v61, %v9955_v42  ;;  %8863 = vxpose.xlu0.b32.cont [2/4] (short) (narrow) %v8862_v52, 16  ;;  %v1827_v58 = vcombine.low %v10396_v9, %v10399_v4  ;;  %v1691_v45 = vcombine.low %v10289_v43, %v10387_v12  ;;  %v8278_v24 = vcombine.low %v3675_v44, %v3682_v51 }
 0x39f   : > { %v4074_v15 = vrot.slane %v4060_v22, %v9970_v1  ;;  %v8280_v5 = vcombine.high %v3675_v44, %v3682_v51  ;;  %v8282_v56 = vcombine.low %v3691_v23, %v3698_v2  ;;  %v4067_v13 = vrot.slane %v4059_v8, %v9970_v1 }
 0x3a0   : > { %v4092_v7 = vcombine.high %v4026_v10, %v4042_v39  ;;  %v4091_v46 = vcombine.low %v4026_v10, %v4042_v39  ;;  %v8284_v54 = vcombine.high %v3691_v23, %v3698_v2  ;;  %v1803_v38 = vrot.slane %v1795_v59, %v9970_v1 }
 0x3a1   : > { %v1835_v53 = vrot.slane %v1827_v58, %v9970_v1  ;;  %v1667_v16 = vrot.slane %v1659_v35, %v9970_v1  ;;  %v1699_v60 = vrot.slane %v1691_v45, %v9970_v1  ;;  %v4130_v57 = vrot.slane %v8278_v24, %v9955_v42 }
 0x3a2   : > { %v4106_v25 = vrot.slane %v4092_v7, %v9970_v1  ;;  %v4099_v55 = vrot.slane %v4091_v46, %v9970_v1  ;;  %v4146_v44 = vrot.slane %v8280_v5, %v9955_v42  ;;  %v4162_v10 = vrot.slane %v8282_v56, %v9955_v42 }
 0x3a3   : > { %v4178_v51 = vrot.slane %v8284_v54, %v9955_v42  ;;  %v1859_v39 = vcombine.low %v1803_v38, %v1835_v53  ;;  %v1723_v23 = vcombine.low %v1667_v16, %v1699_v60  ;;  %v1660_v35 = vcombine.high %v10265_v63, %v10271_v30 }
 0x3a4   : > { %v4113_v27 = vcombine.low %v4074_v15, %v4106_v25  ;;  %v4114_v62 = vcombine.high %v4074_v15, %v4106_v25  ;;  %v4111_v6 = vcombine.low %v4067_v13, %v4099_v55  ;;  %v4112_v32 = vcombine.high %v4067_v13, %v4099_v55 }
 0x3a5   : > { %v4196_v52 = vcombine.high %v4130_v57, %v4146_v44  ;;  %v4195_v61 = vcombine.low %v4130_v57, %v4146_v44  ;;  %v4228_v22 = vcombine.high %v4162_v10, %v4178_v51  ;;  %v4227_v7 = vcombine.low %v4162_v10, %v4178_v51 }
 0x3a6   : > { %v8882_v11 = vpack.i.bf16 %v4114_v62, %v4113_v27  ;;  %v8864_v37 = vpack.i.bf16 %v4112_v32, %v4111_v6  ;;  %v1692_v59 = vcombine.high %v10289_v43, %v10387_v12  ;;  %v1796_v58 = vcombine.high %v10390_v31, %v10393_v47  ;;  %v10488_v32 = vpop.permute.xlu1 %737 }
 0x3a7   : > { %v4210_v2 = vrot.slane %v4196_v52, %v9970_v1  ;;  %v4203_v8 = vrot.slane %v4195_v61, %v9970_v1  ;;  %v4242_v15 = vrot.slane %v4228_v22, %v9970_v1  ;;  %v4235_v45 = vrot.slane %v4227_v7, %v9970_v1 }
 0x3a8   : > { %8883 = vxpose.xlu1.b32.cont [3/4] (short) (narrow) %v8882_v11, 16  ;;  %8865 = vxpose.xlu0.b32.cont [3/4] (short) (narrow) %v8864_v37, 16  ;;  %v10440_v24 = vpack.c.bf16 %v1859_v39, %v1723_v23  ;;  %v1828_v25 = vcombine.high %v10396_v9, %v10399_v4  ;;  %v1674_v63 = vrot.slane %v1660_v35, %v9970_v1 }
 0x3a9   : > { %v4249_v46 = vcombine.low %v4210_v2, %v4242_v15  ;;  %v4250_v5 = vcombine.high %v4210_v2, %v4242_v15  ;;  %v4247_v56 = vcombine.low %v4203_v8, %v4235_v45  ;;  %v4248_v13 = vcombine.high %v4203_v8, %v4235_v45  ;;  %v10508_v2 = vpop.permute.xlu0 %747 }
 0x3aa   : > { %v1706_v12 = vrot.slane %v1692_v59, %v9970_v1  ;;  %v1810_v31 = vrot.slane %v1796_v58, %v9970_v1  ;;  %v1842_v47 = vrot.slane %v1828_v25, %v9970_v1  ;;  %v1724_v62 = vcombine.high %v1667_v16, %v1699_v60  ;;  %v10510_v22 = vpop.permute.xlu1 %749 }
 0x3ab   : > { %v8884_v30 = vpack.i.bf16 %v4250_v5, %v4249_v46  ;;  %v8866_v43 = vpack.i.bf16 %v4248_v13, %v4247_v56  ;;  %v1860_v9 = vcombine.high %v1803_v38, %v1835_v53  ;;  %v963_v38 = vcombine.low %v10199_v14, %v10247_v34 }
 0x3ac   : > { %v1725_v54 = vcombine.low %v1674_v63, %v1706_v12  ;;  %v1861_v27 = vcombine.low %v1810_v31, %v1842_v47  ;;  %v1726_v11 = vcombine.high %v1674_v63, %v1706_v12  ;;  %v1862_v57 = vcombine.high %v1810_v31, %v1842_v47 }
 0x3ad   : > { %8885 = vxpose.xlu1.b32.end [4/4] (short) (narrow) %v8884_v30, 16  ;;  %8867 = vxpose.xlu0.b32.end [4/4] (short) (narrow) %v8866_v43, 16  ;;  %v10450_v55 = vpack.c.bf16 %v1860_v9, %v1724_v62  ;;  %v964_v53 = vcombine.high %v10199_v14, %v10247_v34  ;;  %v947_v16 = vcombine.low %v10155_v33, %v10224_v50  ;;  %v10526_v46 = vpop.permute.xlu0 %759 }
 0x3ae   : > { %v10448_v4 = vpack.c.bf16 %v1861_v27, %v1725_v54  ;;  %v10452_v6 = vpack.c.bf16 %v1862_v57, %v1726_v11  ;;  %v948_v60 = vcombine.high %v10155_v33, %v10224_v50  ;;  %v827_v44 = vcombine.low %v10153_v3, %v10222_v41  ;;  %v10528_v5 = vpop.permute.xlu1 %761 }
 0x3af   : > { %v828_v14 = vcombine.high %v10153_v3, %v10222_v41  ;;  %v971_v34 = vrot.slane %v963_v38, %v9955_v42  ;;  %v978_v10 = vrot.slane %v964_v53, %v9955_v42  ;;  %v811_v51 = vcombine.low %v9950_v36, %v10197_v0 }
 0x3b0   : > { %v812_v33 = vcombine.high %v9950_v36, %v10197_v0  ;;  %v955_v50 = vrot.slane %v947_v16, %v9955_v42  ;;  %v962_v3 = vrot.slane %v948_v60, %v9955_v42  ;;  %v835_v41 = vrot.slane %v827_v44, %v9955_v42 }
 0x3b1   : > { %v842_v37 = vrot.slane %v828_v14, %v9955_v42  ;;  %v819_v36 = vrot.slane %v811_v51, %v9955_v42  ;;  %v772_v16 = vpop.permute.xlu0 %771 }
 0x3b2   : > { %v1011_v52 = vcombine.low %v955_v50, %v971_v34  ;;  %v1012_v61 = vcombine.high %v955_v50, %v971_v34  ;;  %v1027_v39 = vcombine.low %v962_v3, %v978_v10  ;;  %v1028_v23 = vcombine.high %v962_v3, %v978_v10  ;;  %v774_v60 = vpop.permute.xlu1 %773 }
 0x3b3   : > { %v826_v0 = vrot.slane %v812_v33, %v9955_v42  ;;  %v875_v8 = vcombine.low %v819_v36, %v835_v41  ;;  %v876_v7 = vcombine.high %v819_v36, %v835_v41  ;;  %v1083_v41 = vcombine.low %v10245_v21, %v10526_v46 }
 0x3b4   : > { %v1019_v58 = vrot.slane %v1011_v52, %v9970_v1  ;;  %v1026_v15 = vrot.slane %v1012_v61, %v9970_v1  ;;  %v1035_v45 = vrot.slane %v1027_v39, %v9970_v1  ;;  %v1042_v25 = vrot.slane %v1028_v23, %v9970_v1 }
 0x3b5   : > { %v891_v35 = vcombine.low %v826_v0, %v842_v37  ;;  %v892_v59 = vcombine.high %v826_v0, %v842_v37  ;;  %v883_v56 = vrot.slane %v875_v8, %v9970_v1  ;;  %v890_v13 = vrot.slane %v876_v7, %v9970_v1 }
 0x3b6   : > { %v8198_v43 = vcombine.low %v1019_v58, %v1026_v15  ;;  %v8200_v12 = vcombine.high %v1019_v58, %v1026_v15  ;;  %v8202_v31 = vcombine.low %v1035_v45, %v1042_v25  ;;  %v8204_v47 = vcombine.high %v1035_v45, %v1042_v25 }
 0x3b7   : > { %v899_v63 = vrot.slane %v891_v35, %v9970_v1  ;;  %v906_v30 = vrot.slane %v892_v59, %v9970_v1  ;;  %v8190_v54 = vcombine.low %v883_v56, %v890_v13  ;;  %v8192_v27 = vcombine.high %v883_v56, %v890_v13 }
 0x3b8   : > { %v10539_v11 = vrot.slane %v8198_v43, %v9955_v42  ;;  %v10542_v57 = vrot.slane %v8200_v12, %v9955_v42  ;;  %v10545_v38 = vrot.slane %v8202_v31, %v9955_v42  ;;  %v10548_v53 = vrot.slane %v8204_v47, %v9955_v42 }
 0x3b9   : > { %v8194_v62 = vcombine.low %v899_v63, %v906_v30  ;;  %v8196_v9 = vcombine.high %v899_v63, %v906_v30  ;;  %v10555_v44 = vrot.slane %v8190_v54, %v9955_v42  ;;  %v10558_v14 = vrot.slane %v8192_v27, %v9955_v42 }
 0x3ba   : > { %v1539_v50 = vcombine.low %v10539_v11, %v10542_v57  ;;  %v1571_v3 = vcombine.low %v10545_v38, %v10548_v53  ;;  %v1099_v37 = vcombine.low %v10508_v2, %v772_v16  ;;  %v1219_v52 = vcombine.low %v10488_v32, %v10528_v5 }
 0x3bb   : > { %v10561_v34 = vrot.slane %v8194_v62, %v9955_v42  ;;  %v10564_v10 = vrot.slane %v8196_v9, %v9955_v42  ;;  %v1235_v61 = vcombine.low %v10510_v22, %v774_v60  ;;  %v1236_v39 = vcombine.high %v10510_v22, %v774_v60 }
 0x3bc   : > { %v1403_v23 = vcombine.low %v10555_v44, %v10558_v14  ;;  %v10588_v59 = vrot.slane %v1539_v50, %v9970_v1  ;;  %v10591_v58 = vrot.slane %v1571_v3, %v9970_v1  ;;  %v1084_v56 = vcombine.high %v10245_v21, %v10526_v46 }
 0x3bd   : > { %v1435_v36 = vcombine.low %v10561_v34, %v10564_v10  ;;  %v1100_v13 = vcombine.high %v10508_v2, %v772_v16  ;;  %v1220_v63 = vcombine.high %v10488_v32, %v10528_v5  ;;  %v1243_v30 = vrot.slane %v1235_v61, %v9955_v42 }
 0x3be   : > { %v10602_v31 = vrot.slane %v1403_v23, %v9970_v1  ;;  %v1107_v54 = vrot.slane %v1099_v37, %v9955_v42  ;;  %v1227_v27 = vrot.slane %v1219_v52, %v9955_v42  ;;  %v1250_v21 = vrot.slane %v1236_v39, %v9955_v42 }
 0x3bf   : > { %v10605_v47 = vrot.slane %v1435_v36, %v9970_v1  ;;  %v1588_v32 = vcombine.high %v10051_v29, %v10056_v40  ;;  %v1591_v46 = vcombine.low %v10588_v59, %v10591_v58  ;;  %v1114_v9 = vrot.slane %v1100_v13, %v9955_v42 }
 0x3c0   : > { %v1234_v16 = vrot.slane %v1220_v63, %v9955_v42  ;;  %v1452_v60 = vcombine.high %v10045_v26, %v10048_v28  ;;  %v1283_v29 = vcombine.low %v1227_v27, %v1243_v30  ;;  %v1284_v40 = vcombine.high %v1227_v27, %v1243_v30 }
 0x3c1   : > { %v1455_v50 = vcombine.low %v10602_v31, %v10605_v47  ;;  %v1098_v3 = vrot.slane %v1084_v56, %v9955_v42 }
 0x3c2   : > { %v1300_v37 = vcombine.high %v1234_v16, %v1250_v21  ;;  %v1869_v52 = vpack.c.bf16 %v1588_v32, %v1452_v60  ;;  %v1291_v36 = vrot.slane %v1283_v29, %v9970_v1 }
 0x3c3   : > { %v1875_v26 = vpack.c.bf16 %v1591_v46, %v1455_v50  ;;  %v1163_v39 = vcombine.low %v1098_v3, %v1114_v9  ;;  %v1164_v23 = vcombine.high %v1098_v3, %v1114_v9  ;;  %v1404_v50 = vcombine.high %v10555_v44, %v10558_v14 }
 0x3c4   : > { %v1436_v3 = vcombine.high %v10561_v34, %v10564_v10 }
 0x3c5   : > { %v1178_v56 = vrot.slane %v1164_v23, %v9970_v1  ;;  %v1418_v34 = vrot.slane %v1404_v50, %v9970_v1 }
 0x3cb   : > { %1889 = vrot.lane.b32.xlu1 %v9832_v20, %s9498_s17 }
 0x3cf   : > { %1899 = vrot.lane.b32.xlu1 %v9826_v18, %s9499_s1 }
 0x3d3   : > { %1901 = vrot.lane.b32.xlu1 %v9832_v20, %s9499_s1 }
 0x3d6   : > { %1887 = vrot.lane.b32.xlu0 %v9826_v18, %s9498_s17 }
 0x3d7   : > { %1913 = vrot.lane.b32.xlu1 %v9832_v20, %s9500_s16 }
 0x3da   : > { %1911 = vrot.lane.b32.xlu0 %v9826_v18, %s9500_s16 }
 0x3db   : > { %1893 = vrot.lane.b32.xlu1 %v9830_v19, %s9498_s17 }
 0x3de   : > { %1891 = vrot.lane.b32.xlu0 %v9822_v17, %s9498_s17 }
 0x3df   : > { %1905 = vrot.lane.b32.xlu1 %v9830_v19, %s9499_s1 }
 0x3e2   : > { %1903 = vrot.lane.b32.xlu0 %v9822_v17, %s9499_s1 }
 0x3e3   : > { %1917 = vrot.lane.b32.xlu1 %v9830_v19, %s9500_s16 }
 0x3e6   : > { %1915 = vrot.lane.b32.xlu0 %v9822_v17, %s9500_s16 }
 0x3e7   : > { %1925 = vrot.lane.b32.xlu1 %v9832_v20, %s9502_s15 }
 0x3ea   : > { %1923 = vrot.lane.b32.xlu0 %v9826_v18, %s9502_s15 }
 0x3eb   : > { %1935 = vrot.lane.b32.xlu1 %v9826_v18, %s9501_s11 }
 0x3ee   : > { %1947 = vrot.lane.b32.xlu0 %v9826_v18, %s9504_s12 }
 0x3ef   : > { %1937 = vrot.lane.b32.xlu1 %v9832_v20, %s9501_s11 }
 0x3f2   : > { %1959 = vrot.lane.b32.xlu0 %v9826_v18, %s9503_s13 }
 0x3f3   : > { %1949 = vrot.lane.b32.xlu1 %v9832_v20, %s9504_s12 }
 0x3f6   : > { %1927 = vrot.lane.b32.xlu0 %v9822_v17, %s9502_s15 }
 0x3f7   : > { %1961 = vrot.lane.b32.xlu1 %v9832_v20, %s9503_s13 }
 0x3fa   : > { %1939 = vrot.lane.b32.xlu0 %v9822_v17, %s9501_s11 }
 0x3fb   : > { %1929 = vrot.lane.b32.xlu1 %v9830_v19, %s9502_s15 }
 0x3fe   : > { %1951 = vrot.lane.b32.xlu0 %v9822_v17, %s9504_s12 }
 0x3ff   : > { %1941 = vrot.lane.b32.xlu1 %v9830_v19, %s9501_s11 }
 0x401   : > { %v8850_v51 = vpop.trf.xlu1  ;;  %v8832_v33 = vpop.trf.xlu0 }
 0x402   : > { %1963 = vrot.lane.b32.xlu0 %v9822_v17, %s9503_s13  ;;  %v8833_v7 = vunpack.i.l.bf16 %v8832_v33  ;;  %v8851_v35 = vunpack.i.l.bf16 %v8850_v51  ;;  %v8836_v25 = vunpack.i.h.bf16 %v8832_v33  ;;  %v8854_v62 = vunpack.i.h.bf16 %v8850_v51 }
 0x403   : > { %1953 = vrot.lane.b32.xlu1 %v9830_v19, %s9504_s12  ;;  %v1091_v33 = vrot.slane %v1083_v41, %v9955_v42  ;;  %v1299_v51 = vcombine.low %v1234_v16, %v1250_v21 }
 0x405   : > { %v8855_v0 = vpop.trf.xlu1  ;;  %v8837_v8 = vpop.trf.xlu0  ;;  %v1147_v41 = vcombine.low %v1091_v33, %v1107_v54  ;;  %v1148_v61 = vcombine.high %v1091_v33, %v1107_v54 }
 0x406   : > { %v8838_v22 = vunpack.i.l.bf16 %v8837_v8  ;;  %v8856_v15 = vunpack.i.l.bf16 %v8855_v0  ;;  %v8841_v45 = vunpack.i.h.bf16 %v8837_v8  ;;  %v8859_v5 = vunpack.i.h.bf16 %v8855_v0 }
 0x407   : > { %1965 = vrot.lane.b32.xlu1 %v9830_v19, %s9503_s13  ;;  %v1298_v0 = vrot.slane %v1284_v40, %v9970_v1  ;;  %v1590_v8 = vcombine.high %v10071_v48, %v10076_v49 }
 0x408   : > { %v4507_v43 = vpack.c.bf16 %v8838_v22, %v8833_v7  ;;  %v4509_v12 = vpack.c.bf16 %v8856_v15, %v8851_v35  ;;  %v4508_v2 = vpack.c.bf16 %v8841_v45, %v8836_v25  ;;  %v4510_v28 = vpack.c.bf16 %v8859_v5, %v8854_v62  ;;  %v12111_v22 = vld [vmem:[#allocation18_spill] sm:$0xff]  ;;  %v12112_v15 = vld [vmem:[#allocation17_spill] sm:$0xff] }
 0x409   : > { %v1155_v7 = vrot.slane %v1147_v41, %v9970_v1  ;;  %v1162_v35 = vrot.slane %v1148_v61, %v9970_v1  ;;  %v1454_v45 = vcombine.high %v12112_v15, %v12111_v22  ;;  %v1171_v25 = vrot.slane %v1163_v39, %v9970_v1 }
 0x40a   : > { %8584 = vmatprep.subr.bf16.mxu0 %v4507_v43  ;;  %8596 = vmatprep.subr.bf16.mxu1 %v4509_v12  ;;  %v8214_v13 = vcombine.low %v1291_v36, %v1298_v0  ;;  %v8216_v63 = vcombine.high %v1291_v36, %v1298_v0  ;;  %v1456_v5 = vcombine.high %v10602_v31, %v10605_v47 }
 0x40b   : > { %8585 = vmatpush3.bf16.msra.mxu0 %v4507_v43  ;;  %8597 = vmatpush3.bf16.msra.mxu1 %v4509_v12  ;;  %v1873_v12 = vpack.c.bf16 %v1590_v8, %v1454_v45  ;;  %v8206_v48 = vcombine.low %v1155_v7, %v1162_v35  ;;  %v8208_v49 = vcombine.high %v1155_v7, %v1162_v35 }
 0x40c   : > { %8590 = vmatprep.subr.bf16.mxu0 %v4508_v2  ;;  %v8210_v54 = vcombine.low %v1171_v25, %v1178_v56  ;;  %v8212_v27 = vcombine.high %v1171_v25, %v1178_v56  ;;  %v10646_v21 = vrot.slane %v8214_v13, %v9955_v42  ;;  %v10649_v32 = vrot.slane %v8216_v63, %v9955_v42 }
 0x40d   : > { %v10662_v62 = vrot.slane %v8206_v48, %v9955_v42  ;;  %v10665_v9 = vrot.slane %v8208_v49, %v9955_v42 }
 0x40e   : > { %8587 = vmatmul.mubr.msk.bf16.vlgmr.msra.gmra.mrb[8].mxu0 %vm4515_vm0, %v10440_v24  ;;  %8599 = vmatmul.mubr.msk.bf16.vlgmr.msra.gmra.mrb[4].mxu1 %vm4515_vm0, %v10448_v4  ;;  %v1307_v24 = vrot.slane %v1299_v51, %v9970_v1  ;;  %v1314_v4 = vrot.slane %v1300_v37, %v9970_v1  ;;  %v10668_v16 = vrot.slane %v8210_v54, %v9955_v42 }
 0x40f   : > { %8591 = vmatpush3.bf16.msra.mxu0 %v4508_v2  ;;  %8592 = vmatprep.mubr.msk.bf16.mxu0 %vm4515_vm0, %v1869_v52  ;;  %v10671_v60 = vrot.slane %v8212_v27, %v9955_v42  ;;  %v1811_v33 = vcombine.low %v10646_v21, %v10649_v32  ;;  %v1675_v31 = vcombine.low %v10662_v62, %v10665_v9 }
 0x410   : > { %8610 = vmatprep.mubr.msk.bf16.mxu1 %vm4515_vm0, %v1875_v26  ;;  %8602 = vmatprep.subr.bf16.mxu0 %v4510_v28  ;;  %v8218_v30 = vcombine.low %v1307_v24, %v1314_v4  ;;  %v8220_v43 = vcombine.high %v1307_v24, %v1314_v4  ;;  %v1572_v51 = vcombine.high %v10545_v38, %v10548_v53 }
 0x411   : > { %v1707_v47 = vcombine.low %v10668_v16, %v10671_v60  ;;  %v1819_v29 = vrot.slane %v1811_v33, %v9970_v1  ;;  %v1812_v37 = vcombine.high %v10646_v21, %v10649_v32  ;;  %v1683_v41 = vrot.slane %v1675_v31, %v9970_v1 }
 0x412   : > { %v10652_v2 = vrot.slane %v8218_v30, %v9955_v42  ;;  %v10655_v46 = vrot.slane %v8220_v43, %v9955_v42  ;;  %v1586_v38 = vrot.slane %v1572_v51, %v9970_v1  ;;  %v1676_v63 = vcombine.high %v10662_v62, %v10665_v9 }
 0x413   : > { %v1715_v44 = vrot.slane %v1707_v47, %v9970_v1  ;;  %v1708_v30 = vcombine.high %v10668_v16, %v10671_v60  ;;  %v1826_v27 = vrot.slane %v1812_v37, %v9970_v1 }
 0x415   : > { %v1727_v22 = vcombine.low %v1683_v41, %v1715_v44  ;;  %v1728_v43 = vcombine.high %v1683_v41, %v1715_v44 }
 0x416   : > { %8593 = vmatmul.mubr.msk.bf16.vlgmr.msra.gmra.mrb[12].mxu0 %vm4515_vm0, %v10450_v55  ;;  %v1592_v55 = vcombine.high %v10588_v59, %v10591_v58  ;;  %v1843_v59 = vcombine.low %v10652_v2, %v10655_v46 }
 0x417   : > { %8603 = vmatpush3.bf16.msra.mxu0 %v4510_v28  ;;  %8604 = vmatprep.mubr.msk.bf16.mxu0 %vm4515_vm0, %v1873_v12  ;;  %v1844_v28 = vcombine.high %v10652_v2, %v10655_v46  ;;  %v1690_v46 = vrot.slane %v1676_v63, %v9970_v1 }
 0x418   : > { %v1877_v58 = vpack.c.bf16 %v1592_v55, %v1456_v5  ;;  %v1851_v40 = vrot.slane %v1843_v59, %v9970_v1  ;;  %v1722_v55 = vrot.slane %v1708_v30, %v9970_v1 }
 0x419   : > { %v1858_v21 = vrot.slane %v1844_v28, %v9970_v1 }
 0x41a   : > { %v1863_v14 = vcombine.low %v1819_v29, %v1851_v40  ;;  %v1864_v15 = vcombine.high %v1819_v29, %v1851_v40  ;;  %v1729_v9 = vcombine.low %v1690_v46, %v1722_v55  ;;  %v1730_v16 = vcombine.high %v1690_v46, %v1722_v55 }
 0x41b   : > { %v1865_v5 = vcombine.low %v1826_v27, %v1858_v21  ;;  %v1866_v62 = vcombine.high %v1826_v27, %v1858_v21 }
 0x41c   : > { %v1876_v12 = vpack.c.bf16 %v1863_v14, %v1727_v22  ;;  %v1878_v54 = vpack.c.bf16 %v1864_v15, %v1728_v43 }
 0x41d   : > { %v1880_v60 = vpack.c.bf16 %v1865_v5, %v1729_v9  ;;  %v1882_v33 = vpack.c.bf16 %v1866_v62, %v1730_v16 }
 0x41e   : > { %8605 = vmatmul.mubr.msk.bf16.vlgmr.msra.gmra.mrb[16].mxu0 %vm4515_vm0, %v10452_v6  ;;  %v1540_v6 = vcombine.high %v10539_v11, %v10542_v57  ;;  %v1450_v11 = vrot.slane %v1436_v3, %v9970_v1 }
 0x41f   : > { %8616 = vmatprep.mubr.msk.bf16.mxu0 %vm4515_vm0, %v1877_v58 }
 0x420   : > { %v1554_v57 = vrot.slane %v1540_v6, %v9970_v1  ;;  %v1457_v48 = vcombine.low %v1418_v34, %v1450_v11  ;;  %v1458_v49 = vcombine.high %v1418_v34, %v1450_v11 }
 0x421   : > { %v8868_v52 = vpop.trf.xlu0  ;;  %v8886_v26 = vpop.trf.xlu1 }
 0x422   : > { %v8869_v10 = vunpack.i.l.bf16 %v8868_v52  ;;  %v8872_v61 = vunpack.i.h.bf16 %v8868_v52  ;;  %v8887_v23 = vunpack.i.l.bf16 %v8886_v26  ;;  %v8890_v36 = vunpack.i.h.bf16 %v8886_v26 }
 0x423   : > { %v1593_v45 = vcombine.low %v1554_v57, %v1586_v38  ;;  %v1594_v25 = vcombine.high %v1554_v57, %v1586_v38 }
 0x425   : > { %v8873_v53 = vpop.trf.xlu0  ;;  %v8891_v39 = vpop.trf.xlu1  ;;  %v1879_v32 = vpack.c.bf16 %v1593_v45, %v1457_v48  ;;  %v1881_v2 = vpack.c.bf16 %v1594_v25, %v1458_v49 }
 0x426   : > { %v8874_v0 = vunpack.i.l.bf16 %v8873_v53  ;;  %v8877_v24 = vunpack.i.h.bf16 %v8873_v53  ;;  %v8892_v4 = vunpack.i.l.bf16 %v8891_v39  ;;  %v8895_v8 = vunpack.i.h.bf16 %v8891_v39 }
 0x428   : > { %v4511_v7 = vpack.c.bf16 %v8874_v0, %v8869_v10  ;;  %v4512_v35 = vpack.c.bf16 %v8877_v24, %v8872_v61  ;;  %v4513_v56 = vpack.c.bf16 %v8892_v4, %v8887_v23  ;;  %v4514_v13 = vpack.c.bf16 %v8895_v8, %v8890_v36 }
 0x42a   : > { %8608 = vmatprep.subr.bf16.mxu1 %v4511_v7  ;;  %8614 = vmatprep.subr.bf16.mxu0 %v4512_v35 }
 0x42b   : > { %8609 = vmatpush3.bf16.msra.mxu1 %v4511_v7  ;;  %8615 = vmatpush3.bf16.msra.mxu0 %v4512_v35 }
 0x42c   : > { %8620 = vmatprep.subr.bf16.mxu1 %v4513_v56  ;;  %8626 = vmatprep.subr.bf16.mxu0 %v4514_v13 }
 0x42e   : > { %8611 = vmatmul.mubr.msk.bf16.vlgmr.msra.gmra.mrb[8].mxu1 %vm4515_vm0, %v1876_v12  ;;  %8617 = vmatmul.mubr.msk.bf16.vlgmr.msra.gmra.mrb[20].mxu0 %vm4515_vm0, %v1878_v54 }
 0x42f   : > { %8622 = vmatprep.mubr.msk.bf16.mxu1 %vm4515_vm0, %v1879_v32  ;;  %8628 = vmatprep.mubr.msk.bf16.mxu0 %vm4515_vm0, %v1881_v2 }
 0x430   : > { %8621 = vmatpush3.bf16.msra.mxu1 %v4513_v56  ;;  %8627 = vmatpush3.bf16.msra.mxu0 %v4514_v13 }
 0x436   : > { %8623 = vmatmul.mubr.msk.bf16.vlgmr.msra.gmra.mrb[12].mxu1 %vm4515_vm0, %v1880_v60  ;;  %8629 = vmatmul.mubr.msk.bf16.vlgmr.msra.gmra.mrb[24].mxu0 %vm4515_vm0, %v1882_v33 }
 0x43d   : > { %v1890_v59 = vpop.permute.xlu1 %1889 }
 0x441   : > { %v1900_v58 = vpop.permute.xlu1 %1899 }
 0x442   : > { %v1971_v6 = vcombine.low %v9826_v18, %v1900_v58  ;;  %v1972_v51 = vcombine.high %v9826_v18, %v1900_v58 }
 0x444   : > { %v1979_v38 = vrot.slane %v1971_v6, %v9955_v42  ;;  %v1986_v53 = vrot.slane %v1972_v51, %v9955_v42 }
 0x445   : > { %v1902_v31 = vpop.permute.xlu1 %1901 }
 0x446   : > { %v2107_v47 = vcombine.low %v9832_v20, %v1902_v31  ;;  %v2108_v37 = vcombine.high %v9832_v20, %v1902_v31 }
 0x448   : > { %v1888_v29 = vpop.permute.xlu0 %1887  ;;  %v2115_v52 = vrot.slane %v2107_v47, %v9955_v42  ;;  %v2122_v10 = vrot.slane %v2108_v37, %v9955_v42 }
 0x449   : > { %v1914_v40 = vpop.permute.xlu1 %1913 }
 0x44a   : > { %v2123_v50 = vcombine.low %v1890_v59, %v1914_v40  ;;  %v2124_v3 = vcombine.high %v1890_v59, %v1914_v40 }
 0x44c   : > { %v2131_v26 = vrot.slane %v2123_v50, %v9955_v42  ;;  %v1912_v28 = vpop.permute.xlu0 %1911  ;;  %v2138_v34 = vrot.slane %v2124_v3, %v9955_v42 }
 0x44d   : > { %v1987_v41 = vcombine.low %v1888_v29, %v1912_v28  ;;  %v1988_v44 = vcombine.high %v1888_v29, %v1912_v28  ;;  %v1894_v14 = vpop.permute.xlu1 %1893 }
 0x44e   : > { %v2171_v11 = vcombine.low %v2115_v52, %v2131_v26  ;;  %v2172_v57 = vcombine.high %v2115_v52, %v2131_v26  ;;  %v2187_v7 = vcombine.low %v2122_v10, %v2138_v34  ;;  %v2188_v35 = vcombine.high %v2122_v10, %v2138_v34 }
 0x44f   : > { %v1995_v18 = vrot.slane %v1987_v41, %v9955_v42  ;;  %v2002_v20 = vrot.slane %v1988_v44, %v9955_v42 }
 0x450   : > { %v1892_v61 = vpop.permute.xlu0 %1891  ;;  %v2179_v4 = vrot.slane %v2171_v11, %v9970_v1  ;;  %v2186_v8 = vrot.slane %v2172_v57, %v9970_v1  ;;  %v2195_v48 = vrot.slane %v2187_v7, %v9970_v1  ;;  %v2202_v49 = vrot.slane %v2188_v35, %v9970_v1 }
 0x451   : > { %v2035_v39 = vcombine.low %v1979_v38, %v1995_v18  ;;  %v2036_v23 = vcombine.high %v1979_v38, %v1995_v18  ;;  %v2051_v36 = vcombine.low %v1986_v53, %v2002_v20  ;;  %v2052_v0 = vcombine.high %v1986_v53, %v2002_v20  ;;  %v1906_v24 = vpop.permute.xlu1 %1905 }
 0x452   : > { %v8229_v54 = vcombine.low %v2179_v4, %v2186_v8  ;;  %v8231_v27 = vcombine.high %v2179_v4, %v2186_v8  ;;  %v2379_v21 = vcombine.low %v9830_v19, %v1906_v24  ;;  %v8233_v58 = vcombine.low %v2195_v48, %v2202_v49 }
 0x453   : > { %v2043_v22 = vrot.slane %v2035_v39, %v9970_v1  ;;  %v2050_v15 = vrot.slane %v2036_v23, %v9970_v1  ;;  %v2059_v45 = vrot.slane %v2051_v36, %v9970_v1  ;;  %v2066_v25 = vrot.slane %v2052_v0, %v9970_v1 }
 0x454   : > { %v1904_v56 = vpop.permute.xlu0 %1903  ;;  %v8235_v31 = vcombine.high %v2195_v48, %v2202_v49  ;;  %v10756_v29 = vrot.slane %v8229_v54, %v9955_v42  ;;  %v10759_v40 = vrot.slane %v8231_v27, %v9955_v42  ;;  %v2387_v37 = vrot.slane %v2379_v21, %v9955_v42 }
 0x455   : > { %v8221_v13 = vcombine.low %v2043_v22, %v2050_v15  ;;  %v8223_v63 = vcombine.high %v2043_v22, %v2050_v15  ;;  %v8225_v30 = vcombine.low %v2059_v45, %v2066_v25  ;;  %v8227_v43 = vcombine.high %v2059_v45, %v2066_v25  ;;  %v1918_v12 = vpop.permute.xlu1 %1917 }
 0x456   : > { %v2243_v32 = vcombine.low %v9822_v17, %v1904_v56  ;;  %v2395_v2 = vcombine.low %v1894_v14, %v1918_v12  ;;  %v2244_v46 = vcombine.high %v9822_v17, %v1904_v56  ;;  %v2396_v55 = vcombine.high %v1894_v14, %v1918_v12 }
 0x457   : > { %v10742_v62 = vrot.slane %v8221_v13, %v9955_v42  ;;  %v10745_v9 = vrot.slane %v8223_v63, %v9955_v42  ;;  %v10748_v33 = vrot.slane %v8225_v30, %v9955_v42  ;;  %v10751_v59 = vrot.slane %v8227_v43, %v9955_v42 }
 0x458   : > { %v1916_v5 = vpop.permute.xlu0 %1915  ;;  %v2380_v17 = vcombine.high %v9830_v19, %v1906_v24  ;;  %v2403_v47 = vrot.slane %v2395_v2, %v9955_v42  ;;  %v2251_v50 = vrot.slane %v2243_v32, %v9955_v42  ;;  %v2258_v3 = vrot.slane %v2244_v46, %v9955_v42 }
 0x459   : > { %v2259_v16 = vcombine.low %v1892_v61, %v1916_v5  ;;  %v2260_v60 = vcombine.high %v1892_v61, %v1916_v5  ;;  %v2410_v19 = vrot.slane %v2396_v55, %v9955_v42  ;;  %v2579_v52 = vcombine.low %v10742_v62, %v10745_v9 }
 0x45a   : > { %v2611_v26 = vcombine.low %v10748_v33, %v10751_v59  ;;  %v2394_v34 = vrot.slane %v2380_v17, %v9955_v42  ;;  %v2443_v11 = vcombine.low %v2387_v37, %v2403_v47  ;;  %v10773_v57 = vrot.slane %v8233_v58, %v9955_v42 }
 0x45b   : > { %v2267_v6 = vrot.slane %v2259_v16, %v9955_v42  ;;  %v2274_v51 = vrot.slane %v2260_v60, %v9955_v42  ;;  %v10776_v38 = vrot.slane %v8235_v31, %v9955_v42  ;;  %v2444_v61 = vcombine.high %v2387_v37, %v2403_v47 }
 0x45c   : > { %v2587_v39 = vrot.slane %v2579_v52, %v9970_v1  ;;  %v2619_v23 = vrot.slane %v2611_v26, %v9970_v1  ;;  %v2715_v36 = vcombine.low %v10756_v29, %v10759_v40  ;;  %v2459_v0 = vcombine.low %v2394_v34, %v2410_v19 }
 0x45d   : > { %v2307_v28 = vcombine.low %v2251_v50, %v2267_v6  ;;  %v2308_v41 = vcombine.high %v2251_v50, %v2267_v6  ;;  %v2323_v44 = vcombine.low %v2258_v3, %v2274_v51  ;;  %v2324_v14 = vcombine.high %v2258_v3, %v2274_v51 }
 0x45e   : > { %v2451_v24 = vrot.slane %v2443_v11, %v9970_v1  ;;  %v2460_v4 = vcombine.high %v2394_v34, %v2410_v19  ;;  %v2723_v8 = vrot.slane %v2715_v36, %v9970_v1  ;;  %v2747_v7 = vcombine.low %v10773_v57, %v10776_v38 }
 0x45f   : > { %v2315_v53 = vrot.slane %v2307_v28, %v9970_v1  ;;  %v2322_v18 = vrot.slane %v2308_v41, %v9970_v1  ;;  %v2331_v20 = vrot.slane %v2323_v44, %v9970_v1  ;;  %v2338_v10 = vrot.slane %v2324_v14, %v9970_v1 }
 0x460   : > { %v2458_v25 = vrot.slane %v2444_v61, %v9970_v1  ;;  %v2643_v56 = vcombine.low %v2587_v39, %v2619_v23  ;;  %v2755_v13 = vrot.slane %v2747_v7, %v9970_v1  ;;  %v2644_v63 = vcombine.high %v2587_v39, %v2619_v23 }
 0x461   : > { %v8237_v35 = vcombine.low %v2315_v53, %v2322_v18  ;;  %v8239_v22 = vcombine.high %v2315_v53, %v2322_v18  ;;  %v8241_v15 = vcombine.low %v2331_v20, %v2338_v10  ;;  %v8243_v45 = vcombine.high %v2331_v20, %v2338_v10 }
 0x462   : > { %v2467_v30 = vrot.slane %v2459_v0, %v9970_v1  ;;  %v2474_v43 = vrot.slane %v2460_v4, %v9970_v1  ;;  %v2779_v12 = vcombine.low %v2723_v8, %v2755_v13  ;;  %v2780_v48 = vcombine.high %v2723_v8, %v2755_v13 }
 0x463   : > { %v2795_v49 = vrot.slane %v8237_v35, %v9955_v42  ;;  %v2811_v54 = vrot.slane %v8239_v22, %v9955_v42  ;;  %v2827_v27 = vrot.slane %v8241_v15, %v9955_v42  ;;  %v2843_v21 = vrot.slane %v8243_v45, %v9955_v42 }
 0x464   : > { %v8245_v32 = vcombine.low %v2451_v24, %v2458_v25  ;;  %v3059_v2 = vpack.c.bf16 %v2779_v12, %v2643_v56  ;;  %v3061_v46 = vpack.c.bf16 %v2780_v48, %v2644_v63  ;;  %v8247_v55 = vcombine.high %v2451_v24, %v2458_v25 }
 0x465   : > { %v8249_v5 = vcombine.low %v2467_v30, %v2474_v43  ;;  %v8251_v16 = vcombine.high %v2467_v30, %v2474_v43  ;;  %v2851_v60 = vcombine.low %v2795_v49, %v2811_v54  ;;  %v2883_v58 = vcombine.low %v2827_v27, %v2843_v21 }
 0x466   : > { %8632 = vmatprep.subr.bf16.mxu1 %v3059_v2  ;;  %8640 = vmatprep.subr.bf16.mxu0 %v3061_v46  ;;  %v2931_v31 = vrot.slane %v8245_v32, %v9955_v42  ;;  %v2947_v17 = vrot.slane %v8247_v55, %v9955_v42  ;;  %v2580_v37 = vcombine.high %v10742_v62, %v10745_v9 }
 0x467   : > { %8633 = vmatpush3.bf16.msra.mxu1 %v3059_v2  ;;  %8641 = vmatpush3.bf16.msra.mxu0 %v3061_v46  ;;  %v2963_v47 = vrot.slane %v8249_v5, %v9955_v42  ;;  %v2859_v50 = vrot.slane %v2851_v60, %v9970_v1  ;;  %v2891_v3 = vrot.slane %v2883_v58, %v9970_v1 }
 0x468   : > { %v2979_v6 = vrot.slane %v8251_v16, %v9955_v42  ;;  %v2987_v51 = vcombine.low %v2931_v31, %v2947_v17  ;;  %v2612_v52 = vcombine.high %v10748_v33, %v10751_v59  ;;  %v2594_v28 = vrot.slane %v2580_v37, %v9970_v1 }
 0x469   : > { %v2915_v41 = vcombine.low %v2859_v50, %v2891_v3  ;;  %v2916_v14 = vcombine.high %v2859_v50, %v2891_v3  ;;  %v2716_v11 = vcombine.high %v10756_v29, %v10759_v40  ;;  %v2748_v62 = vcombine.high %v10773_v57, %v10776_v38 }
 0x46a   : > { %v3019_v19 = vcombine.low %v2963_v47, %v2979_v6  ;;  %v2995_v26 = vrot.slane %v2987_v51, %v9970_v1  ;;  %v2626_v34 = vrot.slane %v2612_v52, %v9970_v1  ;;  %v2852_v57 = vcombine.high %v2795_v49, %v2811_v54 }
 0x46b   : > { %v2730_v33 = vrot.slane %v2716_v11, %v9970_v1  ;;  %v2762_v59 = vrot.slane %v2748_v62, %v9970_v1  ;;  %v2884_v38 = vcombine.high %v2827_v27, %v2843_v21  ;;  %v2988_v24 = vcombine.high %v2931_v31, %v2947_v17 }
 0x46c   : > { %v3027_v44 = vrot.slane %v3019_v19, %v9970_v1  ;;  %v2645_v18 = vcombine.low %v2594_v28, %v2626_v34  ;;  %v2646_v20 = vcombine.high %v2594_v28, %v2626_v34  ;;  %v2866_v36 = vrot.slane %v2852_v57, %v9970_v1 }
 0x46d   : > { %v2781_v39 = vcombine.low %v2730_v33, %v2762_v59  ;;  %v2782_v23 = vcombine.high %v2730_v33, %v2762_v59  ;;  %v2898_v0 = vrot.slane %v2884_v38, %v9970_v1  ;;  %v3020_v4 = vcombine.high %v2963_v47, %v2979_v6 }
 0x46e   : > { %v3051_v9 = vcombine.low %v2995_v26, %v3027_v44  ;;  %v3052_v53 = vcombine.high %v2995_v26, %v3027_v44  ;;  %v3002_v7 = vrot.slane %v2988_v24, %v9970_v1 }
 0x46f   : > { %v10818_v29 = vpack.c.bf16 %v2781_v39, %v2645_v18  ;;  %v10820_v40 = vpack.c.bf16 %v2782_v23, %v2646_v20  ;;  %v2917_v8 = vcombine.low %v2866_v36, %v2898_v0  ;;  %v3034_v35 = vrot.slane %v3020_v4, %v9970_v1 }
 0x470   : > { %v3060_v10 = vpack.c.bf16 %v3051_v9, %v2915_v41  ;;  %v3062_v61 = vpack.c.bf16 %v3052_v53, %v2916_v14  ;;  %v2918_v45 = vcombine.high %v2866_v36, %v2898_v0 }
 0x471   : > { %v3053_v22 = vcombine.low %v3002_v7, %v3034_v35  ;;  %v3054_v25 = vcombine.high %v3002_v7, %v3034_v35 }
 0x472   : > { %8634 = vmatprep.subr.bf16.mxu1 %v3060_v10  ;;  %8642 = vmatprep.subr.bf16.mxu0 %v3062_v61 }
 0x473   : > { %8635 = vmatpush3.bf16.msra.mxu1 %v3060_v10  ;;  %8643 = vmatpush3.bf16.msra.mxu0 %v3062_v61  ;;  %v10828_v15 = vpack.c.bf16 %v3053_v22, %v2917_v8  ;;  %v10830_v56 = vpack.c.bf16 %v3054_v25, %v2918_v45 }
 0x474   : > { %8648 = vmatprep.subr.bf16.mxu1 %v10818_v29  ;;  %8656 = vmatprep.subr.bf16.mxu0 %v10820_v40 }
 0x4e1   : > { %v10832_v13 = vpop.f32.mrb[8].mxu0  ;;  %v10834_v63 = vpop.f32.mrb[4].mxu1 }
 0x4e2   : > { %v10836_v30 = vpop.f32.mrb[9].mxu0  ;;  %v10838_v43 = vpop.f32.mrb[5].mxu1  ;;  %v4963_v12 = vsel %vm4956_vm1, %v10832_v13, -inf  ;;  %v4987_v32 = vsel %vm4956_vm1, %v10834_v63, -inf }
 0x4e3   : > { %v10842_v48 = vpop.f32.mrb[6].mxu1  ;;  %4964 = vmax.xlane.f32.xlu0 %v4963_v12  ;;  %v10844_v49 = vpop.f32.mrb[10].mxu0  ;;  %v4957_v5 = vsel %vm4956_vm1, %v10836_v30, -inf  ;;  %v4981_v31 = vsel %vm4956_vm1, %v10838_v43, -inf }
 0x4e4   : > { %v10846_v54 = vpop.f32.mrb[11].mxu0  ;;  %v10848_v27 = vpop.f32.mrb[7].mxu1  ;;  %v4966_v21 = vsel %vm4956_vm1, %v10844_v49, -inf  ;;  %v4990_v2 = vsel %vm4956_vm1, %v10842_v48, -inf }
 0x4e5   : > { %4967 = vmax.xlane.f32.xlu1 %v4966_v21  ;;  %v4960_v58 = vsel %vm4956_vm1, %v10846_v54, -inf  ;;  %v4984_v17 = vsel %vm4956_vm1, %v10848_v27, -inf }
 0x4e7   : > { %4988 = vmax.xlane.f32.xlu0 %v4987_v32 }
 0x4e9   : > { %4991 = vmax.xlane.f32.xlu1 %v4990_v2  ;;  %v10856_v46 = vpop.f32.mrb[12].mxu0 }
 0x4ea   : > { %v10858_v55 = vpop.f32.mrb[13].mxu0  ;;  %v4975_v3 = vsel %vm4956_vm1, %v10856_v46, -inf }
 0x4eb   : > { %4958 = vmax.xlane.f32.xlu0 %v4957_v5  ;;  %v10862_v16 = vpop.f32.mrb[14].mxu0  ;;  %v4969_v9 = vsel %vm4956_vm1, %v10858_v55, -inf }
 0x4ec   : > { %v10864_v60 = vpop.f32.mrb[15].mxu0  ;;  %v4978_v37 = vsel %vm4956_vm1, %v10862_v16, -inf }
 0x4ed   : > { %4961 = vmax.xlane.f32.xlu1 %v4960_v58  ;;  %v4972_v36 = vsel %vm4956_vm1, %v10864_v60, -inf }
 0x4ef   : > { %4982 = vmax.xlane.f32.xlu0 %v4981_v31  ;;  %v1926_v31 = vpop.permute.xlu1 %1925 }
 0x4f1   : > { %4985 = vmax.xlane.f32.xlu1 %v4984_v17  ;;  %v10872_v47 = vpop.f32.mrb[16].mxu0 }
 0x4f2   : > { %v10874_v50 = vpop.f32.mrb[17].mxu0  ;;  %v4999_v24 = vsel %vm4956_vm1, %v10872_v47, -inf }
 0x4f3   : > { %4976 = vmax.xlane.f32.xlu0 %v4975_v3  ;;  %v10878_v6 = vpop.f32.mrb[18].mxu0  ;;  %v4993_v8 = vsel %vm4956_vm1, %v10874_v50, -inf  ;;  %v1936_v17 = vpop.permute.xlu1 %1935 }
 0x4f4   : > { %v10880_v51 = vpop.f32.mrb[19].mxu0  ;;  %v5002_v38 = vsel %vm4956_vm1, %v10878_v6, -inf  ;;  %v1924_v3 = vpop.permute.xlu0 %1923 }
 0x4f5   : > { %4979 = vmax.xlane.f32.xlu1 %v4978_v37  ;;  %v4996_v45 = vsel %vm4956_vm1, %v10880_v51, -inf }
 0x4f7   : > { %v1938_v37 = vpop.permute.xlu1 %1937 }
 0x501   : > { %v10884_v19 = vpop.f32.mrb[8].mxu1  ;;  %v10886_v52 = vpop.f32.mrb[20].mxu0 }
 0x502   : > { %v10888_v26 = vpop.f32.mrb[9].mxu1  ;;  %v10890_v28 = vpop.f32.mrb[21].mxu0  ;;  %v5011_v41 = vsel %vm4956_vm1, %v10884_v19, -inf  ;;  %v5023_v12 = vsel %vm4956_vm1, %v10886_v52, -inf }
 0x503   : > { %12113 = vst [vmem:[#allocation18_spill] sm:$0xff] %v10890_v28  ;;  %v10894_v44 = vpop.f32.mrb[10].mxu1  ;;  %5012 = vmax.xlane.f32.xlu0 %v5011_v41  ;;  %v10896_v14 = vpop.f32.mrb[22].mxu0  ;;  %v5005_v10 = vsel %vm4956_vm1, %v10888_v26, -inf  ;;  %v5017_v21 = vsel %vm4956_vm1, %v10890_v28, -inf }
 0x504   : > { %v10898_v34 = vpop.f32.mrb[11].mxu1  ;;  %v10900_v11 = vpop.f32.mrb[23].mxu0  ;;  %v5014_v62 = vsel %vm4956_vm1, %v10894_v44, -inf  ;;  %v5026_v0 = vsel %vm4956_vm1, %v10896_v14, -inf }
 0x505   : > { %5015 = vmax.xlane.f32.xlu1 %v5014_v62  ;;  %v5008_v53 = vsel %vm4956_vm1, %v10898_v34, -inf  ;;  %v5020_v4 = vsel %vm4956_vm1, %v10900_v11, -inf  ;;  %v1948_v41 = vpop.permute.xlu0 %1947  ;;  %v1950_v62 = vpop.permute.xlu1 %1949 }
 0x507   : > { %4970 = vmax.xlane.f32.xlu0 %v4969_v9 }
 0x509   : > { %v10908_v18 = vpop.f32.mrb[12].mxu1  ;;  %5009 = vmax.xlane.f32.xlu1 %v5008_v53  ;;  %v10910_v33 = vpop.f32.mrb[24].mxu0 }
 0x50a   : > { %12114 = vst [vmem:[#allocation17_spill] sm:$0xff] %v10908_v18  ;;  %12115 = vst [vmem:[#allocation19_spill] sm:$0xff] %v10910_v33  ;;  %v10912_v59 = vpop.f32.mrb[13].mxu1  ;;  %v10914_v20 = vpop.f32.mrb[25].mxu0  ;;  %v5035_v32 = vsel %vm4956_vm1, %v10908_v18, -inf  ;;  %v5047_v58 = vsel %vm4956_vm1, %v10910_v33, -inf }
 0x50b   : > { %12116 = vst [vmem:[#allocation20_spill] sm:$0xff] %v10914_v20  ;;  %v10918_v61 = vpop.f32.mrb[14].mxu1  ;;  %5006 = vmax.xlane.f32.xlu0 %v5005_v10  ;;  %v10920_v39 = vpop.f32.mrb[26].mxu0  ;;  %v5029_v35 = vsel %vm4956_vm1, %v10912_v59, -inf  ;;  %v5041_v2 = vsel %vm4956_vm1, %v10914_v20, -inf }
 0x50c   : > { %12117 = vst [vmem:[#allocation21_spill] sm:$0xff] %v10920_v39  ;;  %v10922_v23 = vpop.f32.mrb[15].mxu1  ;;  %v10924_v57 = vpop.f32.mrb[27].mxu0  ;;  %v5038_v22 = vsel %vm4956_vm1, %v10918_v61, -inf  ;;  %v5050_v25 = vsel %vm4956_vm1, %v10920_v39, -inf }
 0x50d   : > { %12118 = vst [vmem:[#allocation22_spill] sm:$0xff] %v10924_v57  ;;  %5003 = vmax.xlane.f32.xlu1 %v5002_v38  ;;  %v5032_v7 = vsel %vm4956_vm1, %v10922_v23, -inf  ;;  %v5044_v5 = vsel %vm4956_vm1, %v10924_v57, -inf  ;;  %v1960_v9 = vpop.permute.xlu0 %1959  ;;  %v1962_v53 = vpop.permute.xlu1 %1961  ;;  %v2140_v57 = vcombine.high %v1926_v31, %v1950_v62 }
 0x50f   : > { %4973 = vmax.xlane.f32.xlu0 %v4972_v36 }
 0x511   : > { %5027 = vmax.xlane.f32.xlu1 %v5026_v0  ;;  %v1928_v10 = vpop.permute.xlu0 %1927  ;;  %v10960_v38 = vpop.permute.xlu1 %1929  ;;  %v2019_v0 = vcombine.low %v1936_v17, %v1960_v9 }
 0x513   : > { %5000 = vmax.xlane.f32.xlu0 %v4999_v24  ;;  %v2003_v24 = vcombine.low %v1924_v3, %v1948_v41 }
 0x515   : > { %5021 = vmax.xlane.f32.xlu1 %v5020_v4  ;;  %v1940_v36 = vpop.permute.xlu0 %1939  ;;  %v2020_v4 = vcombine.high %v1936_v17, %v1960_v9 }
 0x517   : > { %4994 = vmax.xlane.f32.xlu0 %v4993_v8  ;;  %v10962_v8 = vpop.permute.xlu1 %1941 }
 0x519   : > { %5033 = vmax.xlane.f32.xlu1 %v5032_v7  ;;  %v2004_v7 = vcombine.high %v1924_v3, %v1948_v41 }
 0x51b   : > { %5030 = vmax.xlane.f32.xlu0 %v5029_v35  ;;  %v2027_v35 = vrot.slane %v2019_v0, %v9955_v42  ;;  %v1954_v33 = vpop.permute.xlu1 %1953 }
 0x51d   : > { %5039 = vmax.xlane.f32.xlu1 %v5038_v22  ;;  %v1952_v22 = vpop.permute.xlu0 %1951 }
 0x51f   : > { %4997 = vmax.xlane.f32.xlu0 %v4996_v45  ;;  %v2011_v45 = vrot.slane %v2003_v24, %v9955_v42 }
 0x521   : > { %5051 = vmax.xlane.f32.xlu1 %v5050_v25  ;;  %v2034_v25 = vrot.slane %v2020_v4, %v9955_v42  ;;  %v1964_v41 = vpop.permute.xlu0 %1963 }
 0x523   : > { %5024 = vmax.xlane.f32.xlu0 %v5023_v12  ;;  %v2155_v12 = vcombine.low %v1938_v37, %v1962_v53 }
 0x525   : > { %v2163_v3 = vrot.slane %v2155_v12, %v9955_v42  ;;  %v2275_v12 = vcombine.low %v1928_v10, %v1952_v22 }
 0x527   : > { %5018 = vmax.xlane.f32.xlu0 %v5017_v21  ;;  %v2018_v21 = vrot.slane %v2004_v7, %v9955_v42 }
 0x529   : > { %v2083_v17 = vcombine.low %v2018_v21, %v2034_v25  ;;  %v2084_v9 = vcombine.high %v2018_v21, %v2034_v25  ;;  %v1966_v25 = vpop.permute.xlu1 %1965  ;;  %v2292_v21 = vcombine.high %v1940_v36, %v1964_v41 }
 0x52a   : > { %v2427_v39 = vcombine.low %v10962_v8, %v1966_v25 }
 0x52b   : > { %5036 = vmax.xlane.f32.xlu0 %v5035_v32  ;;  %v2067_v32 = vcombine.low %v2011_v45, %v2027_v35 }
 0x52d   : > { %v10970_v0 = vrot.slane %v2067_v32, %v9970_v1 }
 0x52f   : > { %5042 = vmax.xlane.f32.xlu0 %v5041_v2  ;;  %v2068_v2 = vcombine.high %v2011_v45, %v2027_v35  ;;  %v2154_v35 = vrot.slane %v2140_v57, %v9955_v42  ;;  %v2412_v57 = vcombine.high %v10960_v38, %v1954_v33 }
 0x531   : > { %v10973_v24 = vrot.slane %v2068_v2, %v9970_v1 }
 0x533   : > { %5045 = vmax.xlane.f32.xlu0 %v5044_v5  ;;  %v2139_v5 = vcombine.low %v1926_v31, %v1950_v62  ;;  %v10979_v31 = vrot.slane %v2083_v17, %v9970_v1  ;;  %v10982_v62 = vrot.slane %v2084_v9, %v9970_v1 }
 0x535   : > { %v2147_v4 = vrot.slane %v2139_v5, %v9955_v42 }
 0x537   : > { %5048 = vmax.xlane.f32.xlu0 %v5047_v58  ;;  %v2156_v58 = vcombine.high %v1938_v37, %v1962_v53  ;;  %v2291_v37 = vcombine.low %v1940_v36, %v1964_v41  ;;  %v2203_v53 = vcombine.low %v2147_v4, %v2163_v3  ;;  %v2204_v45 = vcombine.high %v2147_v4, %v2163_v3 }
 0x538   : > { %v2283_v4 = vrot.slane %v2275_v12, %v9955_v42  ;;  %v2435_v12 = vrot.slane %v2427_v39, %v9955_v42 }
 0x539   : > { %v2170_v7 = vrot.slane %v2156_v58, %v9955_v42  ;;  %v2276_v58 = vcombine.high %v1928_v10, %v1952_v22  ;;  %v2299_v17 = vrot.slane %v2291_v37, %v9955_v42  ;;  %v2211_v36 = vrot.slane %v2203_v53, %v9970_v1 }
 0x53a   : > { %v2218_v41 = vrot.slane %v2204_v45, %v9970_v1  ;;  %v2411_v10 = vcombine.low %v10960_v38, %v1954_v33  ;;  %v2428_v22 = vcombine.high %v10962_v8, %v1966_v25 }
 0x53b   : > { %v2219_v2 = vcombine.low %v2154_v35, %v2170_v7  ;;  %v2220_v5 = vcombine.high %v2154_v35, %v2170_v7  ;;  %v2306_v7 = vrot.slane %v2292_v21, %v9955_v42  ;;  %v2290_v53 = vrot.slane %v2276_v58, %v9955_v42 }
 0x53c   : > { %v2339_v45 = vcombine.low %v2283_v4, %v2299_v17  ;;  %v2340_v32 = vcombine.high %v2283_v4, %v2299_v17  ;;  %v8230_v20 = vcombine.low %v2211_v36, %v2218_v41  ;;  %v8232_v18 = vcombine.high %v2211_v36, %v2218_v41 }
 0x53d   : > { %v2227_v37 = vrot.slane %v2219_v2, %v9970_v1  ;;  %v2234_v9 = vrot.slane %v2220_v5, %v9970_v1  ;;  %v2355_v25 = vcombine.low %v2290_v53, %v2306_v7  ;;  %v2356_v2 = vcombine.high %v2290_v53, %v2306_v7 }
 0x53e   : > { %v2419_v5 = vrot.slane %v2411_v10, %v9955_v42  ;;  %v2442_v33 = vrot.slane %v2428_v22, %v9955_v42  ;;  %v11012_v39 = vrot.slane %v2339_v45, %v9970_v1 }
 0x53f   : > { %v8234_v4 = vcombine.low %v2227_v37, %v2234_v9  ;;  %v11022_v53 = vrot.slane %v2355_v25, %v9970_v1 }
 0x540   : > { %v2476_v36 = vcombine.high %v2419_v5, %v2435_v12 }
 0x570   : > { %v4965_v35 = vpop.xlane.xlu0 %4964 }
 0x571   : > { %v5055_v3 = vsub.f32 %v10832_v13, %v4965_v35  ;;  %v2426_v13 = vrot.slane %v2412_v57, %v9955_v42  ;;  %v11019_v57 = vrot.slane %v8230_v20, %v9955_v42 }
 0x572   : > { %v4968_v21 = vpop.xlane.xlu1 %4967 }
 0x573   : > { %v5089_v28 = vmul.f32 1.442695, %v5055_v3  ;;  %v5056_v8 = vsub.f32 %v10844_v49, %v4968_v21  ;;  %v11015_v3 = vrot.slane %v2340_v32, %v9970_v1  ;;  %v2475_v49 = vcombine.low %v2419_v5, %v2435_v12 }
 0x574   : > { %v4989_v38 = vpop.xlane.xlu0 %4988  ;;  %v2491_v22 = vcombine.low %v2426_v13, %v2442_v33  ;;  %v11026_v12 = vrot.slane %v2356_v2, %v9970_v1  ;;  %v11033_v21 = vrot.slane %v8232_v18, %v9955_v42 }
 0x575   : > { %9094 = vpow2.f32 %v5089_v28  ;;  %v5091_v58 = vmul.f32 1.442695, %v5056_v8  ;;  %v5063_v17 = vsub.f32 %v10834_v63, %v4989_v38  ;;  %v8236_v28 = vcombine.high %v2227_v37, %v2234_v9 }
 0x576   : > { %v4992_v41 = vpop.xlane.xlu1 %4991  ;;  %v2492_v63 = vcombine.high %v2426_v13, %v2442_v33  ;;  %v2483_v20 = vrot.slane %v2475_v49, %v9970_v1  ;;  %v2490_v9 = vrot.slane %v2476_v36, %v9970_v1  ;;  %v2499_v5 = vrot.slane %v2491_v22, %v9970_v1 }
 0x577   : > { %9096 = vpow2.f32 %v5091_v58  ;;  %v5105_v7 = vmul.f32 1.442695, %v5063_v17  ;;  %v5064_v10 = vsub.f32 %v10842_v48, %v4992_v41  ;;  %v8238_v48 = vcombine.low %v11012_v39, %v11015_v3 }
 0x578   : > { %v4959_v35 = vpop.xlane.xlu0 %4958  ;;  %v11040_v2 = vrot.slane %v8236_v28, %v9955_v42  ;;  %v2506_v33 = vrot.slane %v2492_v63, %v9970_v1  ;;  %v8240_v13 = vcombine.high %v11012_v39, %v11015_v3  ;;  %v8242_v17 = vcombine.low %v11022_v53, %v11026_v12 }
 0x579   : > { %9098 = vpow2.f32 %v5105_v7  ;;  %v5107_v32 = vmul.f32 1.442695, %v5064_v10  ;;  %v5053_v45 = vsub.f32 %v10836_v30, %v4959_v35  ;;  %v11037_v30 = vrot.slane %v8234_v4, %v9955_v42 }
 0x57a   : > { %v4962_v37 = vpop.xlane.xlu1 %4961  ;;  %v8244_v49 = vcombine.high %v11022_v53, %v11026_v12  ;;  %v8246_v36 = vcombine.low %v2483_v20, %v2490_v9  ;;  %v8248_v10 = vcombine.high %v2483_v20, %v2490_v9  ;;  %v8250_v28 = vcombine.low %v2499_v5, %v2506_v33 }
 0x57b   : > { %9100 = vpow2.f32 %v5107_v32  ;;  %v5085_v8 = vmul.f32 1.442695, %v5053_v45  ;;  %v5054_v25 = vsub.f32 %v10846_v54, %v4962_v37  ;;  %v11048_v54 = vrot.slane %v8238_v48, %v9955_v42 }
 0x57c   : > { %v4983_v38 = vpop.xlane.xlu0 %4982  ;;  %v12120_v35 = vcombine.high %v10970_v0, %v10973_v24  ;;  %v11073_v48 = vrot.slane %v8246_v36, %v9955_v42  ;;  %v2763_v36 = vcombine.low %v11037_v30, %v11040_v2 }
 0x57d   : > { %9102 = vpow2.f32 %v5085_v8  ;;  %v5087_v18 = vmul.f32 1.442695, %v5054_v25  ;;  %v5061_v58 = vsub.f32 %v10838_v43, %v4983_v38  ;;  %v12119_v43 = vcombine.low %v10970_v0, %v10973_v24 }
 0x57e   : > { %v4986_v41 = vpop.xlane.xlu1 %4985  ;;  %v11069_v53 = vrot.slane %v12120_v35, %v9955_v42  ;;  %v12121_v0 = vcombine.low %v10979_v31, %v10982_v62  ;;  %v11093_v38 = vrot.slane %v8248_v10, %v9955_v42  ;;  %v11131_v35 = vrot.slane %v2763_v36, %v9970_v1 }
 0x57f   : > { %v11054_v4 = vpop.eup %9094  ;;  %9104 = vpow2.f32 %v5087_v18  ;;  %v5101_v7 = vmul.f32 1.442695, %v5061_v58  ;;  %v5062_v39 = vsub.f32 %v10848_v27, %v4986_v41  ;;  %v11061_v3 = vrot.slane %v12119_v43, %v9955_v42 }
 0x580   : > { %v4977_v22 = vpop.xlane.xlu0 %4976  ;;  %v5155_v63 = vsel %vm4956_vm1, %v11054_v4, 0.0  ;;  %v8252_v27 = vcombine.high %v2499_v5, %v2506_v33  ;;  %v11081_v24 = vrot.slane %v12121_v0, %v9955_v42  ;;  %v12122_v5 = vcombine.high %v10979_v31, %v10982_v62 }
 0x581   : > { %v9097_v32 = vpop.eup %9096  ;;  %9106 = vpow2.f32 %v5101_v7  ;;  %v5103_v45 = vmul.f32 1.442695, %v5062_v39  ;;  %v5059_v12 = vsub.f32 %v10856_v46, %v4977_v22  ;;  %5156 = vadd.xlane.f32.xlu0 %v5155_v63  ;;  %v2731_v58 = vcombine.low %v11019_v57, %v11033_v21 }
 0x582   : > { %v4980_v20 = vpop.xlane.xlu1 %4979  ;;  %v5158_v9 = vsel %vm4956_vm1, %v9097_v32, 0.0  ;;  %v5246_v37 = vpack.c.bf16 %v9097_v32, %v11054_v4  ;;  %v11090_v33 = vrot.slane %v12122_v5, %v9955_v42  ;;  %v11104_v41 = vrot.slane %v8250_v28, %v9955_v42 }
 0x583   : > { %v11083_v8 = vpop.eup %9098  ;;  %9108 = vpow2.f32 %v5103_v45  ;;  %v5097_v25 = vmul.f32 1.442695, %v5059_v12  ;;  %v5060_v46 = vsub.f32 %v10862_v16, %v4980_v20  ;;  %5159 = vadd.xlane.f32.xlu1 %v5158_v9  ;;  %v11107_v31 = vrot.slane %v8252_v27, %v9955_v42 }
 0x584   : > { %v5179_v18 = vsel %vm4956_vm1, %v11083_v8, 0.0  ;;  %v11110_v4 = vrot.slane %v8240_v13, %v9955_v42  ;;  %v11113_v7 = vrot.slane %v8242_v17, %v9955_v42  ;;  %v11120_v28 = vrot.slane %v8244_v49, %v9955_v42 }
 0x585   : > { %v11101_v16 = vpop.eup %9100  ;;  %9110 = vpow2.f32 %v5097_v25  ;;  %v5099_v62 = vmul.f32 1.442695, %v5060_v46  ;;  %5180 = vadd.xlane.f32.xlu0 %v5179_v18  ;;  %v2595_v22 = vcombine.low %v11061_v3, %v11069_v53  ;;  %v2627_v13 = vcombine.low %v11081_v24, %v11090_v33 }
 0x586   : > { %v5182_v39 = vsel %vm4956_vm1, %v11101_v16, 0.0  ;;  %v5250_v43 = vpack.c.bf16 %v11101_v16, %v11083_v8  ;;  %v11128_v63 = vrot.slane %v2731_v58, %v9970_v1  ;;  %v3003_v49 = vcombine.low %v11073_v48, %v11093_v38 }
 0x587   : > { %v9103_v10 = vpop.eup %9102  ;;  %9112 = vpow2.f32 %v5099_v62  ;;  %5183 = vadd.xlane.f32.xlu1 %v5182_v39  ;;  %v3035_v27 = vcombine.low %v11104_v41, %v11107_v31  ;;  %v2867_v20 = vcombine.low %v11048_v54, %v11110_v4  ;;  %v11141_v0 = vrot.slane %v2595_v22, %v9970_v1 }
 0x588   : > { %v5149_v17 = vsel %vm4956_vm1, %v9103_v10, 0.0  ;;  %v11144_v25 = vrot.slane %v2627_v13, %v9970_v1  ;;  %v2899_v46 = vcombine.low %v11113_v7, %v11120_v28  ;;  %v2783_v18 = vcombine.low %v11128_v63, %v11131_v35 }
 0x589   : > { %v9105_v32 = vpop.eup %9104  ;;  %5150 = vadd.xlane.f32.xlu0 %v5149_v17  ;;  %v11153_v58 = vrot.slane %v3003_v49, %v9970_v1  ;;  %v11157_v62 = vrot.slane %v3035_v27, %v9970_v1  ;;  %v2732_v39 = vcombine.high %v11019_v57, %v11033_v21  ;;  %v11166_v17 = vrot.slane %v2867_v20, %v9970_v1 }
 0x58a   : > { %v5152_v45 = vsel %vm4956_vm1, %v9105_v32, 0.0  ;;  %v5245_v12 = vpack.c.bf16 %v9105_v32, %v9103_v10  ;;  %v2764_v10 = vcombine.high %v11037_v30, %v11040_v2  ;;  %v2647_v57 = vcombine.low %v11141_v0, %v11144_v25 }
 0x58b   : > { %v9107_v9 = vpop.eup %9106  ;;  %5153 = vadd.xlane.f32.xlu1 %v5152_v45  ;;  %v11176_v21 = vrot.slane %v2899_v46, %v9970_v1  ;;  %v11188_v32 = vrot.slane %v2732_v39, %v9970_v1 }
 0x58c   : > { %8636 = vmatprep.mubr.msk.bf16.mxu1 %vm4956_vm1, %v5245_v12  ;;  %v5173_v5 = vsel %vm4956_vm1, %v9107_v9, 0.0  ;;  %v11191_v27 = vrot.slane %v2764_v10, %v9970_v1 }
 0x58d   : > { %v9109_v36 = vpop.eup %9108  ;;  %8637 = vmatmul.mubr.msk.bf16.vlgmr.msra.gmra.mrb[16].mxu1 %vm4956_vm1, %v5246_v37  ;;  %5174 = vadd.xlane.f32.xlu0 %v5173_v5  ;;  %v2596_v37 = vcombine.high %v11061_v3, %v11069_v53  ;;  %v3067_v3 = vpack.c.bf16 %v2783_v18, %v2647_v57  ;;  %v3055_v53 = vcombine.low %v11153_v58, %v11157_v62 }
 0x58e   : > { %8649 = vmatpush3.bf16.msra.mxu1 %v10818_v29  ;;  %v5176_v22 = vsel %vm4956_vm1, %v9109_v36, 0.0  ;;  %v5249_v13 = vpack.c.bf16 %v9109_v36, %v9107_v9  ;;  %v2628_v29 = vcombine.high %v11081_v24, %v11090_v33  ;;  %v2919_v9 = vcombine.low %v11166_v17, %v11176_v21 }
 0x58f   : > { %v11170_v49 = vpop.eup %9110  ;;  %8650 = vmatprep.subr.bf16.mxu1 %v10828_v15  ;;  %5177 = vadd.xlane.f32.xlu1 %v5176_v22  ;;  %v11197_v33 = vrot.slane %v2596_v37, %v9970_v1 }
 0x590   : > { %8652 = vmatprep.mubr.msk.bf16.mxu1 %vm4956_vm1, %v5249_v13  ;;  %v5167_v30 = vsel %vm4956_vm1, %v11170_v49, 0.0  ;;  %v5013_v45 = vpop.xlane.xlu0 %5012  ;;  %v11205_v46 = vrot.slane %v2628_v29, %v9970_v1  ;;  %v3068_v36 = vpack.c.bf16 %v3055_v53, %v2919_v9  ;;  %v3004_v9 = vcombine.high %v11073_v48, %v11093_v38 }
 0x591   : > { %v11183_v2 = vpop.eup %9112  ;;  %5168 = vadd.xlane.f32.xlu0 %v5167_v30  ;;  %v5071_v20 = vsub.f32 %v10884_v19, %v5013_v45  ;;  %v2785_v19 = vcombine.low %v11188_v32, %v11191_v27 }
 0x592   : > { %8651 = vmatpush3.bf16.msra.mxu1 %v10828_v15  ;;  %v5170_v24 = vsel %vm4956_vm1, %v11183_v2, 0.0  ;;  %v5248_v12 = vpack.c.bf16 %v11183_v2, %v11170_v49  ;;  %v5016_v15 = vpop.xlane.xlu1 %5015  ;;  %v2649_v13 = vcombine.low %v11197_v33, %v11205_v46  ;;  %v2648_v49 = vcombine.high %v11141_v0, %v11144_v25 }
 0x593   : > { %8664 = vmatprep.subr.bf16.mxu1 %v3067_v3  ;;  %5171 = vadd.xlane.f32.xlu1 %v5170_v24  ;;  %v5121_v5 = vmul.f32 1.442695, %v5071_v20  ;;  %v5072_v18 = vsub.f32 %v10894_v44, %v5016_v15 }
 0x594   : > { %v4971_v39 = vpop.xlane.xlu0 %4970  ;;  %v11218_v16 = vpack.c.bf16 %v2785_v19, %v2649_v13  ;;  %v2900_v19 = vcombine.high %v11113_v7, %v11120_v28 }
 0x595   : > { %8653 = vmatmul.mubr.msk.bf16.vlgmr.msra.gmra.mrb[20].mxu1 %vm4956_vm1, %v5250_v43  ;;  %9114 = vpow2.f32 %v5121_v5  ;;  %v5123_v10 = vmul.f32 1.442695, %v5072_v18  ;;  %v5057_v22 = vsub.f32 %v10858_v55, %v4971_v39 }
 0x596   : > { %8665 = vmatpush3.bf16.msra.mxu1 %v3067_v3  ;;  %v5010_v44 = vpop.xlane.xlu1 %5009  ;;  %v11250_v7 = vrot.slane %v2900_v19, %v9970_v1 }
 0x597   : > { %8666 = vmatprep.subr.bf16.mxu1 %v3068_v36  ;;  %9116 = vpow2.f32 %v5123_v10  ;;  %v5093_v37 = vmul.f32 1.442695, %v5057_v22  ;;  %v5070_v8 = vsub.f32 %v10898_v34, %v5010_v44  ;;  %v11240_v10 = vrot.slane %v3004_v9, %v9970_v1 }
 0x598   : > { %v5007_v43 = vpop.xlane.xlu0 %5006 }
 0x599   : > { %9118 = vpow2.f32 %v5093_v37  ;;  %v5119_v57 = vmul.f32 1.442695, %v5070_v8  ;;  %v5069_v29 = vsub.f32 %v10888_v26, %v5007_v43  ;;  %v3036_v26 = vcombine.high %v11104_v41, %v11107_v31 }
 0x59a   : > { %8667 = vmatpush3.bf16.msra.mxu1 %v3068_v36  ;;  %v5004_v55 = vpop.xlane.xlu1 %5003 }
 0x59b   : > { %8680 = vmatprep.subr.bf16.mxu1 %v11218_v16  ;;  %v5117_v30 = vmul.f32 1.442695, %v5069_v29  ;;  %9120 = vpow2.f32 %v5119_v57  ;;  %v5068_v3 = vsub.f32 %v10878_v6, %v5004_v55 }
 0x59c   : > { %v4974_v53 = vpop.xlane.xlu0 %4973 }
 0x59d   : > { %9122 = vpow2.f32 %v5117_v30  ;;  %v5058_v45 = vsub.f32 %v10864_v60, %v4974_v53  ;;  %v5115_v15 = vmul.f32 1.442695, %v5068_v3  ;;  %v2868_v60 = vcombine.high %v11048_v54, %v11110_v4 }
 0x59e   : > { %v11224_v34 = vpop.xlane.xlu1 %5027 }
 0x59f   : > { %v9115_v24 = vpop.eup %9114  ;;  %v5095_v20 = vmul.f32 1.442695, %v5058_v45  ;;  %v11247_v4 = vrot.slane %v2868_v60, %v9970_v1 }
 0x5a0   : > { %v5001_v5 = vpop.xlane.xlu0 %5000  ;;  %v5203_v18 = vsel %vm4956_vm1, %v9115_v24, 0.0 }
 0x5a1   : > { %v9117_v36 = vpop.eup %9116  ;;  %9124 = vpow2.f32 %v5095_v20  ;;  %v5067_v6 = vsub.f32 %v10872_v47, %v5001_v5  ;;  %5204 = vadd.xlane.f32.xlu0 %v5203_v18  ;;  %v11243_v47 = vrot.slane %v3036_v26, %v9970_v1  ;;  %v2921_v53 = vcombine.low %v11247_v4, %v11250_v7 }
 0x5a2   : > { %v11236_v39 = vpop.xlane.xlu1 %5021  ;;  %v5206_v48 = vsel %vm4956_vm1, %v9117_v36, 0.0  ;;  %v5254_v38 = vpack.c.bf16 %v9117_v36, %v9115_v24  ;;  %9126 = vpow2.f32 %v5115_v15  ;;  %v5076_v24 = vsub.f32 %v10896_v14, %v11224_v34 }
 0x5a3   : > { %v9119_v41 = vpop.eup %9118  ;;  %v5113_v31 = vmul.f32 1.442695, %v5067_v6  ;;  %5207 = vadd.xlane.f32.xlu1 %v5206_v48  ;;  %v3057_v8 = vcombine.low %v11240_v10, %v11243_v47 }
 0x5a4   : > { %v4995_v22 = vpop.xlane.xlu0 %4994  ;;  %v5161_v54 = vsel %vm4956_vm1, %v9119_v41, 0.0  ;;  %v5131_v6 = vmul.f32 1.442695, %v5076_v24 }
 0x5a5   : > { %9128 = vpow2.f32 %v5113_v31  ;;  %5162 = vadd.xlane.f32.xlu0 %v5161_v54  ;;  %v9121_v28 = vpop.eup %9120  ;;  %v5065_v43 = vsub.f32 %v10874_v50, %v4995_v22  ;;  %v3072_v9 = vpack.c.bf16 %v3057_v8, %v2921_v53  ;;  %v2920_v53 = vcombine.high %v11166_v17, %v11176_v21  ;;  %v12127_v17 = vld [vmem:[#allocation22_spill] sm:$0xff] }
 0x5a6   : > { %v5034_v13 = vpop.xlane.xlu1 %5033  ;;  %v5200_v19 = vsel %vm4956_vm1, %v9121_v28, 0.0 }
 0x5a7   : > { %v9123_v44 = vpop.eup %9122  ;;  %v5078_v37 = vsub.f32 %v10922_v23, %v5034_v13  ;;  %v5109_v26 = vmul.f32 1.442695, %v5065_v43  ;;  %v3056_v43 = vcombine.high %v11153_v58, %v11157_v62  ;;  %v2786_v62 = vcombine.high %v11188_v32, %v11191_v27 }
 0x5a8   : > { %v5031_v57 = vpop.xlane.xlu0 %5030  ;;  %v5197_v29 = vsel %vm4956_vm1, %v9123_v44, 0.0  ;;  %v5253_v55 = vpack.c.bf16 %v9121_v28, %v9123_v44  ;;  %v3058_v32 = vcombine.high %v11240_v10, %v11243_v47 }
 0x5a9   : > { %v5135_v30 = vmul.f32 1.442695, %v5078_v37  ;;  %v5077_v3 = vsub.f32 %v10912_v59, %v5031_v57  ;;  %5198 = vadd.xlane.f32.xlu0 %v5197_v29  ;;  %v3070_v58 = vpack.c.bf16 %v3056_v43, %v2920_v53 }
 0x5aa   : > { %8668 = vmatprep.mubr.msk.bf16.mxu1 %vm4956_vm1, %v5253_v55  ;;  %v5040_v45 = vpop.xlane.xlu1 %5039 }
 0x5ab   : > { %v9125_v23 = vpop.eup %9124  ;;  %v5133_v20 = vmul.f32 1.442695, %v5077_v3  ;;  %v5080_v50 = vsub.f32 %v10918_v61, %v5040_v45  ;;  %8669 = vmatmul.mubr.msk.bf16.vlgmr.msra.gmra.mrb[24].mxu1 %vm4956_vm1, %v5254_v38  ;;  %9130 = vpow2.f32 %v5135_v30  ;;  %v2784_v61 = vcombine.high %v11128_v63, %v11131_v35  ;;  %v12123_v38 = vld [vmem:[#allocation18_spill] sm:$0xff]  ;;  %v12125_v30 = vld [vmem:[#allocation20_spill] sm:$0xff] }
 0x5ac   : > { %8681 = vmatpush3.bf16.msra.mxu1 %v11218_v16  ;;  %v4998_v59 = vpop.xlane.xlu0 %4997  ;;  %v5164_v15 = vsel %vm4956_vm1, %v9125_v23, 0.0  ;;  %v5247_v5 = vpack.c.bf16 %v9125_v23, %v9119_v41  ;;  %v9127_v14 = vpop.eup %9126  ;;  %v5074_v16 = vsub.f32 %v10900_v11, %v11236_v39 }
 0x5ad   : > { %9132 = vpow2.f32 %v5133_v20  ;;  %v5139_v18 = vmul.f32 1.442695, %v5080_v50  ;;  %8682 = vmatprep.subr.bf16.mxu1 %v3072_v9  ;;  %v5066_v36 = vsub.f32 %v10880_v51, %v4998_v59  ;;  %5165 = vadd.xlane.f32.xlu1 %v5164_v15  ;;  %v5194_v48 = vsel %vm4956_vm1, %v9127_v14, 0.0  ;;  %v12126_v20 = vld [vmem:[#allocation21_spill] sm:$0xff] }
 0x5ae   : > { %8644 = vmatprep.mubr.msk.bf16.mxu0 %vm4956_vm1, %v5247_v5  ;;  %v5052_v57 = vpop.xlane.xlu1 %5051  ;;  %v2650_v15 = vcombine.high %v11197_v33, %v11205_v46  ;;  %v2922_v33 = vcombine.high %v11247_v4, %v11250_v7 }
 0x5af   : > { %v9129_v34 = vpop.eup %9128  ;;  %9134 = vpow2.f32 %v5139_v18  ;;  %v5111_v60 = vmul.f32 1.442695, %v5066_v36  ;;  %8645 = vmatmul.mubr.msk.bf16.vlgmr.msra.gmra.mrb[28].mxu0 %vm4956_vm1, %v5248_v12  ;;  %v3069_v12 = vpack.c.bf16 %v2784_v61, %v2648_v49  ;;  %v5084_v50 = vsub.f32 %v12126_v20, %v5052_v57 }
 0x5b0   : > { %9136 = vpow2.f32 %v5109_v26  ;;  %8657 = vmatpush3.bf16.msra.mxu0 %v10820_v40  ;;  %8683 = vmatpush3.bf16.msra.mxu1 %v3072_v9  ;;  %v5025_v51 = vpop.xlane.xlu0 %5024  ;;  %v5191_v63 = vsel %vm4956_vm1, %v9129_v34, 0.0  ;;  %v5252_v35 = vpack.c.bf16 %v9127_v14, %v9129_v34  ;;  %v5127_v40 = vmul.f32 1.442695, %v5074_v16  ;;  %v12128_v16 = vld [vmem:[#allocation19_spill] sm:$0xff] }
 0x5b1   : > { %9138 = vpow2.f32 %v5111_v60  ;;  %8658 = vmatprep.subr.bf16.mxu0 %v10830_v56  ;;  %v5075_v11 = vsub.f32 %v10886_v52, %v5025_v51  ;;  %5201 = vadd.xlane.f32.xlu1 %v5200_v19  ;;  %v5147_v14 = vmul.f32 1.442695, %v5084_v50  ;;  %v3073_v34 = vpack.c.bf16 %v2786_v62, %v2650_v15 }
 0x5b2   : > { %5192 = vadd.xlane.f32.xlu0 %v5191_v63  ;;  %9140 = vpow2.f32 %v5131_v6  ;;  %v3074_v10 = vpack.c.bf16 %v3058_v32, %v2922_v33 }
 0x5b3   : > { %v5129_v2 = vmul.f32 1.442695, %v5075_v11 }
 0x5b4   : > { %8659 = vmatpush3.bf16.msra.mxu0 %v10830_v56  ;;  %v5019_v39 = vpop.xlane.xlu0 %5018  ;;  %v12124_v56 = vld [vmem:[#allocation17_spill] sm:$0xff] }
 0x5b5   : > { %9142 = vpow2.f32 %v5129_v2  ;;  %8672 = vmatprep.subr.bf16.mxu0 %v3069_v12  ;;  %v5073_v41 = vsub.f32 %v12123_v38, %v5019_v39  ;;  %5195 = vadd.xlane.f32.xlu1 %v5194_v48  ;;  %v9131_v52 = vpop.eup %9130 }
 0x5b6   : > { %9144 = vpow2.f32 %v5127_v40  ;;  %v5224_v18 = vsel %vm4956_vm1, %v9131_v52, 0.0 }
 0x5b7   : > { %v11287_v31 = vpop.eup %9132  ;;  %v5125_v22 = vmul.f32 1.442695, %v5073_v41 }
 0x5b8   : > { %v5037_v0 = vpop.xlane.xlu0 %5036  ;;  %v5257_v25 = vpack.c.bf16 %v9131_v52, %v11287_v31  ;;  %v5221_v49 = vsel %vm4956_vm1, %v11287_v31, 0.0  ;;  %v12129_v52 = vmov 0  }
 0x5b9   : > { %v11290_v54 = vpop.eup %9134  ;;  %9146 = vpow2.f32 %v5125_v22  ;;  %v5079_v28 = vsub.f32 %v12124_v56, %v5037_v0 }
 0x5ba   : > { %v11293_v13 = vpop.eup %9136  ;;  %8684 = vmatprep.mubr.msk.bf16.mxu1 %vm4956_vm1, %v5257_v25  ;;  %v5230_v44 = vsel %vm4956_vm1, %v11290_v54, 0.0 }
 0x5bb   : > { %v9139_v37 = vpop.eup %9138  ;;  %v5137_v8 = vmul.f32 1.442695, %v5079_v28  ;;  %5231 = vadd.xlane.f32.xlu1 %v5230_v44  ;;  %v5185_v7 = vsel %vm4956_vm1, %v11293_v13, 0.0 }
 0x5bc   : > { %v5043_v29 = vpop.xlane.xlu0 %5042  ;;  %v5251_v55 = vpack.c.bf16 %v9139_v37, %v11293_v13  ;;  %v9141_v45 = vpop.eup %9140  ;;  %v5188_v23 = vsel %vm4956_vm1, %v9139_v37, 0.0 }
 0x5bd   : > { %9148 = vpow2.f32 %v5137_v8  ;;  %v5081_v3 = vsub.f32 %v12125_v30, %v5043_v29  ;;  %v5218_v46 = vsel %vm4956_vm1, %v9141_v45, 0.0 }
 0x5be   : > { %8660 = vmatprep.mubr.msk.bf16.mxu0 %vm4956_vm1, %v5251_v55 }
 0x5bf   : > { %v9143_v24 = vpop.eup %9142  ;;  %8661 = vmatmul.mubr.msk.bf16.vlgmr.msra.gmra.mrb[32].mxu0 %vm4956_vm1, %v5252_v35  ;;  %5189 = vadd.xlane.f32.xlu1 %v5188_v23  ;;  %v5141_v9 = vmul.f32 1.442695, %v5081_v3 }
 0x5c0   : > { %8673 = vmatpush3.bf16.msra.mxu0 %v3069_v12  ;;  %v5046_v26 = vpop.xlane.xlu0 %5045  ;;  %v5256_v59 = vpack.c.bf16 %v9141_v45, %v9143_v24  ;;  %v9145_v5 = vpop.eup %9144  ;;  %v5215_v48 = vsel %vm4956_vm1, %v9143_v24, 0.0 }
 0x5c1   : > { %8674 = vmatprep.subr.bf16.mxu0 %v3070_v58  ;;  %v5082_v21 = vsub.f32 %v12127_v17, %v5046_v26  ;;  %9150 = vpow2.f32 %v5141_v9  ;;  %v5212_v4 = vsel %vm4956_vm1, %v9145_v5, 0.0 }
 0x5c3   : > { %v9147_v36 = vpop.eup %9146  ;;  %v5143_v61 = vmul.f32 1.442695, %v5082_v21  ;;  %5225 = vadd.xlane.f32.xlu1 %v5224_v18 }
 0x5c4   : > { %8675 = vmatpush3.bf16.msra.mxu0 %v3070_v58  ;;  %v5049_v27 = vpop.xlane.xlu0 %5048  ;;  %v5255_v6 = vpack.c.bf16 %v9145_v5, %v9147_v36  ;;  %v5209_v31 = vsel %vm4956_vm1, %v9147_v36, 0.0 }
 0x5c5   : > { %9152 = vpow2.f32 %v5143_v61  ;;  %8688 = vmatprep.subr.bf16.mxu0 %v3073_v34  ;;  %v5083_v60 = vsub.f32 %v12128_v16, %v5049_v27 }
 0x5c6   : > { %8676 = vmatprep.mubr.msk.bf16.mxu0 %vm4956_vm1, %v5255_v6  ;;  %9154 = vpow2.f32 %v5147_v14 }
 0x5c7   : > { %v9149_v51 = vpop.eup %9148  ;;  %v5145_v19 = vmul.f32 1.442695, %v5083_v60  ;;  %8677 = vmatmul.mubr.msk.bf16.vlgmr.msra.gmra.mrb[36].mxu0 %vm4956_vm1, %v5256_v59  ;;  %5219 = vadd.xlane.f32.xlu1 %v5218_v46 }
 0x5c8   : > { %8689 = vmatpush3.bf16.msra.mxu0 %v3073_v34  ;;  %v5227_v47 = vsel %vm4956_vm1, %v9149_v51, 0.0  ;;  %v5258_v63 = vpack.c.bf16 %v11290_v54, %v9149_v51 }
 0x5c9   : > { %9156 = vpow2.f32 %v5145_v19  ;;  %8690 = vmatprep.subr.bf16.mxu0 %v3074_v10  ;;  %5228 = vadd.xlane.f32.xlu0 %v5227_v47 }
 0x5ca   : > { %8685 = vmatmul.mubr.msk.bf16.vlgmr.msra.gmra.mrb[28].mxu1 %vm4956_vm1, %v5258_v63 }
 0x5cb   : > { %5213 = vadd.xlane.f32.xlu1 %v5212_v4  ;;  %v9151_v35 = vpop.eup %9150 }
 0x5cc   : > { %8691 = vmatpush3.bf16.msra.mxu0 %v3074_v10  ;;  %v5233_v22 = vsel %vm4956_vm1, %v9151_v35, 0.0 }
 0x5cd   : > { %5186 = vadd.xlane.f32.xlu0 %v5185_v7 }
 0x5cf   : > { %v9153_v11 = vpop.eup %9152 }
 0x5d0   : > { %v5236_v2 = vsel %vm4956_vm1, %v9153_v11, 0.0  ;;  %v5259_v12 = vpack.c.bf16 %v9153_v11, %v9151_v35  ;;  %v9155_v40 = vpop.eup %9154 }
 0x5d1   : > { %5222 = vadd.xlane.f32.xlu0 %v5221_v49  ;;  %5237 = vadd.xlane.f32.xlu1 %v5236_v2  ;;  %v5242_v38 = vsel %vm4956_vm1, %v9155_v40, 0.0 }
 0x5d2   : > { %8692 = vmatprep.mubr.msk.bf16.mxu0 %vm4956_vm1, %v5259_v12 }
 0x5d3   : > { %v9157_v39 = vpop.eup %9156 }
 0x5d4   : > { %v5260_v41 = vpack.c.bf16 %v9155_v40, %v9157_v39  ;;  %v5239_v0 = vsel %vm4956_vm1, %v9157_v39, 0.0 }
 0x5d5   : > { %5216 = vadd.xlane.f32.xlu0 %v5215_v48  ;;  %5243 = vadd.xlane.f32.xlu1 %v5242_v38 }
 0x5d6   : > { %8693 = vmatmul.mubr.msk.bf16.vlgmr.msra.gmra.mrb[40].mxu0 %vm4956_vm1, %v5260_v41 }
 0x5d7   : > { %7429 = vmatprep.mubr.bf16.mxu0 %v12129_v52 }
 0x5d9   : > { %5210 = vadd.xlane.f32.xlu0 %v5209_v31 }
 0x5dd   : > { %5234 = vadd.xlane.f32.xlu0 %v5233_v22 }
 0x5e1   : > { %5240 = vadd.xlane.f32.xlu0 %v5239_v0 }
 0x60e   : > { %v5157_v54 = vpop.xlane.xlu0 %5156 }
 0x60f   : > { %9158 = vrcp.f32 %v5157_v54 }
 0x610   : > { %v5160_v25 = vpop.xlane.xlu1 %5159 }
 0x611   : > { %9160 = vrcp.f32 %v5160_v25 }
 0x612   : > { %v5181_v28 = vpop.xlane.xlu0 %5180 }
 0x613   : > { %9162 = vrcp.f32 %v5181_v28 }
 0x614   : > { %v5184_v56 = vpop.xlane.xlu1 %5183 }
 0x615   : > { %9164 = vrcp.f32 %v5184_v56 }
 0x616   : > { %v5151_v44 = vpop.xlane.xlu0 %5150 }
 0x617   : > { %9166 = vrcp.f32 %v5151_v44 }
 0x618   : > { %v5154_v13 = vpop.xlane.xlu1 %5153 }
 0x619   : > { %v9159_v20 = vpop.eup %9158 }
 0x61a   : > { %v5175_v8 = vpop.xlane.xlu0 %5174 }
 0x61b   : > { %9168 = vrcp.f32 %v5175_v8  ;;  %v9161_v50 = vpop.eup %9160 }
 0x61c   : > { %v5178_v37 = vpop.xlane.xlu1 %5177  ;;  %9170 = vrcp.f32 %v5154_v13 }
 0x61d   : > { %9172 = vrcp.f32 %v5178_v37  ;;  %v9163_v9 = vpop.eup %9162 }
 0x61e   : > { %v5169_v57 = vpop.xlane.xlu0 %5168 }
 0x61f   : > { %v9165_v59 = vpop.eup %9164  ;;  %9174 = vrcp.f32 %v5169_v57 }
 0x620   : > { %v5172_v43 = vpop.xlane.xlu1 %5171 }
 0x621   : > { %v9167_v17 = vpop.eup %9166  ;;  %9176 = vrcp.f32 %v5172_v43 }
 0x625   : > { %v9169_v15 = vpop.eup %9168 }
 0x626   : > { %v9171_v61 = vpop.eup %9170 }
 0x627   : > { %v9173_v16 = vpop.eup %9172 }
 0x629   : > { %v9175_v44 = vpop.eup %9174 }
 0x62b   : > { %v9177_v43 = vpop.eup %9176 }
 0x62e   : > { %v5205_v55 = vpop.xlane.xlu0 %5204 }
 0x62f   : > { %9178 = vrcp.f32 %v5205_v55 }
 0x630   : > { %v5208_v29 = vpop.xlane.xlu1 %5207 }
 0x631   : > { %9180 = vrcp.f32 %v5208_v29 }
 0x632   : > { %v5163_v3 = vpop.xlane.xlu0 %5162 }
 0x633   : > { %9182 = vrcp.f32 %v5163_v3 }
 0x636   : > { %v5199_v58 = vpop.xlane.xlu0 %5198 }
 0x637   : > { %9184 = vrcp.f32 %v5199_v58 }
 0x639   : > { %v9179_v29 = vpop.eup %9178 }
 0x63a   : > { %v5166_v30 = vpop.xlane.xlu1 %5165 }
 0x63b   : > { %9186 = vrcp.f32 %v5166_v30  ;;  %v9181_v55 = vpop.eup %9180 }
 0x63d   : > { %v9183_v30 = vpop.eup %9182 }
 0x63e   : > { %v5202_v53 = vpop.xlane.xlu1 %5201 }
 0x63f   : > { %v5193_v5 = vpop.xlane.xlu0 %5192  ;;  %9188 = vrcp.f32 %v5202_v53 }
 0x640   : > { %9190 = vrcp.f32 %v5193_v5 }
 0x641   : > { %v9185_v3 = vpop.eup %9184 }
 0x642   : > { %v5196_v26 = vpop.xlane.xlu1 %5195 }
 0x643   : > { %9192 = vrcp.f32 %v5196_v26 }
 0x648   : > { %v5232_v34 = vpop.xlane.xlu1 %5231 }
 0x649   : > { %9194 = vrcp.f32 %v5232_v34 }
 0x64c   : > { %v5190_v12 = vpop.xlane.xlu1 %5189 }
 0x64d   : > { %9196 = vrcp.f32 %v5190_v12 }
 0x650   : > { %v5226_v39 = vpop.xlane.xlu1 %5225 }
 0x651   : > { %9198 = vrcp.f32 %v5226_v39 }
 0x654   : > { %v5220_v38 = vpop.xlane.xlu1 %5219 }
 0x655   : > { %9200 = vrcp.f32 %v5220_v38 }
 0x656   : > { %v5229_v7 = vpop.xlane.xlu0 %5228 }
 0x657   : > { %9202 = vrcp.f32 %v5229_v7 }
 0x658   : > { %v5214_v0 = vpop.xlane.xlu1 %5213 }
 0x65a   : > { %v5187_v40 = vpop.xlane.xlu0 %5186 }
 0x65b   : > { %9204 = vrcp.f32 %v5187_v40 }
 0x65c   : > { %9206 = vrcp.f32 %v5214_v0 }
 0x65e   : > { %v5223_v48 = vpop.xlane.xlu0 %5222  ;;  %v5238_v37 = vpop.xlane.xlu1 %5237 }
 0x65f   : > { %9208 = vrcp.f32 %v5238_v37 }
 0x660   : > { %v8638_v45 = vpop.f32.mrb[16].mxu1  ;;  %9210 = vrcp.f32 %v5223_v48 }
 0x661   : > { %v5301_v23 = vpop.f32.mrb[17].mxu1  ;;  %v11339_v18 = vmul.f32 %v9159_v20, %v8638_v45  ;;  %v9187_v45 = vpop.eup %9186 }
 0x662   : > { %v8639_v24 = vpop.f32.mrb[18].mxu1  ;;  %v11343_v32 = vmul.f32 %v9167_v17, %v5301_v23  ;;  %v5217_v41 = vpop.xlane.xlu0 %5216 }
 0x663   : > { %v5304_v62 = vpop.f32.mrb[19].mxu1  ;;  %v11347_v60 = vmul.f32 %v9161_v50, %v8639_v24  ;;  %v5244_v23 = vpop.xlane.xlu1 %5243 }
 0x664   : > { %v11355_v10 = vmul.f32 %v9171_v61, %v5304_v62  ;;  %v9189_v24 = vpop.eup %9188  ;;  %9212 = vrcp.f32 %v5244_v23 }
 0x665   : > { %v9191_v20 = vpop.eup %9190  ;;  %9214 = vrcp.f32 %v5217_v41 }
 0x666   : > { %v5211_v28 = vpop.xlane.xlu0 %5210  ;;  %v9193_v50 = vpop.eup %9192 }
 0x667   : > { %v11371_v58 = vpop.eup %9194  ;;  %9216 = vrcp.f32 %v5211_v28 }
 0x668   : > { %v8654_v21 = vpop.f32.mrb[20].mxu1  ;;  %v9197_v62 = vpop.eup %9196 }
 0x669   : > { %v11341_v36 = vmul.f32 %v9163_v9, %v8654_v21  ;;  %v5411_v14 = vpop.f32.mrb[21].mxu1  ;;  %v11373_v26 = vpop.eup %9198 }
 0x66a   : > { %v11345_v27 = vmul.f32 %v9169_v15, %v5411_v14  ;;  %v8655_v6 = vpop.f32.mrb[22].mxu1  ;;  %v5235_v53 = vpop.xlane.xlu0 %5234 }
 0x66b   : > { %v6037_v33 = vcombine.low %v11339_v18, %v11341_v36  ;;  %v6038_v46 = vcombine.high %v11339_v18, %v11341_v36  ;;  %v11353_v51 = vmul.f32 %v9165_v59, %v8655_v6  ;;  %v5414_v19 = vpop.f32.mrb[23].mxu1  ;;  %9218 = vrcp.f32 %v5235_v53  ;;  %v11379_v17 = vpop.eup %9200 }
 0x66c   : > { %v5765_v47 = vcombine.low %v11343_v32, %v11345_v27  ;;  %v5766_v63 = vcombine.high %v11343_v32, %v11345_v27  ;;  %v11361_v4 = vmul.f32 %v9173_v16, %v5414_v19  ;;  %v11399_v61 = vpop.eup %9202 }
 0x66d   : > { %v6173_v35 = vcombine.low %v11347_v60, %v11353_v51  ;;  %v6174_v11 = vcombine.high %v11347_v60, %v11353_v51  ;;  %v6045_v59 = vrot.slane %v6037_v33, %v9955_v42  ;;  %v6052_v21 = vrot.slane %v6038_v46, %v9955_v42  ;;  %v9205_v27 = vpop.eup %9204 }
 0x66e   : > { %v5901_v49 = vcombine.low %v11355_v10, %v11361_v4  ;;  %v5902_v2 = vcombine.high %v11355_v10, %v11361_v4  ;;  %v5241_v9 = vpop.xlane.xlu0 %5240  ;;  %v5773_v15 = vrot.slane %v5765_v47, %v9955_v42  ;;  %v5780_v5 = vrot.slane %v5766_v63, %v9955_v42  ;;  %v11423_v51 = vpop.eup %9206 }
 0x66f   : > { %v11397_v14 = vrot.slane %v6173_v35, %v9955_v42  ;;  %9220 = vrcp.f32 %v5241_v9  ;;  %v11405_v18 = vrot.slane %v6174_v11, %v9955_v42  ;;  %v11429_v4 = vpop.eup %9208 }
 0x670   : > { %v11411_v36 = vrot.slane %v5901_v49, %v9955_v42  ;;  %v11417_v34 = vrot.slane %v5902_v2, %v9955_v42  ;;  %v11433_v40 = vpop.eup %9210 }
 0x67e   : > { %v8670_v31 = vpop.f32.mrb[24].mxu1 }
 0x67f   : > { %v5521_v22 = vpop.f32.mrb[25].mxu1  ;;  %v11419_v6 = vmul.f32 %v9179_v29, %v8670_v31  ;;  %v11435_v31 = vpop.eup %9212 }
 0x680   : > { %v8671_v25 = vpop.f32.mrb[26].mxu1  ;;  %v11421_v16 = vmul.f32 %v9185_v3, %v5521_v22 }
 0x681   : > { %v5524_v54 = vpop.f32.mrb[27].mxu1  ;;  %v11425_v19 = vmul.f32 %v9181_v55, %v8671_v25 }
 0x682   : > { %v8646_v56 = vpop.f32.mrb[28].mxu0  ;;  %v11427_v47 = vmul.f32 %v9189_v24, %v5524_v54 }
 0x683   : > { %v5356_v13 = vpop.f32.mrb[29].mxu0  ;;  %v5739_v60 = vmul.f32 %v9175_v44, %v8646_v56  ;;  %v9215_v56 = vpop.eup %9214 }
 0x684   : > { %v8647_v8 = vpop.f32.mrb[30].mxu0  ;;  %v5737_v63 = vmul.f32 %v9183_v30, %v5356_v13 }
 0x685   : > { %v5359_v57 = vpop.f32.mrb[31].mxu0  ;;  %v11431_v35 = vmul.f32 %v9177_v43, %v8647_v8  ;;  %v9217_v8 = vpop.eup %9216 }
 0x686   : > { %v5738_v39 = vmul.f32 %v9187_v45, %v5359_v57  ;;  %v11443_v30 = vpop.eup %9218 }
 0x692   : > { %v8662_v32 = vpop.f32.mrb[32].mxu0 }
 0x693   : > { %v5747_v33 = vmul.f32 %v9191_v20, %v8662_v32  ;;  %v5466_v46 = vpop.f32.mrb[33].mxu0 }
 0x694   : > { %v5745_v7 = vmul.f32 %v9205_v27, %v5466_v46  ;;  %v8663_v10 = vpop.f32.mrb[34].mxu0  ;;  %v11449_v27 = vpop.eup %9220 }
 0x695   : > { %v6053_v11 = vcombine.low %v5739_v60, %v5747_v33  ;;  %v6054_v49 = vcombine.high %v5739_v60, %v5747_v33  ;;  %v5748_v2 = vmul.f32 %v9193_v50, %v8663_v10  ;;  %v5469_v12 = vpop.f32.mrb[35].mxu0 }
 0x696   : > { %v5781_v48 = vcombine.low %v5737_v63, %v5745_v7  ;;  %v5782_v38 = vcombine.high %v5737_v63, %v5745_v7  ;;  %v5746_v41 = vmul.f32 %v9197_v62, %v5469_v12 }
 0x697   : > { %v6061_v22 = vrot.slane %v6053_v11, %v9955_v42  ;;  %v6068_v0 = vrot.slane %v6054_v49, %v9955_v42  ;;  %v6189_v25 = vcombine.low %v11431_v35, %v5748_v2  ;;  %v6190_v54 = vcombine.high %v11431_v35, %v5748_v2 }
 0x698   : > { %v5789_v28 = vrot.slane %v5781_v48, %v9955_v42  ;;  %v5796_v13 = vrot.slane %v5782_v38, %v9955_v42  ;;  %v5917_v44 = vcombine.low %v5738_v39, %v5746_v41  ;;  %v5918_v37 = vcombine.high %v5738_v39, %v5746_v41 }
 0x699   : > { %v6101_v43 = vcombine.low %v6045_v59, %v6061_v22  ;;  %v6102_v57 = vcombine.high %v6045_v59, %v6061_v22  ;;  %v6117_v29 = vcombine.low %v6052_v21, %v6068_v0  ;;  %v6118_v55 = vcombine.high %v6052_v21, %v6068_v0 }
 0x69a   : > { %v5829_v3 = vcombine.low %v5773_v15, %v5789_v28  ;;  %v5830_v53 = vcombine.high %v5773_v15, %v5789_v28  ;;  %v5845_v45 = vcombine.low %v5780_v5, %v5796_v13  ;;  %v5846_v23 = vcombine.high %v5780_v5, %v5796_v13  ;;  %v8678_v24 = vpop.f32.mrb[36].mxu0 }
 0x69b   : > { %v6109_v20 = vrot.slane %v6101_v43, %v9970_v1  ;;  %v6116_v50 = vrot.slane %v6102_v57, %v9970_v1  ;;  %v6125_v62 = vrot.slane %v6117_v29, %v9970_v1  ;;  %v6132_v9 = vrot.slane %v6118_v55, %v9970_v1  ;;  %v5576_v32 = vpop.f32.mrb[37].mxu0 }
 0x69c   : > { %v5837_v59 = vrot.slane %v5829_v3, %v9970_v1  ;;  %v5844_v21 = vrot.slane %v5830_v53, %v9970_v1  ;;  %v5853_v15 = vrot.slane %v5845_v45, %v9970_v1  ;;  %v5860_v5 = vrot.slane %v5846_v23, %v9970_v1  ;;  %v8679_v60 = vpop.f32.mrb[38].mxu0 }
 0x69d   : > { %v8333_v33 = vcombine.low %v6109_v20, %v6116_v50  ;;  %v8335_v46 = vcombine.high %v6109_v20, %v6116_v50  ;;  %v8337_v63 = vcombine.low %v6125_v62, %v6132_v9  ;;  %v8339_v7 = vcombine.high %v6125_v62, %v6132_v9  ;;  %v5579_v10 = vpop.f32.mrb[39].mxu0  ;;  %v8686_v35 = vpop.f32.mrb[28].mxu1 }
 0x69e   : > { %v8317_v11 = vcombine.low %v5837_v59, %v5844_v21  ;;  %v8319_v49 = vcombine.high %v5837_v59, %v5844_v21  ;;  %v8321_v2 = vcombine.low %v5853_v15, %v5860_v5  ;;  %v8323_v12 = vcombine.high %v5853_v15, %v5860_v5  ;;  %v5631_v39 = vpop.f32.mrb[29].mxu1 }
 0x69f   : > { %v11456_v48 = vrot.slane %v8333_v33, %v9955_v42  ;;  %v11459_v38 = vrot.slane %v8335_v46, %v9955_v42  ;;  %v11462_v41 = vrot.slane %v8337_v63, %v9955_v42  ;;  %v11465_v22 = vrot.slane %v8339_v7, %v9955_v42  ;;  %v8687_v0 = vpop.f32.mrb[30].mxu1 }
 0x6a0   : > { %v11468_v28 = vrot.slane %v8317_v11, %v9955_v42  ;;  %v11471_v13 = vrot.slane %v8319_v49, %v9955_v42  ;;  %v11474_v43 = vrot.slane %v8321_v2, %v9955_v42  ;;  %v11477_v57 = vrot.slane %v8323_v12, %v9955_v42  ;;  %v5634_v29 = vpop.f32.mrb[31].mxu1 }
 0x6a1   : > { %v6197_v55 = vrot.slane %v6189_v25, %v9955_v42  ;;  %v6204_v3 = vrot.slane %v6190_v54, %v9955_v42  ;;  %v5925_v53 = vrot.slane %v5917_v44, %v9955_v42  ;;  %v5932_v45 = vrot.slane %v5918_v37, %v9955_v42 }
 0x6a2   : > { %v11483_v23 = vmul.f32 %v9215_v56, %v8678_v24  ;;  %v11485_v20 = vmul.f32 %v9217_v8, %v5576_v32  ;;  %v11488_v50 = vmul.f32 %v11379_v17, %v8679_v60  ;;  %v11491_v62 = vmul.f32 %v11423_v51, %v5579_v10 }
 0x6a3   : > { %v6237_v9 = vcombine.low %v11397_v14, %v6197_v55  ;;  %v6238_v25 = vcombine.high %v11397_v14, %v6197_v55  ;;  %v6253_v54 = vcombine.low %v11405_v18, %v6204_v3  ;;  %v6254_v44 = vcombine.high %v11405_v18, %v6204_v3 }
 0x6a4   : > { %v5965_v37 = vcombine.low %v11411_v36, %v5925_v53  ;;  %v5966_v56 = vcombine.high %v11411_v36, %v5925_v53  ;;  %v5981_v8 = vcombine.low %v11417_v34, %v5932_v45  ;;  %v5982_v17 = vcombine.high %v11417_v34, %v5932_v45 }
 0x6a5   : > { %v6245_v24 = vrot.slane %v6237_v9, %v9970_v1  ;;  %v6252_v51 = vrot.slane %v6238_v25, %v9970_v1  ;;  %v6261_v32 = vrot.slane %v6253_v54, %v9970_v1  ;;  %v6268_v14 = vrot.slane %v6254_v44, %v9970_v1 }
 0x6a6   : > { %v5973_v59 = vrot.slane %v5965_v37, %v9970_v1  ;;  %v5980_v18 = vrot.slane %v5966_v56, %v9970_v1  ;;  %v5989_v21 = vrot.slane %v5981_v8, %v9970_v1  ;;  %v5996_v36 = vrot.slane %v5982_v17, %v9970_v1 }
 0x6a7   : > { %v8341_v15 = vcombine.low %v6245_v24, %v6252_v51  ;;  %v8343_v5 = vcombine.high %v6245_v24, %v6252_v51  ;;  %v8345_v60 = vcombine.low %v6261_v32, %v6268_v14  ;;  %v8347_v34 = vcombine.high %v6261_v32, %v6268_v14 }
 0x6a8   : > { %v8325_v33 = vcombine.low %v5973_v59, %v5980_v18  ;;  %v8327_v46 = vcombine.high %v5973_v59, %v5980_v18  ;;  %v8329_v63 = vcombine.low %v5989_v21, %v5996_v36  ;;  %v8331_v7 = vcombine.high %v5989_v21, %v5996_v36 }
 0x6a9   : > { %v11510_v10 = vrot.slane %v8341_v15, %v9955_v42  ;;  %v11513_v11 = vrot.slane %v8343_v5, %v9955_v42  ;;  %v11516_v49 = vrot.slane %v8345_v60, %v9955_v42  ;;  %v11519_v2 = vrot.slane %v8347_v34, %v9955_v42  ;;  %v8694_v12 = vpop.f32.mrb[40].mxu0 }
 0x6aa   : > { %v11522_v55 = vrot.slane %v8325_v33, %v9955_v42  ;;  %v11525_v3 = vrot.slane %v8327_v46, %v9955_v42  ;;  %v11528_v53 = vrot.slane %v8329_v63, %v9955_v42  ;;  %v11531_v45 = vrot.slane %v8331_v7, %v9955_v42  ;;  %v5686_v9 = vpop.f32.mrb[41].mxu0 }
 0x6ab   : > { %v5759_v25 = vmul.f32 %v11399_v61, %v8686_v35  ;;  %v5757_v54 = vmul.f32 %v11433_v40, %v5631_v39  ;;  %v5760_v44 = vmul.f32 %v11371_v58, %v8687_v0  ;;  %v5758_v37 = vmul.f32 %v11373_v26, %v5634_v29  ;;  %v8695_v56 = vpop.f32.mrb[42].mxu0 }
 0x6ac   : > { %v5763_v8 = vmul.f32 %v11449_v27, %v8694_v12  ;;  %v5761_v17 = vmul.f32 %v11443_v30, %v5686_v9  ;;  %v5764_v24 = vmul.f32 %v11435_v31, %v8695_v56  ;;  %v6645_v51 = vcombine.low %v11456_v48, %v11459_v38  ;;  %v11542_v32 = vpop.f32.mrb[43].mxu0 }
 0x6ad   : > { %v6069_v61 = vcombine.low %v11419_v6, %v5759_v25  ;;  %v6070_v40 = vcombine.high %v11419_v6, %v5759_v25  ;;  %v5797_v58 = vcombine.low %v11421_v16, %v5757_v54  ;;  %v5798_v26 = vcombine.high %v11421_v16, %v5757_v54 }
 0x6ae   : > { %v6205_v35 = vcombine.low %v11425_v19, %v5760_v44  ;;  %v6206_v27 = vcombine.high %v11425_v19, %v5760_v44  ;;  %v5933_v30 = vcombine.low %v11427_v47, %v5758_v37  ;;  %v5934_v31 = vcombine.high %v11427_v47, %v5758_v37 }
 0x6af   : > { %v6077_v39 = vrot.slane %v6069_v61, %v9955_v42  ;;  %v6084_v0 = vrot.slane %v6070_v40, %v9955_v42  ;;  %v5805_v29 = vrot.slane %v5797_v58, %v9955_v42  ;;  %v5812_v6 = vrot.slane %v5798_v26, %v9955_v42 }
 0x6b0   : > { %v6213_v14 = vrot.slane %v6205_v35, %v9955_v42  ;;  %v11558_v16 = vrot.slane %v6206_v27, %v9955_v42  ;;  %v11561_v59 = vrot.slane %v5933_v30, %v9955_v42  ;;  %v11564_v19 = vrot.slane %v5934_v31, %v9955_v42 }
 0x6b1   : > { %v6085_v47 = vcombine.low %v11483_v23, %v5763_v8  ;;  %v6086_v18 = vcombine.high %v11483_v23, %v5763_v8  ;;  %v5813_v21 = vcombine.low %v11485_v20, %v5761_v17  ;;  %v5814_v36 = vcombine.high %v11485_v20, %v5761_v17 }
 0x6b2   : > { %v6221_v15 = vcombine.low %v11488_v50, %v5764_v24  ;;  %v6222_v5 = vcombine.high %v11488_v50, %v5764_v24  ;;  %v11573_v60 = vrot.slane %v6645_v51, %v9970_v1  ;;  %v6677_v34 = vcombine.low %v11462_v41, %v11465_v22 }
 0x6b3   : > { %v6093_v33 = vrot.slane %v6085_v47, %v9955_v42  ;;  %v6100_v46 = vrot.slane %v6086_v18, %v9955_v42  ;;  %v5821_v23 = vrot.slane %v5813_v21, %v9955_v42  ;;  %v5828_v63 = vrot.slane %v5814_v36, %v9955_v42 }
 0x6b4   : > { %v6229_v20 = vrot.slane %v6221_v15, %v9955_v42  ;;  %v6236_v7 = vrot.slane %v6222_v5, %v9955_v42  ;;  %v11584_v50 = vrot.slane %v6677_v34, %v9970_v1  ;;  %v6781_v12 = vcombine.low %v11510_v10, %v11513_v11 }
 0x6b5   : > { %v6133_v9 = vcombine.low %v6077_v39, %v6093_v33  ;;  %v6134_v25 = vcombine.high %v6077_v39, %v6093_v33  ;;  %v6149_v54 = vcombine.low %v6084_v0, %v6100_v46  ;;  %v6150_v44 = vcombine.high %v6084_v0, %v6100_v46 }
 0x6b6   : > { %v5861_v37 = vcombine.low %v5805_v29, %v5821_v23  ;;  %v5862_v56 = vcombine.high %v5805_v29, %v5821_v23  ;;  %v5877_v8 = vcombine.low %v5812_v6, %v5828_v63  ;;  %v5878_v17 = vcombine.high %v5812_v6, %v5828_v63 }
 0x6b7   : > { %v6141_v24 = vrot.slane %v6133_v9, %v9970_v1  ;;  %v6148_v51 = vrot.slane %v6134_v25, %v9970_v1  ;;  %v6157_v61 = vrot.slane %v6149_v54, %v9970_v1  ;;  %v6164_v40 = vrot.slane %v6150_v44, %v9970_v1 }
 0x6b8   : > { %v5869_v58 = vrot.slane %v5861_v37, %v9970_v1  ;;  %v5876_v26 = vrot.slane %v5862_v56, %v9970_v1  ;;  %v5885_v35 = vrot.slane %v5877_v8, %v9970_v1  ;;  %v5892_v27 = vrot.slane %v5878_v17, %v9970_v1 }
 0x6b9   : > { %v8334_v30 = vcombine.low %v6141_v24, %v6148_v51  ;;  %v8336_v31 = vcombine.high %v6141_v24, %v6148_v51  ;;  %v8338_v39 = vcombine.low %v6157_v61, %v6164_v40  ;;  %v8340_v0 = vcombine.high %v6157_v61, %v6164_v40 }
 0x6ba   : > { %v8318_v29 = vcombine.low %v5869_v58, %v5876_v26  ;;  %v8320_v6 = vcombine.high %v5869_v58, %v5876_v26  ;;  %v8322_v47 = vcombine.low %v5885_v35, %v5892_v27  ;;  %v8324_v18 = vcombine.high %v5885_v35, %v5892_v27 }
 0x6bb   : > { %v11597_v21 = vrot.slane %v8334_v30, %v9955_v42  ;;  %v11600_v36 = vrot.slane %v8336_v31, %v9955_v42  ;;  %v11603_v15 = vrot.slane %v8338_v39, %v9955_v42  ;;  %v11606_v5 = vrot.slane %v8340_v0, %v9955_v42 }
 0x6bc   : > { %v11609_v34 = vrot.slane %v8318_v29, %v9955_v42  ;;  %v11612_v33 = vrot.slane %v8320_v6, %v9955_v42  ;;  %v11615_v46 = vrot.slane %v8322_v47, %v9955_v42  ;;  %v11618_v23 = vrot.slane %v8324_v18, %v9955_v42 }
 0x6bd   : > { %v6269_v63 = vcombine.low %v6213_v14, %v6229_v20  ;;  %v6270_v9 = vcombine.high %v6213_v14, %v6229_v20  ;;  %v6285_v25 = vcombine.low %v11558_v16, %v6236_v7  ;;  %v6286_v54 = vcombine.high %v11558_v16, %v6236_v7 }
 0x6be   : > { %v6710_v44 = vcombine.high %v11573_v60, %v11584_v50  ;;  %v11625_v37 = vrot.slane %v6781_v12, %v9970_v1  ;;  %v6813_v56 = vcombine.low %v11516_v49, %v11519_v2  ;;  %v5762_v8 = vmul.f32 %v11429_v4, %v11542_v32 }
 0x6bf   : > { %v6277_v17 = vrot.slane %v6269_v63, %v9970_v1  ;;  %v6284_v14 = vrot.slane %v6270_v9, %v9970_v1  ;;  %v6293_v20 = vrot.slane %v6285_v25, %v9970_v1  ;;  %v6300_v16 = vrot.slane %v6286_v54, %v9970_v1 }
 0x6c0   : > { %v11636_v7 = vrot.slane %v6813_v56, %v9970_v1  ;;  %v5949_v12 = vcombine.low %v11491_v62, %v5762_v8  ;;  %v5950_v24 = vcombine.high %v11491_v62, %v5762_v8  ;;  %v6373_v51 = vcombine.low %v11468_v28, %v11471_v13 }
 0x6c1   : > { %v8342_v61 = vcombine.low %v6277_v17, %v6284_v14  ;;  %v8344_v4 = vcombine.high %v6277_v17, %v6284_v14  ;;  %v8346_v32 = vcombine.low %v6293_v20, %v6300_v16  ;;  %v8348_v40 = vcombine.high %v6293_v20, %v6300_v16 }
 0x6c2   : > { %v6846_v58 = vcombine.high %v11625_v37, %v11636_v7  ;;  %v5957_v26 = vrot.slane %v5949_v12, %v9955_v42  ;;  %v5964_v35 = vrot.slane %v5950_v24, %v9955_v42  ;;  %v11647_v27 = vrot.slane %v6373_v51, %v9970_v1 }
 0x6c3   : > { %v11650_v30 = vrot.slane %v8342_v61, %v9955_v42  ;;  %v11653_v62 = vrot.slane %v8344_v4, %v9955_v42  ;;  %v11656_v31 = vrot.slane %v8346_v32, %v9955_v42  ;;  %v11659_v39 = vrot.slane %v8348_v40, %v9955_v42 }
 0x6c4   : > { %v8896_v0 = vpack.i.bf16 %v6846_v58, %v6710_v44  ;;  %v5997_v29 = vcombine.low %v11561_v59, %v5957_v26  ;;  %v5998_v6 = vcombine.high %v11561_v59, %v5957_v26  ;;  %v6013_v47 = vcombine.low %v11564_v19, %v5964_v35 }
 0x6c5   : > { %v6014_v18 = vcombine.high %v11564_v19, %v5964_v35  ;;  %v6405_v63 = vcombine.low %v11474_v43, %v11477_v57  ;;  %v6509_v9 = vcombine.low %v11522_v55, %v11525_v3  ;;  %v6541_v25 = vcombine.low %v11528_v53, %v11531_v45 }
 0x6c6   : > { %8897 = vrot.lane.b32.xlu1 %v8896_v0, %s9503_s13  ;;  %v6005_v54 = vrot.slane %v5997_v29, %v9970_v1  ;;  %v6012_v44 = vrot.slane %v5998_v6, %v9970_v1  ;;  %v6021_v59 = vrot.slane %v6013_v47, %v9970_v1  ;;  %v6646_v19 = vcombine.high %v11456_v48, %v11459_v38 }
 0x6c7   : > { %v6028_v56 = vrot.slane %v6014_v18, %v9970_v1  ;;  %v11679_v8 = vrot.slane %v6405_v63, %v9970_v1  ;;  %v11682_v17 = vrot.slane %v6509_v9, %v9970_v1  ;;  %v11685_v14 = vrot.slane %v6541_v25, %v9970_v1 }
 0x6c8   : > { %v8326_v20 = vcombine.low %v6005_v54, %v6012_v44  ;;  %v8328_v16 = vcombine.high %v6005_v54, %v6012_v44  ;;  %v6660_v12 = vrot.slane %v6646_v19, %v9970_v1  ;;  %v6678_v24 = vcombine.high %v11462_v41, %v11465_v22  ;;  %v8999_v54 = vld [vmem:[#allocation7 + $0x8] sm:$0xff]  }
 0x6c9   : > { %v8330_v51 = vcombine.low %v6021_v59, %v6028_v56  ;;  %v8332_v48 = vcombine.high %v6021_v59, %v6028_v56  ;;  %v6438_v38 = vcombine.high %v11647_v27, %v11679_v8  ;;  %v6574_v61 = vcombine.high %v11682_v17, %v11685_v14 }
 0x6ca   : > { %v11695_v4 = vrot.slane %v8326_v20, %v9955_v42  ;;  %v11698_v32 = vrot.slane %v8328_v16, %v9955_v42  ;;  %v6692_v40 = vrot.slane %v6678_v24, %v9970_v1  ;;  %v6782_v58 = vcombine.high %v11510_v10, %v11513_v11  ;;  %v8998_v10 = vld [vmem:[#allocation7] sm:$0xff]  }
 0x6cb   : > { %v11704_v41 = vrot.slane %v8330_v51, %v9955_v42  ;;  %v11707_v22 = vrot.slane %v8332_v48, %v9955_v42  ;;  %v8911_v26 = vpack.i.bf16 %v6574_v61, %v6438_v38  ;;  %v6814_v35 = vcombine.high %v11516_v49, %v11519_v2  ;;  %8696 = vmatprep.subr.bf16.mxu1 %v8998_v10  ;;  %v9000_v51 = vld [vmem:[#allocation7 + $0x10] sm:$0xff]  }
 0x6cc   : > { %v6711_v0 = vcombine.low %v6660_v12, %v6692_v40  ;;  %v6796_v29 = vrot.slane %v6782_v58, %v9970_v1  ;;  %v6374_v6 = vcombine.high %v11468_v28, %v11471_v13  ;;  %v6406_v47 = vcombine.high %v11474_v43, %v11477_v57  ;;  %8697 = vmatpush3.bf16.msra.mxu1 %v8998_v10 }
 0x6cd   : > { %8912 = vrot.lane.b32.xlu0 %v8911_v26, %s9503_s13  ;;  %v6828_v11 = vrot.slane %v6814_v35, %v9970_v1  ;;  %v6510_v42 = vcombine.high %v11522_v55, %v11525_v3  ;;  %v6542_v49 = vcombine.high %v11528_v53, %v11531_v45  ;;  %v6712_v2 = vcombine.high %v6660_v12, %v6692_v40 }
 0x6ce   : > { %v6388_v18 = vrot.slane %v6374_v6, %v9970_v1  ;;  %v6420_v63 = vrot.slane %v6406_v47, %v9970_v1  ;;  %v6661_v28 = vcombine.low %v11597_v21, %v11600_v36  ;;  %v6693_v13 = vcombine.low %v11603_v15, %v11606_v5  ;;  %8698 = vmatprep.subr.bf16.mxu1 %v8999_v54 }
 0x6cf   : > { %v6847_v43 = vcombine.low %v6796_v29, %v6828_v11  ;;  %v6524_v57 = vrot.slane %v6510_v42, %v9970_v1  ;;  %v6556_v55 = vrot.slane %v6542_v49, %v9970_v1  ;;  %v6848_v3 = vcombine.high %v6796_v29, %v6828_v11  ;;  %v9001_v11 = vld [vmem:[#allocation7 + $0x18] sm:$0xff]  }
 0x6d0   : > { %v6440_v53 = vcombine.high %v6388_v18, %v6420_v63  ;;  %v6439_v45 = vcombine.low %v6388_v18, %v6420_v63  ;;  %v6669_v9 = vrot.slane %v6661_v28, %v9970_v1  ;;  %v6701_v25 = vrot.slane %v6693_v13, %v9970_v1  ;;  %8699 = vmatpush3.bf16.msra.mxu1 %v8999_v54 }
 0x6d1   : > { %v8901_v44 = vpack.i.bf16 %v6847_v43, %v6711_v0  ;;  %v6576_v59 = vcombine.high %v6524_v57, %v6556_v55  ;;  %v8906_v19 = vpack.i.bf16 %v6848_v3, %v6712_v2  ;;  %v6575_v56 = vcombine.low %v6524_v57, %v6556_v55  ;;  %8700 = vmatprep.subr.bf16.mxu1 %v9000_v51 }
 0x6d2   : > { %v6713_v20 = vcombine.low %v6669_v9, %v6701_v25  ;;  %v6797_v16 = vcombine.low %v11650_v30, %v11653_v62  ;;  %v6829_v12 = vcombine.low %v11656_v31, %v11659_v39  ;;  %v6389_v24 = vcombine.low %v11609_v34, %v11612_v33 }
 0x6d3   : > { %8902 = vrot.lane.b32.xlu1 %v8901_v44, %s9504_s12  ;;  %v8921_v48 = vpack.i.bf16 %v6576_v59, %v6440_v53  ;;  %v8916_v38 = vpack.i.bf16 %v6575_v56, %v6439_v45  ;;  %v6421_v61 = vcombine.low %v11615_v46, %v11618_v23  ;;  %v6525_v40 = vcombine.low %v11695_v4, %v11698_v32 }
 0x6d4   : > { %v6805_v58 = vrot.slane %v6797_v16, %v9970_v1  ;;  %v6837_v26 = vrot.slane %v6829_v12, %v9970_v1  ;;  %v6397_v35 = vrot.slane %v6389_v24, %v9970_v1  ;;  %v6557_v0 = vcombine.low %v11704_v41, %v11707_v22  ;;  %8701 = vmatpush3.bf16.msra.mxu1 %v9000_v51  ;;  %v9003_v16 = vld [vmem:[#allocation7 + $0x28] sm:$0xff]   ;;  %v9004_v24 = vld [vmem:[#allocation7 + $0x30] sm:$0xff]  }
 0x6d5   : > { %8922 = vrot.lane.b32.xlu0 %v8921_v48, %s9501_s11  ;;  %v6429_v29 = vrot.slane %v6421_v61, %v9970_v1  ;;  %v6533_v6 = vrot.slane %v6525_v40, %v9970_v1  ;;  %v6714_v47 = vcombine.high %v6669_v9, %v6701_v25  ;;  %v6662_v10 = vcombine.high %v11597_v21, %v11600_v36  ;;  %v9002_v25 = vld [vmem:[#allocation7 + $0x20] sm:$0xff]  }
 0x6d6   : > { %v6849_v42 = vcombine.low %v6805_v58, %v6837_v26  ;;  %v6565_v49 = vrot.slane %v6557_v0, %v9970_v1  ;;  %v6850_v2 = vcombine.high %v6805_v58, %v6837_v26  ;;  %v6694_v18 = vcombine.high %v11603_v15, %v11606_v5  ;;  %8702 = vmatprep.subr.bf16.mxu1 %v9001_v11 }
 0x6d7   : > { %8907 = vrot.lane.b32.xlu1 %v8906_v19, %s9501_s11  ;;  %v6441_v63 = vcombine.low %v6397_v35, %v6429_v29  ;;  %v6442_v28 = vcombine.high %v6397_v35, %v6429_v29  ;;  %v6676_v13 = vrot.slane %v6662_v10, %v9970_v1  ;;  %v6798_v43 = vcombine.high %v11650_v30, %v11653_v62 }
 0x6d8   : > { %v8926_v57 = vpack.i.bf16 %v6849_v42, %v6713_v20  ;;  %v6577_v21 = vcombine.low %v6533_v6, %v6565_v49  ;;  %v8931_v36 = vpack.i.bf16 %v6850_v2, %v6714_v47  ;;  %v6578_v55 = vcombine.high %v6533_v6, %v6565_v49  ;;  %8703 = vmatpush3.bf16.msra.mxu1 %v9001_v11 }
 0x6d9   : > { %v6708_v3 = vrot.slane %v6694_v18, %v9970_v1  ;;  %v6812_v53 = vrot.slane %v6798_v43, %v9970_v1  ;;  %v6830_v15 = vcombine.high %v11656_v31, %v11659_v39  ;;  %v6390_v5 = vcombine.high %v11609_v34, %v11612_v33  ;;  %8704 = vmatprep.subr.bf16.mxu1 %v9002_v25 }
 0x6da   : > { %v8941_v45 = vpack.i.bf16 %v6577_v21, %v6441_v63  ;;  %v8946_v9 = vpack.i.bf16 %v6578_v55, %v6442_v28  ;;  %v6422_v30 = vcombine.high %v11615_v46, %v11618_v23  ;;  %v6526_v62 = vcombine.high %v11695_v4, %v11698_v32 }
 0x6db   : > { %8917 = vrot.lane.b32.xlu1 %v8916_v38, %s9504_s12  ;;  %v6715_v54 = vcombine.low %v6676_v13, %v6708_v3  ;;  %v6844_v44 = vrot.slane %v6830_v15, %v9970_v1  ;;  %v6404_v31 = vrot.slane %v6390_v5, %v9970_v1  ;;  %v6558_v34 = vcombine.high %v11704_v41, %v11707_v22 }
 0x6dc   : > { %8942 = vrot.lane.b32.xlu0 %v8941_v45, %s9502_s15  ;;  %v6436_v33 = vrot.slane %v6422_v30, %v9970_v1  ;;  %v6540_v46 = vrot.slane %v6526_v62, %v9970_v1  ;;  %v6716_v23 = vcombine.high %v6676_v13, %v6708_v3  ;;  %v6845_v39 = vcombine.low %v11625_v37, %v11636_v7 }
 0x6dd   : > { %v6851_v4 = vcombine.low %v6812_v53, %v6844_v44  ;;  %v6572_v32 = vrot.slane %v6558_v34, %v9970_v1  ;;  %v6852_v59 = vcombine.high %v6812_v53, %v6844_v44  ;;  %v6709_v19 = vcombine.low %v11573_v60, %v11584_v50  ;;  %8705 = vmatpush3.bf16.msra.mxu1 %v9002_v25 }
 0x6de   : > { %v6443_v56 = vcombine.low %v6404_v31, %v6436_v33  ;;  %v6444_v41 = vcombine.high %v6404_v31, %v6436_v33  ;;  %v6437_v22 = vcombine.low %v11647_v27, %v11679_v8  ;;  %v6573_v20 = vcombine.low %v11682_v17, %v11685_v14  ;;  %8706 = vmatprep.subr.bf16.mxu1 %v9003_v16  ;;  %v9005_v27 = vld [vmem:[#allocation7 + $0x38] sm:$0xff]  }
 0x6df   : > { %8927 = vrot.lane.b32.xlu1 %v8926_v57, %s9502_s15  ;;  %v8936_v37 = vpack.i.bf16 %v6851_v4, %v6715_v54  ;;  %v6579_v7 = vcombine.low %v6540_v46, %v6572_v32  ;;  %v8961_v1 = vpack.i.bf16 %v6852_v59, %v6716_v23  ;;  %v6580_v12 = vcombine.high %v6540_v46, %v6572_v32  ;;  %s354_s15 = scalar_lea.vmem [#allocation11], %s8157_s29  ;;  %s8431_s29 = sshll.u32 %s9571_s28, 9 }
 0x6e0   : > { %8947 = vrot.lane.b32.xlu0 %v8946_v9, %s9500_s16  ;;  %s8035_s13 = sshll.u32 %s354_s15, 4  ;;  %s12016_s30 = scalar_lea.hbm %s12068_s7, %s8431_s29  ;;  %s12010_s13 = int_to_ptr.vmem [resolvable:$true] %s8035_s13 }
 0x6e1   : > { %v8951_v60 = vpack.i.bf16 %v6579_v7, %v6443_v56  ;;  %v8956_v50 = vpack.i.bf16 %v6580_v12, %v6444_v41  ;;  %8707 = vmatpush3.bf16.msra.mxu1 %v9003_v16  ;;  %s9408_s9 = scalar_lea.vmem %s12010_s13, 512  ;;  %s9507_s28 = smov [#allocation11]  }
 0x6e2   : > { %8708 = vmatprep.subr.bf16.mxu1 %v9004_v24  ;;  %p9409_p3 = scmp.ne.s32.totalorder %s12010_s13, %s9408_s9  ;;  %s9412_s23 = sshll.u32 %s9507_s28, 4  ;;  %s9413_s23 = int_to_ptr.vmem [resolvable:$false] %s9412_s23 }
 0x6e3   : > { %8932 = vrot.lane.b32.xlu1 %v8931_v36, %s9500_s16  ;;  %s9414_s14 = scalar_lea.vmem %s9413_s23, 1024  ;;  %p9415_p12 = scmp.lt.s32.totalorder %s12010_s13, %s9413_s23 }
 0x6e4   : > { %8952 = vrot.lane.b32.xlu0 %v8951_v60, %s9499_s1  ;;  %p9410_p5 = pnand %p9409_p3, %p9706_p10  ;;  %p9416_p2 = scmp.lt.s32.totalorder %s9414_s14, %s9408_s9 }
 0x6e5   : > { %8709 = vmatpush3.bf16.msra.mxu1 %v9004_v24 }
 0x6e6   : > { %8710 = vmatprep.subr.bf16.mxu1 %v9005_v27  ;;  %p9411_p7 = pneg %p9410_p5  ;;  %p9417_p1 = por %p9416_p2, %p9415_p12 }
 0x6e7   : > { %8937 = vrot.lane.b32.xlu1 %v8936_v37, %s9499_s1 }
 0x6e8   : > { %8957 = vrot.lane.b32.xlu0 %v8956_v50, %s9498_s17  ;;  %p9418_p13 = pnand %p9417_p1, %p9411_p7 }
 0x6e9   : > { %8711 = vmatpush3.bf16.msra.mxu1 %v9005_v27 }
 0x6eb   : > { %8962 = vrot.lane.b32.xlu1 %v8961_v1, %s9498_s17 }
 0x738   : > { %v8898_v8 = vpop.permute.xlu1 %8897 }
 0x739   : > { %v8900_v58 = vunpack.i.h.bf16 %v8898_v8  ;;  %v8899_v26 = vunpack.i.l.bf16 %v8898_v8 }
 0x73b   : > { %v6968_v49 = vsel %vm4515_vm0, %v6845_v39, %v8900_v58  ;;  %v6967_v2 = vsel %vm4515_vm0, %v6709_v19, %v8899_v26  ;;  %v8349_v26 = vld [vmem:[%s12066_s5 + $0x4] ss:$0 sm:$0xff] }
 0x73f   : > { %v8913_v17 = vpop.permute.xlu0 %8912 }
 0x740   : > { %v8914_v40 = vunpack.i.l.bf16 %v8913_v17  ;;  %v8915_v35 = vunpack.i.h.bf16 %v8913_v17 }
 0x742   : > { %v6965_v10 = vsel %vm4515_vm0, %v6437_v22, %v8914_v40  ;;  %v6966_v18 = vsel %vm4515_vm0, %v6573_v20, %v8915_v35 }
 0x745   : > { %v8903_v14 = vpop.permute.xlu1 %8902 }
 0x746   : > { %v8905_v11 = vunpack.i.h.bf16 %v8903_v14  ;;  %v8904_v42 = vunpack.i.l.bf16 %v8903_v14 }
 0x747   : > { %v8923_v48 = vpop.permute.xlu0 %8922 }
 0x748   : > { %v8924_v28 = vunpack.i.l.bf16 %v8923_v48  ;;  %v8925_v36 = vunpack.i.h.bf16 %v8923_v48  ;;  %v6971_v5 = vsel %vm4956_vm1, %v6967_v2, %v8904_v42  ;;  %v6972_v45 = vsel %vm4956_vm1, %v6968_v49, %v8905_v11  ;;  %v9262_v11 = vld [vmem:[%s9764_s21] sm:$0xff]  ;;  %v9263_v2 = vld [vmem:[%s9764_s21 + $0x8] sm:$0xff] }
 0x749   : > { %v8908_v51 = vpop.permute.xlu1 %8907 }
 0x74a   : > { %v8909_v55 = vunpack.i.l.bf16 %v8908_v51  ;;  %v8910_v9 = vunpack.i.h.bf16 %v8908_v51 }
 0x74c   : > { %v6976_v39 = vsel %vm6973_vm2, %v6971_v5, %v8909_v55  ;;  %v6977_v16 = vsel %vm6973_vm2, %v6972_v45, %v8910_v9  ;;  %v9009_v55 = vld [vmem:[#allocation8 + $0x8] ss:$16 sps:$4 sm:$0xff]   ;;  %v9012_v5 = vld [vmem:[#allocation8 + $0x20] ss:$16 sps:$4 sm:$0xff]  }
 0x74d   : > { %v8918_v38 = vpop.permute.xlu1 %8917  ;;  %v9015_v45 = vld [vmem:[#allocation8 + $0x28] ss:$16 sps:$4 sm:$0xff]  }
 0x74e   : > { %v8943_v61 = vpop.permute.xlu0 %8942  ;;  %v8919_v0 = vunpack.i.l.bf16 %v8918_v38  ;;  %v8920_v29 = vunpack.i.h.bf16 %v8918_v38 }
 0x74f   : > { %v8945_v43 = vunpack.i.h.bf16 %v8943_v61  ;;  %v8944_v57 = vunpack.i.l.bf16 %v8943_v61 }
 0x750   : > { %v6969_v63 = vsel %vm4956_vm1, %v6965_v10, %v8919_v0  ;;  %v6970_v13 = vsel %vm4956_vm1, %v6966_v18, %v8920_v29 }
 0x751   : > { %v8928_v6 = vpop.permute.xlu1 %8927  ;;  %v6974_v30 = vsel %vm6973_vm2, %v6969_v63, %v8924_v28  ;;  %v6975_v25 = vsel %vm6973_vm2, %v6970_v13, %v8925_v36  ;;  %v9264_v63 = vld [vmem:[%s9764_s21 + $0x10] sm:$0xff] }
 0x752   : > { %v8948_v47 = vpop.permute.xlu0 %8947  ;;  %v8929_v62 = vunpack.i.l.bf16 %v8928_v6  ;;  %v8930_v31 = vunpack.i.h.bf16 %v8928_v6  ;;  %v6979_v34 = vsel %vm6978_vm3, %v6974_v30, %v8944_v57  ;;  %v6980_v33 = vsel %vm6978_vm3, %v6975_v25, %v8945_v43  ;;  %v9265_v43 = vld [vmem:[%s9764_s21 + $0x18] sm:$0xff]  ;;  %v9008_v36 = vld [vmem:[#allocation8 + $0x4] ss:$16 sps:$4 sm:$0xff]   ;;  %s8022_s21 = scalar_lea.sflag [#allocation4], %s9758_s22 }
 0x753   : > { %v8950_v3 = vunpack.i.h.bf16 %v8948_v47  ;;  %v8949_v53 = vunpack.i.l.bf16 %v8948_v47  ;;  %7397 = vmatprep.subr.bf16.mxu0 %v9008_v36 }
 0x754   : > { %v6981_v37 = vsel %vm6978_vm3, %v6976_v39, %v8929_v62  ;;  %v6982_v12 = vsel %vm6978_vm3, %v6977_v16, %v8930_v31  ;;  %v9026_v16 = vld [vmem:[#allocation8 + $0x64] ss:$16 sps:$4 sm:$0xff]  }
 0x755   : > { %v8933_v21 = vpop.permute.xlu1 %8932  ;;  %v6984_v32 = vsel %vm6983_vm4, %v6979_v34, %v8949_v53  ;;  %v6985_v59 = vsel %vm6983_vm4, %v6980_v33, %v8950_v3  ;;  %v9011_v3 = vld [vmem:[#allocation8 + $0xc] ss:$16 sps:$4 sm:$0xff]   ;;  %v9014_v53 = vld [vmem:[#allocation8 + $0x24] ss:$16 sps:$4 sm:$0xff]  }
 0x756   : > { %v8953_v15 = vpop.permute.xlu0 %8952  ;;  %v8934_v46 = vunpack.i.l.bf16 %v8933_v21  ;;  %v8935_v4 = vunpack.i.h.bf16 %v8933_v21  ;;  %v9006_v21 = vld [vmem:[#allocation8] ss:$16 sps:$4 sm:$0xff]   ;;  %7450 = vmatprep.subr.bf16.mxu1 %v9011_v3 }
 0x757   : > { %v8955_v54 = vunpack.i.h.bf16 %v8953_v15  ;;  %v8954_v44 = vunpack.i.l.bf16 %v8953_v15  ;;  %v9017_v15 = vld [vmem:[#allocation8 + $0x2c] ss:$16 sps:$4 sm:$0xff]   ;;  %7398 = vmatpush1.bf16.msra.mxu0 %v9006_v21 }
 0x758   : > { %v6986_v60 = vsel %vm6983_vm4, %v6981_v37, %v8934_v46  ;;  %v6987_v8 = vsel %vm6983_vm4, %v6982_v12, %v8935_v4  ;;  %7399 = vmatprep.subr.bf16.mxu0 %v9014_v53  ;;  %v9024_v37 = vld [vmem:[#allocation8 + $0x60] ss:$16 sps:$4 sm:$0xff]   ;;  %v9032_v12 = vld [vmem:[#allocation8 + $0x84] ss:$16 sps:$4 sm:$0xff]  }
 0x759   : > { %v8938_v23 = vpop.permute.xlu1 %8937  ;;  %v6989_v7 = vsel %vm6988_vm5, %v6984_v32, %v8954_v44  ;;  %v6990_v1 = vsel %vm6988_vm5, %v6985_v59, %v8955_v54 }
 0x75a   : > { %v8958_v19 = vpop.permute.xlu0 %8957  ;;  %v8940_v56 = vunpack.i.h.bf16 %v8938_v23  ;;  %v8939_v41 = vunpack.i.l.bf16 %v8938_v23 }
 0x75b   : > { %v8960_v22 = vunpack.i.h.bf16 %v8958_v19  ;;  %v8959_v20 = vunpack.i.l.bf16 %v8958_v19  ;;  %7400 = vmatpush1.bf16.msra.mxu0 %v9012_v5 }
 0x75c   : > { %v6991_v48 = vsel %vm6988_vm5, %v6986_v60, %v8939_v41  ;;  %v6992_v38 = vsel %vm6988_vm5, %v6987_v8, %v8940_v56  ;;  %v9018_v56 = vld [vmem:[#allocation8 + $0x40] ss:$16 sps:$4 sm:$0xff]   ;;  %v9020_v41 = vld [vmem:[#allocation8 + $0x44] ss:$16 sps:$4 sm:$0xff]   ;;  %v9035_v60 = vld [vmem:[#allocation8 + $0x8c] ss:$16 sps:$4 sm:$0xff]  }
 0x75d   : > { %v8963_v50 = vpop.permute.xlu1 %8962  ;;  %v6994_v24 = vsel %vm6993_vm6, %v6989_v7, %v8959_v20  ;;  %v6995_v27 = vsel %vm6993_vm6, %v6990_v1, %v8960_v22  ;;  %v9021_v22 = vld [vmem:[#allocation8 + $0x48] ss:$16 sps:$4 sm:$0xff]   ;;  %v9023_v20 = vld [vmem:[#allocation8 + $0x4c] ss:$16 sps:$4 sm:$0xff]   ;;  %7401 = vmatprep.subr.bf16.mxu0 %v9020_v41  ;;  %v9057_v41 = vld [vmem:[#allocation10 + $0x80] sm:$0xff]  }
 0x75e   : > { %v8965_v17 = vunpack.i.h.bf16 %v8963_v50  ;;  %v8964_v14 = vunpack.i.l.bf16 %v8963_v50  ;;  %v6998_v51 = vpack.c.bf16 %v6995_v27, %v6994_v24  ;;  %v9029_v7 = vld [vmem:[#allocation8 + $0x6c] ss:$16 sps:$4 sm:$0xff]   ;;  %v9027_v1 = vld [vmem:[#allocation8 + $0x68] ss:$16 sps:$4 sm:$0xff]   ;;  %v9030_v50 = vld [vmem:[#allocation8 + $0x80] ss:$16 sps:$4 sm:$0xff]  }
 0x75f   : > { %7402 = vmatpush1.bf16.msra.mxu0 %v9018_v56  ;;  %v9033_v24 = vld [vmem:[#allocation8 + $0x88] ss:$16 sps:$4 sm:$0xff]   ;;  %v9038_v27 = vld [vmem:[#allocation8 + $0xa4] ss:$16 sps:$4 sm:$0xff]   ;;  %v9041_v8 = vld [vmem:[#allocation8 + $0xac] ss:$16 sps:$4 sm:$0xff]  }
 0x760   : > { %v6996_v61 = vsel %vm6993_vm6, %v6991_v48, %v8964_v14  ;;  %v6997_v40 = vsel %vm6993_vm6, %v6992_v38, %v8965_v17  ;;  %8712 = vmatprep.mubr.bf16.mxu1 %v6998_v51  ;;  %7403 = vmatprep.subr.bf16.mxu0 %v9026_v16  ;;  %v9036_v17 = vld [vmem:[#allocation8 + $0xa0] ss:$16 sps:$4 sm:$0xff]   ;;  %v9039_v14 = vld [vmem:[#allocation8 + $0xa8] ss:$16 sps:$4 sm:$0xff]   ;;  %v9044_v51 = vld [vmem:[#allocation8 + $0xc4] ss:$16 sps:$4 sm:$0xff]  }
 0x761   : > { %v6999_v58 = vpack.c.bf16 %v6997_v40, %v6996_v61  ;;  %v9047_v48 = vld [vmem:[#allocation8 + $0xcc] ss:$16 sps:$4 sm:$0xff]   ;;  %v9042_v38 = vld [vmem:[#allocation8 + $0xc0] ss:$16 sps:$4 sm:$0xff]   ;;  %v9045_v61 = vld [vmem:[#allocation8 + $0xc8] ss:$16 sps:$4 sm:$0xff]  }
 0x762   : > { %v9050_v40 = vld [vmem:[#allocation8 + $0xe4] ss:$16 sps:$4 sm:$0xff]   ;;  %v9061_v16 = vld [vmem:[#allocation10 + $0x88] sm:$0xff]  }
 0x763   : > { %8713 = vmatmul.mubr.bf16.vlgmr.msra.gmra.mrb[32].mxu1 %v6999_v58  ;;  %7404 = vmatpush1.bf16.msra.mxu0 %v9024_v37  ;;  %v9053_v58 = vld [vmem:[#allocation8 + $0xec] ss:$16 sps:$4 sm:$0xff]   ;;  %v9055_v56 = vld [vmem:[#allocation10 + $0xc0] sm:$0xff]   ;;  %v9063_v37 = vld [vmem:[#allocation10 + $0xd0] sm:$0xff]  }
 0x764   : > { %7482 = vmatprep.mubr.bf16.mxu1 %v12129_v52  ;;  %7451 = vmatpush1.bf16.msra.mxu1 %v9009_v55  ;;  %v8358_v55 = vld [vmem:[%s12066_s5 + $0x2] ss:$0 sm:$0xff] }
 0x765   : > { %7452 = vmatprep.subr.bf16.mxu1 %v9017_v15  ;;  %7405 = vmatprep.subr.bf16.mxu0 %v9032_v12  ;;  %v9066_v12 = vld [vmem:[#allocation10 + $0x58] sm:$0xff]  }
 0x767   : > { %7406 = vmatpush1.bf16.msra.mxu0 %v9030_v50  ;;  %v9068_v50 = vld [vmem:[#allocation10 + $0x18] sm:$0xff]  }
 0x768   : > { %7453 = vmatpush1.bf16.msra.mxu1 %v9015_v45  ;;  %7407 = vmatprep.subr.bf16.mxu0 %v9038_v27  ;;  %v9070_v27 = vld [vmem:[#allocation10 + $0x60] sm:$0xff]  }
 0x769   : > { %7454 = vmatprep.subr.bf16.mxu1 %v9023_v20  ;;  %v9059_v20 = vld [vmem:[#allocation10 + $0xc8] sm:$0xff]  }
 0x76b   : > { %7408 = vmatpush1.bf16.msra.mxu0 %v9036_v17  ;;  %v9072_v17 = vld [vmem:[#allocation10 + $0x20] sm:$0xff]  }
 0x76c   : > { %7455 = vmatpush1.bf16.msra.mxu1 %v9021_v22  ;;  %7409 = vmatprep.subr.bf16.mxu0 %v9044_v51  ;;  %v9058_v22 = vld [vmem:[#allocation10 + $0x48] sm:$0xff]  }
 0x76d   : > { %7456 = vmatprep.subr.bf16.mxu1 %v9029_v7  ;;  %v9064_v7 = vld [vmem:[#allocation10 + $0x10] sm:$0xff]   ;;  %v9074_v51 = vld [vmem:[#allocation10 + $0x68] sm:$0xff]  }
 0x76f   : > { %7410 = vmatpush1.bf16.msra.mxu0 %v9042_v38  ;;  %v9076_v38 = vld [vmem:[#allocation10 + $0x28] sm:$0xff]  }
 0x770   : > { %7457 = vmatpush1.bf16.msra.mxu1 %v9027_v1  ;;  %7411 = vmatprep.subr.bf16.mxu0 %v9050_v40  ;;  %v9065_v1 = vld [vmem:[#allocation10 + $0x90] sm:$0xff]  }
 0x771   : > { %7458 = vmatprep.subr.bf16.mxu1 %v9035_v60  ;;  %v9067_v60 = vld [vmem:[#allocation10 + $0xd8] sm:$0xff]   ;;  %v9078_v40 = vld [vmem:[#allocation10 + $0x70] sm:$0xff]  }
 0x774   : > { %7459 = vmatpush1.bf16.msra.mxu1 %v9033_v24  ;;  %v9069_v24 = vld [vmem:[#allocation10 + $0x98] sm:$0xff]  }
 0x775   : > { %7460 = vmatprep.subr.bf16.mxu1 %v9041_v8  ;;  %v9071_v8 = vld [vmem:[#allocation10 + $0xe0] sm:$0xff]  }
 0x778   : > { %7461 = vmatpush1.bf16.msra.mxu1 %v9039_v14  ;;  %v9073_v14 = vld [vmem:[#allocation10 + $0xa0] sm:$0xff]  }
 0x779   : > { %7462 = vmatprep.subr.bf16.mxu1 %v9047_v48  ;;  %v9075_v48 = vld [vmem:[#allocation10 + $0xe8] sm:$0xff]  }
 0x77c   : > { %7463 = vmatpush1.bf16.msra.mxu1 %v9045_v61  ;;  %v9077_v61 = vld [vmem:[#allocation10 + $0xa8] sm:$0xff]  }
 0x77d   : > { %7464 = vmatprep.subr.bf16.mxu1 %v9053_v58  ;;  %v9079_v58 = vld [vmem:[#allocation10 + $0xf0] sm:$0xff]  }
 0x836   : > { %v8714_v35 = vpop.f32.mrb[32].mxu1 }
 0x837   : > { %v7102_v0 = vpop.f32.mrb[33].mxu1  ;;  %v7111_v10 = vadd.f32 %v8714_v35, %v8349_v26  ;;  %v9051_v35 = vld [vmem:[#allocation8 + $0xe8] ss:$16 sps:$4 sm:$0xff]  }
 0x838   : > { %v7103_v29 = vadd.f32 %v8349_v26, %v7102_v0  ;;  %v8715_v6 = vpop.f32.mrb[34].mxu1  ;;  %7465 = vmatpush1.bf16.msra.mxu1 %v9051_v35  ;;  %v9081_v35 = vld [vmem:[#allocation10 + $0xb0] sm:$0xff]  }
 0x839   : > { %v7105_v47 = vpop.f32.mrb[35].mxu1  ;;  %v11834_v28 = vadd.f32 %v9264_v63, %v7111_v10  ;;  %v7114_v13 = vadd.f32 %v8715_v6, %v8349_v26  ;;  %8536 = vmatprep.subr.bf16.mxu1 %v9055_v56 }
 0x83a   : > { %v11827_v42 = vadd.f32 %v9262_v11, %v7103_v29  ;;  %v7106_v49 = vadd.f32 %v8349_v26, %v7105_v47  ;;  %v9048_v26 = vld [vmem:[#allocation8 + $0xe0] ss:$16 sps:$4 sm:$0xff]  }
 0x83b   : > { %v11839_v57 = vadd.f32 %v9265_v43, %v7114_v13  ;;  %7412 = vmatpush1.bf16.msra.mxu0 %v9048_v26  ;;  %v9080_v26 = vld [vmem:[#allocation10 + $0x30] sm:$0xff]  }
 0x83c   : > { %v11830_v18 = vadd.f32 %v9263_v2, %v7106_v49  ;;  %7121 = vadd.xlane.f32.xlu0 %v11827_v42 }
 0x83e   : > { %7123 = vadd.xlane.f32.xlu1 %v11830_v18 }
 0x840   : > { %7125 = vadd.xlane.f32.xlu0 %v11834_v28 }
 0x844   : > { %7127 = vadd.xlane.f32.xlu0 %v11839_v57 }
 0x8c9   : > { %v7122_v9 = vpop.xlane.xlu0 %7121 }
 0x8ca   : > { %v7129_v30 = vmul.f32 0.0078125, %v7122_v9  ;;  %v8359_v9 = vld [vmem:[%s12066_s5 + $0x3] ss:$0 sm:$0xff] }
 0x8cb   : > { %v7124_v62 = vpop.xlane.xlu1 %7123 }
 0x8cc   : > { %v11843_v25 = vsub.f32 %v11827_v42, %v7129_v30  ;;  %v7130_v54 = vmul.f32 0.0078125, %v7124_v62 }
 0x8cd   : > { %v7126_v44 = vpop.xlane.xlu0 %7125 }
 0x8ce   : > { %v11846_v31 = vsub.f32 %v11830_v18, %v7130_v54  ;;  %v7131_v34 = vmul.f32 0.0078125, %v7126_v44  ;;  %v7137_v33 = vmul.f32 %v11843_v25, %v11843_v25 }
 0x8d0   : > { %v11851_v46 = vsub.f32 %v11834_v28, %v7131_v34  ;;  %7141 = vadd.xlane.f32.xlu0 %v7137_v33  ;;  %v7138_v23 = vmul.f32 %v11846_v31, %v11846_v31 }
 0x8d1   : > { %v7128_v39 = vpop.xlane.xlu0 %7127 }
 0x8d2   : > { %v7132_v4 = vmul.f32 0.0078125, %v7128_v39  ;;  %7143 = vadd.xlane.f32.xlu1 %v7138_v23  ;;  %v7139_v32 = vmul.f32 %v11851_v46, %v11851_v46 }
 0x8d4   : > { %v11858_v59 = vsub.f32 %v11839_v57, %v7132_v4  ;;  %7145 = vadd.xlane.f32.xlu0 %v7139_v32 }
 0x8d6   : > { %v7140_v19 = vmul.f32 %v11858_v59, %v11858_v59 }
 0x8d8   : > { %7147 = vadd.xlane.f32.xlu1 %v7140_v19  ;;  %v9054_v19 = vld [vmem:[#allocation10 + $0x40] sm:$0xff]  }
 0x8d9   : > { %8508 = vmatprep.subr.bf16.mxu0 %v9054_v19 }
 0x95d   : > { %v7142_v0 = vpop.xlane.xlu0 %7141 }
 0x95e   : > { %v7149_v29 = vmul.f32 0.0078125, %v7142_v0  ;;  %v9082_v0 = vld [vmem:[#allocation10 + $0x78] sm:$0xff]  }
 0x95f   : > { %v7144_v6 = vpop.xlane.xlu1 %7143 }
 0x960   : > { %v7153_v47 = vadd.f32 1e-05, %v7149_v29  ;;  %v7150_v10 = vmul.f32 0.0078125, %v7144_v6  ;;  %v9083_v29 = vld [vmem:[#allocation10 + $0xf8] sm:$0xff]  }
 0x961   : > { %v7146_v11 = vpop.xlane.xlu0 %7145  ;;  %v9084_v6 = vld [vmem:[#allocation10 + $0x38] sm:$0xff]  }
 0x962   : > { %9222 = vrsqrt.f32 %v7153_v47  ;;  %v7154_v49 = vadd.f32 1e-05, %v7150_v10  ;;  %v7151_v2 = vmul.f32 0.0078125, %v7146_v11  ;;  %v9085_v47 = vld [vmem:[#allocation10 + $0xb8] sm:$0xff]   ;;  %v12130_v10 = vld [vmem:[#allocation16_spill] sm:$0xff] }
 0x963   : > { %v7219_v11 = vsub.s32 0, %v12130_v10 }
 0x964   : > { %9224 = vrsqrt.f32 %v7154_v49  ;;  %v7155_v63 = vadd.f32 1e-05, %v7151_v2  ;;  %v7227_v49 = vsub.s32 2, %v12130_v10  ;;  %v7215_v2 = vld [vmem:[%s12067_s6] sm:$0xf] }
 0x965   : > { %v7148_v13 = vpop.xlane.xlu1 %7147 }
 0x966   : > { %9226 = vrsqrt.f32 %v7155_v63  ;;  %v7152_v43 = vmul.f32 0.0078125, %v7148_v13  ;;  %v7223_v63 = vsub.s32 1, %v12130_v10  ;;  %v11880_v13 = vrot.slane %v7215_v2, %v7219_v11 }
 0x968   : > { %v7156_v21 = vadd.f32 1e-05, %v7152_v43  ;;  %v11882_v43 = vrot.slane %v7215_v2, %v7227_v49 }
 0x96a   : > { %9228 = vrsqrt.f32 %v7156_v21  ;;  %v7231_v21 = vsub.s32 3, %v12130_v10 }
 0x96c   : > { %v9223_v36 = vpop.eup %9222 }
 0x96d   : > { %v7161_v3 = vmul.f32 %v9223_v36, %v11843_v25 }
 0x96e   : > { %v9225_v53 = vpop.eup %9224 }
 0x96f   : > { %v7162_v15 = vmul.f32 %v9225_v53, %v11846_v31  ;;  %v7169_v5 = vmul.f32 %v8358_v55, %v7161_v3  ;;  %v11885_v3 = vrot.slane %v7215_v2, %v7223_v63 }
 0x970   : > { %v9227_v45 = vpop.eup %9226 }
 0x971   : > { %v7170_v30 = vmul.f32 %v8358_v55, %v7162_v15  ;;  %v7177_v62 = vadd.f32 %v8359_v9, %v7169_v5  ;;  %v7163_v44 = vmul.f32 %v9227_v45, %v11851_v46  ;;  %v9056_v46 = vld [vmem:[#allocation10] sm:$0xff]  }
 0x973   : > { %v7178_v54 = vadd.f32 %v8359_v9, %v7170_v30  ;;  %v7171_v25 = vmul.f32 %v8358_v55, %v7163_v44 }
 0x974   : > { %v9229_v34 = vpop.eup %9228 }
 0x975   : > { %v7181_v33 = vpack.c.bf16 %v7178_v54, %v7177_v62  ;;  %v7164_v23 = vmul.f32 %v9229_v34, %v11858_v59  ;;  %v7179_v4 = vadd.f32 %v8359_v9, %v7171_v25  ;;  %v9060_v59 = vld [vmem:[#allocation10 + $0x8] sm:$0xff]  }
 0x977   : > { %7430 = vmatmul.mubr.bf16.vlgmr.msra.gmra.mrb[44].mxu0 %v7181_v33  ;;  %7483 = vmatmul.mubr.bf16.vlgmr.msra.gmra.mrb[36].mxu1 %v7181_v33  ;;  %v7172_v39 = vmul.f32 %v8358_v55, %v7164_v23 }
 0x978   : > { %7439 = vmatprep.mubr.bf16.mxu0 %v12129_v52  ;;  %7492 = vmatprep.mubr.bf16.mxu1 %v12129_v52  ;;  %v9062_v52 = vld [vmem:[#allocation10 + $0x50] sm:$0xff]  }
 0x979   : > { %v7180_v31 = vadd.f32 %v8359_v9, %v7172_v39  ;;  %8509 = vmatpush3.bf16.msra.mxu0 %v9056_v46  ;;  %8537 = vmatpush3.bf16.msra.mxu1 %v9057_v41  ;;  %v11889_v9 = vrot.slane %v7215_v2, %v7231_v21 }
 0x97a   : > { %8510 = vmatprep.subr.bf16.mxu0 %v9058_v22  ;;  %8538 = vmatprep.subr.bf16.mxu1 %v9059_v20 }
 0x97b   : > { %v7182_v32 = vpack.c.bf16 %v7180_v31, %v7179_v4 }
 0x97d   : > { %8511 = vmatpush3.bf16.msra.mxu0 %v9060_v59  ;;  %8539 = vmatpush3.bf16.msra.mxu1 %v9061_v16 }
 0x97e   : > { %8512 = vmatprep.subr.bf16.mxu0 %v9062_v52  ;;  %8540 = vmatprep.subr.bf16.mxu1 %v9063_v37 }
 0x97f   : > { %7440 = vmatmul.mubr.bf16.gmra.mrb[48].mxu0 %v7182_v32  ;;  %7493 = vmatmul.mubr.bf16.gmra.mrb[40].mxu1 %v7182_v32 }
 0x981   : > { %8513 = vmatpush3.bf16.msra.mxu0 %v9064_v7  ;;  %8541 = vmatpush3.bf16.msra.mxu1 %v9065_v1 }
 0x982   : > { %8514 = vmatprep.subr.bf16.mxu0 %v9066_v12  ;;  %8542 = vmatprep.subr.bf16.mxu1 %v9067_v60 }
 0x985   : > { %8515 = vmatpush3.bf16.msra.mxu0 %v9068_v50  ;;  %8543 = vmatpush3.bf16.msra.mxu1 %v9069_v24 }
 0x986   : > { %8516 = vmatprep.subr.bf16.mxu0 %v9070_v27  ;;  %8544 = vmatprep.subr.bf16.mxu1 %v9071_v8 }
 0x989   : > { %8517 = vmatpush3.bf16.msra.mxu0 %v9072_v17  ;;  %8545 = vmatpush3.bf16.msra.mxu1 %v9073_v14 }
 0x98a   : > { %8518 = vmatprep.subr.bf16.mxu0 %v9074_v51  ;;  %8546 = vmatprep.subr.bf16.mxu1 %v9075_v48 }
 0x98d   : > { %8519 = vmatpush3.bf16.msra.mxu0 %v9076_v38  ;;  %8547 = vmatpush3.bf16.msra.mxu1 %v9077_v61 }
 0x98e   : > { %8520 = vmatprep.subr.bf16.mxu0 %v9078_v40  ;;  %8548 = vmatprep.subr.bf16.mxu1 %v9079_v58 }
 0x991   : > { %8521 = vmatpush3.bf16.msra.mxu0 %v9080_v26  ;;  %8549 = vmatpush3.bf16.msra.mxu1 %v9081_v35 }
 0x992   : > { %8522 = vmatprep.subr.bf16.mxu0 %v9082_v0  ;;  %8550 = vmatprep.subr.bf16.mxu1 %v9083_v29 }
 0x995   : > { %8523 = vmatpush3.bf16.msra.mxu0 %v9084_v6  ;;  %8551 = vmatpush3.bf16.msra.mxu1 %v9085_v47 }
 0xa4a   : > { %v7431_v36 = vpop.f32.mrb[44].mxu0  ;;  %v7484_v55 = vpop.f32.mrb[36].mxu1 }
 0xa4b   : > { %v7432_v53 = vadd.f32 %v7431_v36, %v11880_v13  ;;  %v7485_v15 = vadd.f32 %v7484_v55, %v11882_v43  ;;  %v7433_v5 = vpop.f32.mrb[45].mxu0  ;;  %v7486_v45 = vpop.f32.mrb[37].mxu1 }
 0xa4c   : > { %v7435_v30 = vpop.f32.mrb[46].mxu0  ;;  %v7488_v62 = vpop.f32.mrb[38].mxu1  ;;  %v11892_v34 = vadd.f32 %v7433_v5, %v11885_v3  ;;  %v11902_v19 = vadd.f32 %v7486_v45, %v11889_v9 }
 0xa4d   : > { %v7519_v54 = vmul.f32 0.044715, %v7432_v53  ;;  %v7521_v44 = vmul.f32 0.044715, %v7485_v15  ;;  %v7436_v33 = vadd.f32 %v7435_v30, %v11880_v13  ;;  %v11896_v23 = vadd.f32 %v7488_v62, %v11882_v43  ;;  %v7437_v25 = vpop.f32.mrb[47].mxu0  ;;  %v7490_v39 = vpop.f32.mrb[39].mxu1 }
 0xa4e   : > { %v11899_v32 = vadd.f32 %v7437_v25, %v11885_v3  ;;  %v11905_v46 = vadd.f32 %v7490_v39, %v11889_v9  ;;  %v11907_v41 = vmul.f32 0.5, %v7432_v53  ;;  %v7520_v16 = vmul.f32 0.044715, %v11892_v34 }
 0xa4f   : > { %v7535_v31 = vmul.f32 %v7519_v54, %v7432_v53  ;;  %v7537_v4 = vmul.f32 %v7521_v44, %v7485_v15  ;;  %v7523_v56 = vmul.f32 0.044715, %v7436_v33  ;;  %v7525_v59 = vmul.f32 0.044715, %v11896_v23 }
 0xa50   : > { %v7524_v37 = vmul.f32 0.044715, %v11899_v32  ;;  %v11912_v60 = vmul.f32 0.5, %v7485_v15  ;;  %v7522_v17 = vmul.f32 0.044715, %v11902_v19  ;;  %v7536_v29 = vmul.f32 %v7520_v16, %v11892_v34 }
 0xa51   : > { %v7551_v22 = vmul.f32 %v7535_v31, %v7432_v53  ;;  %v7553_v20 = vmul.f32 %v7537_v4, %v7485_v15  ;;  %v7539_v52 = vmul.f32 %v7523_v56, %v7436_v33  ;;  %v7541_v24 = vmul.f32 %v7525_v59, %v11896_v23 }
 0xa52   : > { %v7441_v7 = vpop.f32.mrb[48].mxu0  ;;  %v7494_v1 = vpop.f32.mrb[40].mxu1  ;;  %v7526_v51 = vmul.f32 0.044715, %v11905_v46  ;;  %v7540_v47 = vmul.f32 %v7524_v37, %v11899_v32  ;;  %v7538_v63 = vmul.f32 %v7522_v17, %v11902_v19  ;;  %v7552_v45 = vmul.f32 %v7536_v29, %v11892_v34 }
 0xa53   : > { %v7567_v12 = vadd.f32 %v7551_v22, %v7432_v53  ;;  %v7569_v50 = vadd.f32 %v7553_v20, %v7485_v15  ;;  %v7443_v27 = vpop.f32.mrb[49].mxu0  ;;  %v7496_v8 = vpop.f32.mrb[41].mxu1  ;;  %v7555_v14 = vmul.f32 %v7539_v52, %v7436_v33  ;;  %v11918_v48 = vadd.f32 %v7441_v7, %v11880_v13 }
 0xa54   : > { %v7445_v38 = vpop.f32.mrb[50].mxu0  ;;  %v7498_v61 = vpop.f32.mrb[42].mxu1  ;;  %v7557_v26 = vmul.f32 %v7541_v24, %v11896_v23  ;;  %v11924_v10 = vadd.f32 %v7494_v1, %v11882_v43  ;;  %v11929_v2 = vadd.f32 %v7443_v27, %v11885_v3  ;;  %v7542_v36 = vmul.f32 %v7526_v51, %v11905_v46 }
 0xa55   : > { %v7583_v40 = vmul.f32 0.7978846, %v7567_v12  ;;  %v7585_v58 = vmul.f32 0.7978846, %v7569_v50  ;;  %v7447_v35 = vpop.f32.mrb[51].mxu0  ;;  %v7500_v0 = vpop.f32.mrb[43].mxu1  ;;  %v7571_v6 = vadd.f32 %v7555_v14, %v7436_v33  ;;  %v11935_v15 = vadd.f32 %v7496_v8, %v11889_v9 }
 0xa56   : > { %v7573_v11 = vadd.f32 %v7557_v26, %v11896_v23  ;;  %v7527_v49 = vmul.f32 0.044715, %v11918_v48  ;;  %v7528_v53 = vmul.f32 0.044715, %v11929_v2  ;;  %v11938_v5 = vadd.f32 %v7445_v38, %v11880_v13 }
 0xa57   : > { %9230 = vtanh.f32 %v7583_v40  ;;  %v7587_v21 = vmul.f32 0.7978846, %v7571_v6  ;;  %v7556_v30 = vmul.f32 %v7540_v47, %v11899_v32  ;;  %v11943_v62 = vadd.f32 %v7498_v61, %v11882_v43 }
 0xa58   : > { %9232 = vtanh.f32 %v7585_v58  ;;  %v7589_v55 = vmul.f32 0.7978846, %v7573_v11  ;;  %v7543_v54 = vmul.f32 %v7527_v49, %v11918_v48  ;;  %v7529_v44 = vmul.f32 0.044715, %v11924_v10 }
 0xa59   : > { %9234 = vtanh.f32 %v7587_v21  ;;  %v7530_v25 = vmul.f32 0.044715, %v11935_v15  ;;  %v7507_v39 = vmul.f32 0.5, %v7436_v33  ;;  %v7544_v31 = vmul.f32 %v7528_v53, %v11929_v2 }
 0xa5a   : > { %9236 = vtanh.f32 %v7589_v55  ;;  %v11950_v13 = vadd.f32 %v7447_v35, %v11885_v3  ;;  %v11953_v4 = vadd.f32 %v7500_v0, %v11889_v9  ;;  %v7554_v56 = vmul.f32 %v7538_v63, %v11902_v19 }
 0xa5b   : > { %v7558_v43 = vmul.f32 %v7542_v36, %v11905_v46  ;;  %v7531_v22 = vmul.f32 0.044715, %v11938_v5  ;;  %v7533_v20 = vmul.f32 0.044715, %v11943_v62  ;;  %v7546_v59 = vmul.f32 %v7530_v25, %v11935_v15 }
 0xa5c   : > { %v7532_v33 = vmul.f32 0.044715, %v11950_v13  ;;  %v7534_v16 = vmul.f32 0.044715, %v11953_v4  ;;  %v7568_v3 = vadd.f32 %v7552_v45, %v11892_v34  ;;  %v7509_v52 = vmul.f32 0.5, %v11896_v23 }
 0xa5d   : > { %v7559_v9 = vmul.f32 %v7543_v54, %v11918_v48  ;;  %v7545_v37 = vmul.f32 %v7529_v44, %v11924_v10  ;;  %v7572_v7 = vadd.f32 %v7556_v30, %v11899_v32  ;;  %v7560_v1 = vmul.f32 %v7544_v31, %v11929_v2 }
 0xa5e   : > { %v7548_v12 = vmul.f32 %v7532_v33, %v11950_v13  ;;  %v7550_v50 = vmul.f32 %v7534_v16, %v11953_v4  ;;  %v7584_v24 = vmul.f32 0.7978846, %v7568_v3  ;;  %v7547_v8 = vmul.f32 %v7531_v22, %v11938_v5 }
 0xa5f   : > { %v7588_v17 = vmul.f32 0.7978846, %v7572_v7  ;;  %v7570_v14 = vadd.f32 %v7554_v56, %v11902_v19  ;;  %v7574_v23 = vadd.f32 %v7558_v43, %v11905_v46  ;;  %v7562_v38 = vmul.f32 %v7546_v59, %v11935_v15 }
 0xa60   : > { %v7549_v61 = vmul.f32 %v7533_v20, %v11943_v62  ;;  %v7564_v40 = vmul.f32 %v7548_v12, %v11950_v13  ;;  %9238 = vtanh.f32 %v7584_v24  ;;  %v7561_v29 = vmul.f32 %v7545_v37, %v11924_v10 }
 0xa61   : > { %v9231_v27 = vpop.eup %9230  ;;  %9240 = vtanh.f32 %v7588_v17  ;;  %v7586_v58 = vmul.f32 0.7978846, %v7570_v14  ;;  %v7590_v26 = vmul.f32 0.7978846, %v7574_v23  ;;  %v7566_v6 = vmul.f32 %v7550_v50, %v11953_v4 }
 0xa62   : > { %v9233_v51 = vpop.eup %9232  ;;  %v7615_v35 = vadd.f32 1.0, %v9231_v27  ;;  %v7576_v11 = vadd.f32 %v7560_v1, %v11929_v2  ;;  %v7563_v63 = vmul.f32 %v7547_v8, %v11938_v5  ;;  %v7580_v36 = vadd.f32 %v7564_v40, %v11950_v13 }
 0xa63   : > { %v9235_v0 = vpop.eup %9234  ;;  %v7617_v47 = vadd.f32 1.0, %v9233_v51  ;;  %9242 = vtanh.f32 %v7586_v58  ;;  %v7565_v55 = vmul.f32 %v7549_v61, %v11943_v62  ;;  %v7578_v25 = vadd.f32 %v7562_v38, %v11935_v15 }
 0xa64   : > { %v9237_v49 = vpop.eup %9236  ;;  %v7619_v21 = vadd.f32 1.0, %v9235_v0  ;;  %9244 = vtanh.f32 %v7590_v26  ;;  %v7592_v45 = vmul.f32 0.7978846, %v7576_v11  ;;  %v7631_v30 = vmul.f32 %v7615_v35, %v11907_v41 }
 0xa65   : > { %v7621_v53 = vadd.f32 1.0, %v9237_v49  ;;  %v7596_v44 = vmul.f32 0.7978846, %v7580_v36  ;;  %v7633_v31 = vmul.f32 %v7617_v47, %v11912_v60  ;;  %v7582_v43 = vadd.f32 %v7566_v6, %v11953_v4 }
 0xa66   : > { %v7635_v54 = vmul.f32 %v7619_v21, %v7507_v39  ;;  %9246 = vtanh.f32 %v7592_v45  ;;  %v7594_v20 = vmul.f32 0.7978846, %v7578_v25  ;;  %v7575_v16 = vadd.f32 %v7559_v9, %v11918_v48 }
 0xa67   : > { %v7637_v56 = vmul.f32 %v7621_v53, %v7509_v52  ;;  %9248 = vtanh.f32 %v7596_v44  ;;  %v7598_v33 = vmul.f32 0.7978846, %v7582_v43  ;;  %v7579_v3 = vadd.f32 %v7563_v63, %v11938_v5 }
 0xa68   : > { %v7647_v22 = vpack.c.bf16 %v7635_v54, %v7631_v30  ;;  %9250 = vtanh.f32 %v7594_v20  ;;  %v7577_v41 = vadd.f32 %v7561_v29, %v11924_v10  ;;  %v7591_v37 = vmul.f32 0.7978846, %v7575_v16 }
 0xa69   : > { %v7649_v59 = vpack.c.bf16 %v7637_v56, %v7633_v31  ;;  %9252 = vtanh.f32 %v7598_v33  ;;  %v7595_v60 = vmul.f32 0.7978846, %v7579_v3  ;;  %v7581_v52 = vadd.f32 %v7565_v55, %v11943_v62 }
 0xa6a   : > { %v9239_v39 = vpop.eup %9238  ;;  %v7504_v1 = vmul.f32 0.5, %v11892_v34  ;;  %v7593_v50 = vmul.f32 0.7978846, %v7577_v41  ;;  %v7508_v24 = vmul.f32 0.5, %v11899_v32  ;;  %9254 = vtanh.f32 %v7591_v37 }
 0xa6b   : > { %v9241_v7 = vpop.eup %9240  ;;  %v7616_v12 = vadd.f32 1.0, %v9239_v39  ;;  %v7597_v9 = vmul.f32 0.7978846, %v7581_v52  ;;  %9256 = vtanh.f32 %v7595_v60  ;;  %v7506_v38 = vmul.f32 0.5, %v11902_v19 }
 0xa6c   : > { %v7620_v27 = vadd.f32 1.0, %v9241_v7  ;;  %9258 = vtanh.f32 %v7593_v50  ;;  %v7510_v61 = vmul.f32 0.5, %v11905_v46  ;;  %v7512_v29 = vmul.f32 0.5, %v11929_v2 }
 0xa6d   : > { %v9243_v8 = vpop.eup %9242  ;;  %v7632_v14 = vmul.f32 %v7616_v12, %v7504_v1  ;;  %9260 = vtanh.f32 %v7597_v9  ;;  %v7516_v6 = vmul.f32 0.5, %v11950_v13  ;;  %v7514_v36 = vmul.f32 0.5, %v11935_v15 }
 0xa6e   : > { %v9245_v17 = vpop.eup %9244  ;;  %v7636_v23 = vmul.f32 %v7620_v27, %v7508_v24  ;;  %v7618_v51 = vadd.f32 1.0, %v9243_v8  ;;  %v7518_v55 = vmul.f32 0.5, %v11953_v4  ;;  %v7511_v31 = vmul.f32 0.5, %v11918_v48 }
 0xa6f   : > { %v7622_v40 = vadd.f32 1.0, %v9245_v17  ;;  %v7515_v56 = vmul.f32 0.5, %v11938_v5  ;;  %v7513_v15 = vmul.f32 0.5, %v11924_v10  ;;  %v8392_v5 = vld [vmem:[%s12066_s5 + $0x5] ss:$0 sm:$0xff] }
 0xa70   : > { %v9247_v34 = vpop.eup %9246  ;;  %v7648_v58 = vpack.c.bf16 %v7636_v23, %v7632_v14  ;;  %v7634_v32 = vmul.f32 %v7618_v51, %v7506_v38 }
 0xa71   : > { %v9249_v26 = vpop.eup %9248  ;;  %v7638_v35 = vmul.f32 %v7622_v40, %v7510_v61  ;;  %v7624_v0 = vadd.f32 1.0, %v9247_v34 }
 0xa72   : > { %7947 = vmatprep.mubr.bf16.mxu0 %v7648_v58  ;;  %v7628_v47 = vadd.f32 1.0, %v9249_v26  ;;  %v9251_v11 = vpop.eup %9250 }
 0xa73   : > { %v7650_v49 = vpack.c.bf16 %v7638_v35, %v7634_v32  ;;  %7948 = vmatmul.mubr.bf16.vlgmr.msra.gmra.mrb[52].mxu0 %v7647_v22  ;;  %v9253_v19 = vpop.eup %9252  ;;  %v7640_v63 = vmul.f32 %v7624_v0, %v7512_v29  ;;  %v7626_v21 = vadd.f32 1.0, %v9251_v11 }
 0xa74   : > { %v7644_v46 = vmul.f32 %v7628_v47, %v7516_v6  ;;  %v7630_v53 = vadd.f32 1.0, %v9253_v19  ;;  %v9255_v45 = vpop.eup %9254 }
 0xa75   : > { %7996 = vmatprep.mubr.bf16.mxu1 %v7650_v49  ;;  %v9257_v2 = vpop.eup %9256  ;;  %v7642_v54 = vmul.f32 %v7626_v21, %v7514_v36  ;;  %v7623_v44 = vadd.f32 1.0, %v9255_v45 }
 0xa76   : > { %7997 = vmatmul.mubr.bf16.vlgmr.msra.gmra.mrb[44].mxu1 %v7649_v59  ;;  %v7652_v30 = vpack.c.bf16 %v7644_v46, %v7640_v63  ;;  %v7646_v13 = vmul.f32 %v7630_v53, %v7518_v55  ;;  %v9259_v25 = vpop.eup %9258  ;;  %v7627_v43 = vadd.f32 1.0, %v9257_v2  ;;  %v7517_v59 = vmul.f32 0.5, %v11943_v62 }
 0xa77   : > { %v9261_v22 = vpop.eup %9260  ;;  %v7625_v4 = vadd.f32 1.0, %v9259_v25  ;;  %v7639_v33 = vmul.f32 %v7623_v44, %v7511_v31 }
 0xa78   : > { %7955 = vmatprep.mubr.bf16.mxu0 %v7652_v30  ;;  %v7654_v20 = vpack.c.bf16 %v7646_v13, %v7642_v54  ;;  %v7643_v16 = vmul.f32 %v7627_v43, %v7515_v56  ;;  %v7629_v3 = vadd.f32 1.0, %v9261_v22 }
 0xa79   : > { %v7641_v39 = vmul.f32 %v7625_v4, %v7513_v15 }
 0xa7a   : > { %8004 = vmatprep.mubr.bf16.mxu1 %v7654_v20  ;;  %v7651_v41 = vpack.c.bf16 %v7643_v16, %v7639_v33  ;;  %v7645_v37 = vmul.f32 %v7629_v3, %v7517_v59 }
 0xa7c   : > { %7956 = vmatmul.mubr.bf16.gmra.mrb[56].mxu0 %v7651_v41  ;;  %v7653_v60 = vpack.c.bf16 %v7645_v37, %v7641_v39 }
 0xa7e   : > { %8005 = vmatmul.mubr.bf16.gmra.mrb[48].mxu1 %v7653_v60 }
 0xb46   : > { %v8524_v48 = vpop.f32.mrb[52].mxu0 }
 0xb47   : > { %v8525_v52 = vpop.f32.mrb[53].mxu0 }
 0xb48   : > { %v8526_v10 = vadd.f32 %v8525_v52, %v8524_v48  ;;  %v8527_v7 = vpop.f32.mrb[54].mxu0 }
 0xb49   : > { %v8552_v1 = vpop.f32.mrb[44].mxu1  ;;  %v8528_v12 = vpop.f32.mrb[55].mxu0 }
 0xb4a   : > { %v7950_v62 = vadd.f32 %v8526_v10, %v8392_v5  ;;  %v8553_v50 = vpop.f32.mrb[45].mxu1  ;;  %v8529_v24 = vadd.f32 %v8528_v12, %v8527_v7 }
 0xb4b   : > { %v8554_v27 = vadd.f32 %v8553_v50, %v8552_v1  ;;  %v8555_v9 = vpop.f32.mrb[46].mxu1 }
 0xb4c   : > { %v7953_v8 = vadd.f32 %v8529_v24, %v8392_v5  ;;  %v8556_v17 = vpop.f32.mrb[47].mxu1 }
 0xb4d   : > { %v7999_v14 = vadd.f32 %v8554_v27, %v7950_v62  ;;  %v8557_v23 = vadd.f32 %v8556_v17, %v8555_v9 }
 0xb4f   : > { %v8013_v51 = vadd.f32 %v7999_v14, %v11827_v42  ;;  %v8002_v38 = vadd.f32 %v8557_v23, %v7953_v8  ;;  %v8530_v40 = vpop.f32.mrb[56].mxu0 }
 0xb50   : > { %v8531_v34 = vpop.f32.mrb[57].mxu0 }
 0xb51   : > { %8017 = vst [vmem:[%s354_s15] sm:$0xff] %v8013_v51  ;;  %v8014_v61 = vadd.f32 %v8002_v38, %v11830_v18  ;;  %v8558_v58 = vpop.f32.mrb[48].mxu1  ;;  %v8532_v26 = vadd.f32 %v8531_v34, %v8530_v40  ;;  %v8533_v32 = vpop.f32.mrb[58].mxu0 }
 0xb52   : > { %v8559_v35 = vpop.f32.mrb[49].mxu1  ;;  %v8534_v0 = vpop.f32.mrb[59].mxu0 }
 0xb53   : > { %8018 = vst [vmem:[%s354_s15 + $0x8] sm:$0xff] %v8014_v61  ;;  %v7958_v29 = vadd.f32 %v8532_v26, %v8392_v5  ;;  %v8560_v6 = vadd.f32 %v8559_v35, %v8558_v58  ;;  %v8561_v47 = vpop.f32.mrb[50].mxu1  ;;  %v8535_v42 = vadd.f32 %v8534_v0, %v8533_v32 }
 0xb54   : > { %v8562_v11 = vpop.f32.mrb[51].mxu1 }
 0xb55   : > { %v8007_v49 = vadd.f32 %v8560_v6, %v7958_v29  ;;  %v7961_v19 = vadd.f32 %v8535_v42, %v8392_v5  ;;  %v8563_v18 = vadd.f32 %v8562_v11, %v8561_v47 }
 0xb57   : > { %v8015_v63 = vadd.f32 %v8007_v49, %v11834_v28  ;;  %v8010_v46 = vadd.f32 %v8563_v18, %v7961_v19 }
 0xb59   : > { %8019 = vst [vmem:[%s354_s15 + $0x10] sm:$0xff] %v8015_v63  ;;  %v8016_v21 = vadd.f32 %v8010_v46, %v11839_v57 }
 0xb5b   : > { %8020 = vst [vmem:[%s354_s15 + $0x18] sm:$0xff] %v8016_v21 }
 0xb5c   : > { %9421 = shalt.err (!%p9418_p13)
}
 0xb5d   : > { %s9422_s17 = scalar_lea.hbm %s12016_s30, 512  ;;  %s9426_s11 = scalar_lea.hbm %s12068_s7, 1024 }
 0xb5e   : > { %p9423_p9 = scmp.ne.s32.totalorder %s12016_s30, %s9422_s17  ;;  %p9427_p4 = scmp.lt.u32.totalorder %s12016_s30, %s12068_s7 }
 0xb5f   : > { %p9428_p8 = scmp.lt.u32.totalorder %s9426_s11, %s9422_s17  ;;  %p9430_p3 = scmp.lt.u32.totalorder %s9422_s17, %s12016_s30 }
 0xb60   : > { %p9424_p0 = pnand %p9423_p9, %p9706_p10 }
 0xb61   : > { %p9429_p6 = por %p9428_p8, %p9427_p4 }
 0xb62   : > { %p9425_p11 = pneg %p9424_p0 }
 0xb63   : > { %p9431_p5 = por %p9430_p3, %p9429_p6 }
 0xb65   : > { %p9432_p7 = pnand %p9431_p5, %p9425_p11 }
 0xb67   : > { %9435 = shalt.err (!%p9432_p7)
}
 0xb68   : > { %s9508_s12 = smov 128   ;;  %s9509_s10 = smov 8  }
 0xb69   : > { %8734 = dma.vmem_to_hbm [thread:$0]  (%p9706_p10), %s12010_s13, 512, %s12016_s30, %s8022_s21, %s9508_s12, %s9508_s12, %s9509_s10  }
 0xb6a PF: > { %s8050_s9 = sand.u32 1, %s9470_s24   ;;  %p12131_p12 = scmp.ne.s32.totalorder %s12086_s8, 0 }
 0xb6b   : > { %p12132_p2 = scmp.ge.s32.totalorder %s9482_s27, 2  ;;  %s8051_s28 = scalar_lea.sflag [#allocation4], %s8050_s9 }
 0xb6d   : > { %p8754_p1 = pnand %p12132_p2, %p12131_p12 }
 0xb6f   : > { %9465 = dma.done.wait (!%p8754_p1), %s8051_s28, 512  }
 0xb70   : > { %9467 = vsyncadd (!%p8754_p1), %s8051_s28, 4294966784  ;;  %p22_p13 = scmp.ge.s32.totalorder %s9696_s20, 4   ;;  %s12133_s24 = smov %s9474_s25 }
 0xb71   : > { %s12134_s25 = smov %s9478_s26  ;;  %s12135_s26 = smov %s9712_s19 }
 0xb72   : > { %s12136_s27 = smov %s9696_s20  ;;  %24 = sbr.rel (!%p22_p13) target bundleno = 9 (0x9), region = 109 }
 0xb79   :  { %8056 = vsyncpa [#allocation3], 1 }
 0xb7a   :  { %8058 = vsyncpa [#allocation3 + $0x1], 1 }
 0xb7b   :  { %8059 = vsyncpa [#allocation6], 1 }
 0xb7c   :  { %8060 = vsyncpa [#allocation9], 1 }
 0xb7d   :  { %8061 = vsyncpa [#allocation4], 1 }
 0xb7e   :  { %8063 = vsyncpa [#allocation4 + $0x1], 1 }

</bundles_post_ra>
